<compile_context>
chip_gen: v5e
topology: v5e:2x2
jax: 0.10.0
libtpu: 0.0.40
codegen_flags: <defaults>
</compile_context>

<pallas_src>
import functools
import math

import numpy as np

import jax
import jax.numpy as jnp
from jax.experimental import pallas as pl
from jax.experimental.pallas import tpu as pltpu


# --------------------------- compiler params ---------------------------------

def _cp(*sem):
    return pltpu.CompilerParams(dimension_semantics=sem,
                                vmem_limit_bytes=64 * 1024 * 1024)


def _const_spec(arr, grid_rank):
    # Full-extent block whose index map is constant (weights / biases).
    nd = arr.ndim
    if grid_rank == 1:
        return pl.BlockSpec(arr.shape, lambda n, _nd=nd: (0,) * _nd)
    return pl.BlockSpec(arr.shape, lambda n, t, _nd=nd: (0,) * _nd)


# --------------------------- fused block kernels -----------------------------

def _fused_s1_kernel(x_ref, pw_w, pw_b, dw1_w, dw1_b, dw2_w, dw2_b,
                     w1, w2, bo, o_ref, hpad_ref, *,
                     H, W, P, THo, taps1, taps2, use_res):
    """One inverted-residual block (stride 1) for one H-tile of one image.

    x_ref   : (1, H+2P, W, Cin) bf16   -- full H-padded image (re-used over t)
    hpad_ref: (THo+2P, W+2P, Cmid) bf16 VMEM scratch (zero-padded hidden tile)
    o_ref   : (1, THo, W, Cout) bf16
    """
    Lh = hpad_ref.shape[0]
    Cmid = hpad_ref.shape[2]
    t = pl.program_id(1)
    g0 = pl.multiple_of(t * THo, THo)          # first padded-h row of this tile

    # conv zero-padding: zero the W-padding strips (rows handled by the mask)
    zs = jnp.zeros((Lh, P, Cmid), dtype=hpad_ref.dtype)
    hpad_ref[:, :P, :] = zs
    hpad_ref[:, P + W:, :] = zs

    # --- pw: 1x1 conv (BN folded) + bias + ReLU on the haloed row window ----
    xs = x_ref[0, pl.ds(g0, Lh), :, :]                      # (Lh, W, Cin) bf16
    h = jnp.dot(xs.reshape(Lh * W, xs.shape[-1]), pw_w[...],
                preferred_element_type=jnp.float32)
    h = jnp.maximum(h + pw_b[...], 0.0)
    # rows outside the image are conv zero-padding -> force them to zero
    fidx = jax.lax.broadcasted_iota(jnp.int32, (Lh * W, 1), 0)
    h = jnp.where((fidx >= (P - g0) * W) & (fidx < (P + H - g0) * W), h, 0.0)
    hpad_ref[:, P:P + W, :] = h.reshape(Lh, W, Cmid).astype(hpad_ref.dtype)

    # --- dual depthwise dilated branches (bf16 taps, f32 accumulation) ------
    def dw_branch(w_ref, b_ref, taps):
        w = w_ref[...]                                      # (K*K, 1, Cmid) f32
        acc = [None, None]                                  # 2 partial chains
        for i, (hs, ws) in enumerate(taps):
            term = hpad_ref[hs:hs + THo, ws:ws + W, :] * w[i]
            k = i & 1
            acc[k] = term if acc[k] is None else acc[k] + term
        s = acc[0] if acc[1] is None else acc[0] + acc[1]
        return jnp.maximum(s + b_ref[...], 0.0).astype(jnp.bfloat16)

    h1 = dw_branch(dw1_w, dw1_b, taps1).reshape(THo * W, Cmid)
    h2 = dw_branch(dw2_w, dw2_b, taps2).reshape(THo * W, Cmid)

    # --- split-K pw_linear (+ bias, + residual) ------------------------------
    y = jnp.dot(h1, w1[...], preferred_element_type=jnp.float32)
    y = y + jnp.dot(h2, w2[...], preferred_element_type=jnp.float32)
    y = y + bo[...]
    if use_res:
        res = x_ref[0, pl.ds(P + g0, THo), :, :]            # Cin == Cout here
        y = y + res.reshape(THo * W, res.shape[-1]).astype(jnp.float32)
    o_ref[0] = y.reshape(THo, W, -1).astype(o_ref.dtype)


def _fused_s2_kernel(x00, x01, x10, x11, pw_w, pw_b, dw1_w, dw1_b,
                     dw2_w, dw2_b, w1, w2, bo, o_ref, hq_ref, *,
                     Ho, Wo, taps1, taps2, rects):
    """One inverted-residual block (stride 2) for one image.

    x00..x11: (1, Hq, Wq, Cin) bf16 parity splits of the max-padded input.
    hq_ref  : (4, Hq, Wq, Cmid) bf16 parity-split hidden scratch.
    """
    Cmid = hq_ref.shape[-1]
    parts = (x00, x01, x10, x11)

    # conv zero-padding comes from the zero-initialised scratch
    hq_ref[...] = jnp.zeros_like(hq_ref)

    # --- pw on the valid (non-padded) rectangle of each parity part ---------
    for pi in range(4):
        i0, i1, j0, j1 = rects[pi]
        ri, rj = i1 - i0, j1 - j0
        xs = parts[pi][0, i0:i1, j0:j1, :]                  # (ri, rj, Cin) bf16
        h = jnp.dot(xs.reshape(ri * rj, xs.shape[-1]), pw_w[...],
                    preferred_element_type=jnp.float32)
        h = jnp.maximum(h + pw_b[...], 0.0)
        hq_ref[pi, i0:i1, j0:j1, :] = (
            h.reshape(ri, rj, Cmid).astype(hq_ref.dtype))

    # --- dual depthwise branches at output resolution ------------------------
    def dw_branch(w_ref, b_ref, taps):
        w = w_ref[...]
        acc = [None, None]
        for i, (pi, hs, ws) in enumerate(taps):
            term = hq_ref[pi, hs:hs + Ho, ws:ws + Wo, :] * w[i]
            k = i & 1
            acc[k] = term if acc[k] is None else acc[k] + term
        s = acc[0] if acc[1] is None else acc[0] + acc[1]
        return jnp.maximum(s + b_ref[...], 0.0).astype(jnp.bfloat16)

    h1 = dw_branch(dw1_w, dw1_b, taps1).reshape(Ho * Wo, Cmid)
    h2 = dw_branch(dw2_w, dw2_b, taps2).reshape(Ho * Wo, Cmid)

    # --- split-K pw_linear + bias --------------------------------------------
    y = jnp.dot(h1, w1[...], preferred_element_type=jnp.float32)
    y = y + jnp.dot(h2, w2[...], preferred_element_type=jnp.float32)
    y = y + bo[...]
    o_ref[0] = y.reshape(Ho, Wo, -1).astype(o_ref.dtype)


# --------------------------- block wrapper -----------------------------------

def _pick_h_tile(Ho, W, Cmid, P, budget=18 * 1024 * 1024):
    """Largest divisor of Ho whose fused working set fits the VMEM budget."""
    for th in range(Ho, 0, -1):
        if Ho % th:
            continue
        est = ((th + 2 * P) * (W + 2 * P) * Cmid * 2   # padded hidden scratch
               + 3 * th * W * Cmid * 4                 # live f32 accumulators
               + 2 * th * W * Cmid * 2)                # bf16 branch outputs
        if est <= budget:
            return th
    return 1


@functools.partial(
    jax.jit, static_argnames=("stride", "ks", "dils", "pads", "use_res"))
def fused_block(x, p, *, stride, ks, dils, pads, use_res):
    """pw(1x1+BN+ReLU) -> dual depthwise(+BN+ReLU) -> pw_linear(+BN)[+res]."""
    N, H, W, Cin = x.shape
    Cmid = p["pw_w"].shape[1]
    Cout = p["pwl_w1"].shape[1]
    P = max(pads)
    for j in range(2):                         # "same"-geometry assumption
        assert (ks[j] - 1) * dils[j] == 2 * pads[j]
    Ho = (H - 1) // stride + 1
    Wo = (W - 1) // stride + 1

    w_args = (p["pw_w"], p["pw_b"], p["dw1_w"], p["dw1_b"],
              p["dw2_w"], p["dw2_b"], p["pwl_w1"], p["pwl_w2"], p["pwl_b"])

    if stride == 1:
        THo = _pick_h_tile(Ho, W, Cmid, P)
        T = Ho // THo
        Lh = THo + 2 * P
        xpad = jnp.pad(x, ((0, 0), (P, P), (0, 0), (0, 0)))
        taps = tuple(
            tuple((P - pads[j] + kh * dils[j], P - pads[j] + kw * dils[j])
                  for kh in range(ks[j]) for kw in range(ks[j]))
            for j in range(2))
        for j in range(2):
            assert P + pads[j] + THo <= Lh and P + pads[j] + W <= W + 2 * P
        kernel = functools.partial(
            _fused_s1_kernel, H=H, W=W, P=P, THo=THo,
            taps1=taps[0], taps2=taps[1], use_res=use_res)
        in_specs = ([pl.BlockSpec((1, H + 2 * P, W, Cin),
                                  lambda n, t: (n, 0, 0, 0))]
                    + [_const_spec(a, 2) for a in w_args])
        return pl.pallas_call(
            kernel,
            out_shape=jax.ShapeDtypeStruct((N, Ho, Wo, Cout), jnp.bfloat16),
            grid=(N, T),
            in_specs=in_specs,
            out_specs=pl.BlockSpec((1, THo, Wo, Cout),
                                   lambda n, t: (n, t, 0, 0)),
            scratch_shapes=[pltpu.VMEM((Lh, W + 2 * P, Cmid), jnp.bfloat16)],
            compiler_params=_cp("parallel", "parallel"),
        )(xpad, *w_args)

    # ---- stride == 2: full-image kernel over a parity-split padded input ----
    Hp, Wp = H + 2 * P, W + 2 * P
    Hp2, Wp2 = Hp + Hp % 2, Wp + Wp % 2
    Hq, Wq = Hp2 // 2, Wp2 // 2
    xp = jnp.pad(x, ((0, 0), (P, P + Hp2 - Hp), (P, P + Wp2 - Wp), (0, 0)))
    parts = tuple(xp[:, ph::2, pw::2, :] for ph in range(2) for pw in range(2))

    def s2taps(j):
        tl = []
        for kh in range(ks[j]):
            for kw in range(ks[j]):
                hs = P - pads[j] + kh * dils[j]
                ws = P - pads[j] + kw * dils[j]
                tl.append(((hs % 2) * 2 + (ws % 2), hs // 2, ws // 2))
        return tuple(tl)

    for j in range(2):
        mo = P + pads[j]                        # max tap offset (padded coords)
        assert mo // 2 + Ho <= Hq and mo // 2 + Wo <= Wq

    rects = tuple(((P - ph + 1) // 2, (P + H - ph + 1) // 2,
                   (P - pw + 1) // 2, (P + W - pw + 1) // 2)
                  for ph in range(2) for pw in range(2))

    kernel = functools.partial(_fused_s2_kernel, Ho=Ho, Wo=Wo,
                               taps1=s2taps(0), taps2=s2taps(1), rects=rects)
    part_spec = pl.BlockSpec((1, Hq, Wq, Cin), lambda n: (n, 0, 0, 0))
    in_specs = [part_spec] * 4 + [_const_spec(a, 1) for a in w_args]
    return pl.pallas_call(
        kernel,
        out_shape=jax.ShapeDtypeStruct((N, Ho, Wo, Cout), jnp.bfloat16),
        grid=(N,),
        in_specs=in_specs,
        out_specs=pl.BlockSpec((1, Ho, Wo, Cout), lambda n: (n, 0, 0, 0)),
        scratch_shapes=[pltpu.VMEM((4, Hq, Wq, Cmid), jnp.bfloat16)],
        compiler_params=_cp("parallel"),
    )(*parts, *w_args)


# --------------------------- bilinear resize ----------------------------------

def _rows_matmul_kernel(a_ref, x_ref, o_ref):
    # Row-interpolation matmul: o[0] = A_tile @ x[0]  (bf16 in, f32 accum).
    y = jnp.dot(a_ref[...], x_ref[0], preferred_element_type=jnp.float32)
    o_ref[0] = y.astype(o_ref.dtype)


def _row_tile(R, cap=128):
    for t in range(min(cap, R), 7, -1):
        if t % 8 == 0 and R % t == 0:
            return t
    return R


def _interp_rows(x3, a):
    # x3: (N, S, L) bf16 ; a: (R, S) bf16  ->  (N, R, L) bf16.
    N, S, L = x3.shape
    R = a.shape[0]
    TR = _row_tile(R)
    return pl.pallas_call(
        _rows_matmul_kernel,
        out_shape=jax.ShapeDtypeStruct((N, R, L), jnp.bfloat16),
        grid=(N, R // TR),
        in_specs=[pl.BlockSpec((TR, S), lambda n, r: (r, 0)),
                  pl.BlockSpec((1, S, L), lambda n, r: (n, 0, 0))],
        out_specs=pl.BlockSpec((1, TR, L), lambda n, r: (n, r, 0)),
        compiler_params=_cp("parallel", "parallel"),
    )(a, x3)


def _interp_matrix(out_size, in_size):
    # F.interpolate(mode='bilinear', align_corners=True) along one axis.
    m = np.zeros((out_size, in_size), np.float32)
    for i in range(out_size):
        src = i * (in_size - 1) / (out_size - 1) if out_size > 1 else 0.0
        lo = min(int(math.floor(src)), in_size - 1)
        hi = min(lo + 1, in_size - 1)
        f = src - lo
        m[i, lo] += 1.0 - f
        m[i, hi] += f
    return jnp.asarray(m, dtype=jnp.bfloat16)


def bilinear_resize_align_corners(x, Ho, Wo):
    # (N,H,W,C) -> (N,Ho,Wo,C); separable interpolation as lane-dense matmuls.
    # TODO(synk): fold the W-axis pass (and its transposes) into one kernel.
    N, H, W, C = x.shape
    x = x.astype(jnp.bfloat16)
    ah = _interp_matrix(Ho, H)
    aw = _interp_matrix(Wo, W)
    y = _interp_rows(x.reshape(N, H, W * C), ah).reshape(N, Ho, W, C)
    y = jnp.transpose(y, (0, 2, 1, 3))                       # (N, W, Ho, C)
    z = _interp_rows(y.reshape(N, W, Ho * C), aw).reshape(N, Wo, Ho, C)
    return jnp.transpose(z, (0, 2, 1, 3))                    # (N, Ho, Wo, C)


# --------------------------- parameters & model -------------------------------

def _init_bn_fold(key, c):
    k1, k2, k3, k4 = jax.random.split(key, 4)
    gamma = 1.0 + 0.1 * jax.random.normal(k1, (c,), jnp.float32)
    beta = 0.1 * jax.random.normal(k2, (c,), jnp.float32)
    mean = 0.1 * jax.random.normal(k3, (c,), jnp.float32)
    var = 1.0 + 0.1 * jnp.abs(jax.random.normal(k4, (c,), jnp.float32))
    scale = gamma / jnp.sqrt(var + 1e-5)           # eval-mode BN folded
    bias = beta - mean * scale
    return scale, bias


def _init_block(key, inp, oup, expand, ks):
    hidden = int(round(inp * expand))
    mid = hidden // 2
    keys = jax.random.split(key, 8)
    p = {}
    # pw (BN scale folded into weight columns; bf16 for the MXU)
    pw_w = jax.random.normal(keys[0], (inp, mid), jnp.float32) / math.sqrt(inp)
    pw_s, pw_b = _init_bn_fold(keys[1], mid)
    p["pw_w"] = (pw_w * pw_s[None, :]).astype(jnp.bfloat16)
    p["pw_b"] = pw_b.reshape(1, mid)
    # dw branches (per-channel BN scale folded; f32 for the VPU path)
    for j in range(2):
        k = ks[j]
        w = jax.random.normal(keys[2 + 2 * j], (k, k, mid), jnp.float32) / float(k)
        s, b = _init_bn_fold(keys[3 + 2 * j], mid)
        p[f"dw{j + 1}_w"] = (w * s[None, None, :]).reshape(k * k, 1, mid)
        p[f"dw{j + 1}_b"] = b.reshape(1, mid)
    # pw_linear, pre-split for split-K (rows 0..mid-1 -> branch 1, rest -> 2)
    pwl_w = jax.random.normal(keys[6], (hidden, oup), jnp.float32) / math.sqrt(hidden)
    pwl_s, pwl_b = _init_bn_fold(keys[7], oup)
    pwl_wf = pwl_w * pwl_s[None, :]
    p["pwl_w1"] = pwl_wf[:mid].astype(jnp.bfloat16)
    p["pwl_w2"] = pwl_wf[mid:].astype(jnp.bfloat16)
    p["pwl_b"] = pwl_b.reshape(1, oup)
    return p


# InvertedResidual_parallel(dilation=4): two 3x3 dw branches, dil/pad (1,4)
_PARALLEL = dict(ks=(3, 3), dils=(1, 4), pads=(1, 4))
# InvertedResidual_PKernel(dilation=3): 5x5(dil 1, pad 2) and 3x3(dil 3, pad 3)
_PKERNEL = dict(ks=(5, 3), dils=(1, 3), pads=(2, 3))


def build_rt_context(key):
    specs = []
    # conv16s_top (6 blocks) + conv16s_down (4 blocks)
    specs.append(("parallel", 64, 64, 2))
    specs += [("parallel", 64, 64, 1)] * 5
    specs += [("parallel", 64, 64, 1)] * 4
    split16 = len(specs)
    # conv32s_top (3 blocks) + conv32s_down (3 blocks)
    specs.append(("pkernel", 128, 96, 2))
    specs.append(("pkernel", 96, 96, 1))
    specs.append(("pkernel", 96, 128, 1))
    specs += [("pkernel", 128, 128, 1)] * 3

    keys = jax.random.split(key, len(specs))
    blocks = []
    for k_i, (kind, inp, oup, stride) in zip(keys, specs):
        base = _PARALLEL if kind == "parallel" else _PKERNEL
        cfg = dict(base)
        cfg["stride"] = stride
        cfg["use_res"] = (stride == 1 and inp == oup)
        p = _init_block(k_i, inp, oup, 6, base["ks"])
        blocks.append((cfg, p))
    return blocks[:split16], blocks[split16:]


def rt_context_forward(fea_nchw, blocks16, blocks32):
    # NCHW in/out (PyTorch convention); internal compute NHWC, bf16 activations.
    x = jnp.transpose(fea_nchw, (0, 2, 3, 1)).astype(jnp.bfloat16)
    h = x
    for cfg, p in blocks16:
        h = fused_block(h, p, **cfg)
    fea_16s = h                                                    # (N, H/2, W/2, 64)
    fea_sp = bilinear_resize_align_corners(x, fea_16s.shape[1], fea_16s.shape[2])
    h = jnp.concatenate([fea_16s, fea_sp], axis=-1)                # 128 channels
    for cfg, p in blocks32:
        h = fused_block(h, p, **cfg)
    fea_32s = h                                                    # (N, H/4, W/4, 128)
    return (jnp.transpose(fea_16s, (0, 3, 1, 2)).astype(jnp.float32),
            jnp.transpose(fea_32s, (0, 3, 1, 2)).astype(jnp.float32))


# ------------------------------- main -----------------------------------------

if __name__ == "__main__":
    key = jax.random.PRNGKey(0)
    k_x, k_p = jax.random.split(key)

    # Module requires 64 input channels; small spatial size for the smoke test.
    fea = jax.random.normal(k_x, (2, 64, 16, 16), dtype=jnp.float32)   # NCHW

    blocks16, blocks32 = build_rt_context(k_p)
    fea_16s, fea_32s = rt_context_forward(fea, blocks16, blocks32)
    jax.block_until_ready((fea_16s, fea_32s))

    assert fea_16s.shape == (2, 64, 8, 8), fea_16s.shape
    assert fea_32s.shape == (2, 128, 4, 4), fea_32s.shape
    assert bool(jnp.isfinite(fea_16s).all()) and bool(jnp.isfinite(fea_32s).all())
    print("KERNEL_OK")
</pallas_src>

<mosaic_0001>
module attributes {stable_mosaic.version = 11 : i64} {
  func.func @_fused_s2_kernel(%arg0: i32, %arg1: memref<1x12x12x64xbf16, #tpu.memory_space<vmem>>, %arg2: memref<1x12x12x64xbf16, #tpu.memory_space<vmem>>, %arg3: memref<1x12x12x64xbf16, #tpu.memory_space<vmem>>, %arg4: memref<1x12x12x64xbf16, #tpu.memory_space<vmem>>, %arg5: memref<64x192xbf16, #tpu.memory_space<vmem>>, %arg6: memref<1x192xf32, #tpu.memory_space<vmem>>, %arg7: memref<9x1x192xf32, #tpu.memory_space<vmem>>, %arg8: memref<1x192xf32, #tpu.memory_space<vmem>>, %arg9: memref<9x1x192xf32, #tpu.memory_space<vmem>>, %arg10: memref<1x192xf32, #tpu.memory_space<vmem>>, %arg11: memref<192x64xbf16, #tpu.memory_space<vmem>>, %arg12: memref<192x64xbf16, #tpu.memory_space<vmem>>, %arg13: memref<1x64xf32, #tpu.memory_space<vmem>>, %arg14: memref<1x8x8x64xbf16, #tpu.memory_space<vmem>>, %arg15: memref<4x12x12x192xbf16, #tpu.memory_space<vmem>>) attributes {dimension_semantics = [#tpu.dimension_semantics<parallel>], iteration_bounds = array<i64: 2>, scalar_prefetch = 0 : i64, scratch_operands = 1 : i64, tpu.core_type = #tpu.core_type<tc>, window_params = [{transform_indices = @transform_0, window_bounds = array<i64: 1, 12, 12, 64>}, {transform_indices = @transform_1, window_bounds = array<i64: 1, 12, 12, 64>}, {transform_indices = @transform_2, window_bounds = array<i64: 1, 12, 12, 64>}, {transform_indices = @transform_3, window_bounds = array<i64: 1, 12, 12, 64>}, {pipeline_mode = #tpu.pipeline_mode<synchronous>, transform_indices = @transform_4, window_bounds = array<i64: 64, 192>}, {pipeline_mode = #tpu.pipeline_mode<synchronous>, transform_indices = @transform_5, window_bounds = array<i64: 1, 192>}, {pipeline_mode = #tpu.pipeline_mode<synchronous>, transform_indices = @transform_6, window_bounds = array<i64: 9, 1, 192>}, {pipeline_mode = #tpu.pipeline_mode<synchronous>, transform_indices = @transform_7, window_bounds = array<i64: 1, 192>}, {pipeline_mode = #tpu.pipeline_mode<synchronous>, transform_indices = @transform_8, window_bounds = array<i64: 9, 1, 192>}, {pipeline_mode = #tpu.pipeline_mode<synchronous>, transform_indices = @transform_9, window_bounds = array<i64: 1, 192>}, {pipeline_mode = #tpu.pipeline_mode<synchronous>, transform_indices = @transform_10, window_bounds = array<i64: 192, 64>}, {pipeline_mode = #tpu.pipeline_mode<synchronous>, transform_indices = @transform_11, window_bounds = array<i64: 192, 64>}, {pipeline_mode = #tpu.pipeline_mode<synchronous>, transform_indices = @transform_12, window_bounds = array<i64: 1, 64>}, {transform_indices = @transform_13, window_bounds = array<i64: 1, 8, 8, 64>}]} {
    %cst = arith.constant 0.000000e+00 : bf16
    %0 = vector.broadcast %cst : bf16 to vector<4x12x12x192xbf16>
    %c0 = arith.constant 0 : index
    %c0_0 = arith.constant 0 : index
    %c0_1 = arith.constant 0 : index
    %c0_2 = arith.constant 0 : index
    %1 = vector.load %arg15[%c0, %c0_0, %c0_1, %c0_2] : memref<4x12x12x192xbf16, #tpu.memory_space<vmem>>, vector<4x12x12x192xbf16>
    tpu.vector_store %arg15[%c0, %c0_0, %c0_1, %c0_2], %0 {strides = array<i32>} : memref<4x12x12x192xbf16, #tpu.memory_space<vmem>>, vector<4x12x12x192xbf16>,
    %c0_3 = arith.constant 0 : index
    %c2 = arith.constant 2 : index
    %c2_4 = arith.constant 2 : index
    %c0_5 = arith.constant 0 : index
    %2 = vector.load %arg1[%c0_3, %c2, %c2_4, %c0_5] : memref<1x12x12x64xbf16, #tpu.memory_space<vmem>>, vector<1x8x8x64xbf16>
    %3 = vector.shape_cast %2 : vector<1x8x8x64xbf16> to vector<8x8x64xbf16>
    %4 = vector.shape_cast %3 : vector<8x8x64xbf16> to vector<64x64xbf16>
    %c0_6 = arith.constant 0 : index
    %c0_7 = arith.constant 0 : index
    %5 = vector.load %arg5[%c0_6, %c0_7] : memref<64x192xbf16, #tpu.memory_space<vmem>>, vector<64x192xbf16>
    %cst_8 = arith.constant dense<0.000000e+00> : vector<64x192xf32>
    %6 = tpu.matmul %4, %5, %cst_8 {dimension_numbers = #tpu.dot_dimension_numbers<[1], [0], [0], [1], [0, 0, 1, 1], [], []>} : vector<64x64xbf16>, vector<64x192xbf16>, vector<64x192xf32> -> vector<64x192xf32>
    %c0_9 = arith.constant 0 : index
    %c0_10 = arith.constant 0 : index
    %7 = vector.load %arg6[%c0_9, %c0_10] : memref<1x192xf32, #tpu.memory_space<vmem>>, vector<1x192xf32>
    %8 = vector.broadcast %7 : vector<1x192xf32> to vector<64x192xf32>
    %9 = arith.addf %6, %8 : vector<64x192xf32>
    %cst_11 = arith.constant 0.000000e+00 : f32
    %10 = vector.broadcast %cst_11 : f32 to vector<64x192xf32>
    %11 = arith.maximumf %9, %10 : vector<64x192xf32>
    %12 = vector.shape_cast %11 : vector<64x192xf32> to vector<8x8x192xf32>
    %13 = arith.truncf %12 : vector<8x8x192xf32> to vector<8x8x192xbf16>
    %c0_12 = arith.constant 0 : index
    %c2_13 = arith.constant 2 : index
    %c2_14 = arith.constant 2 : index
    %c0_15 = arith.constant 0 : index
    %14 = vector.load %arg15[%c0_12, %c2_13, %c2_14, %c0_15] : memref<4x12x12x192xbf16, #tpu.memory_space<vmem>>, vector<1x8x8x192xbf16>
    %15 = vector.shape_cast %14 : vector<1x8x8x192xbf16> to vector<8x8x192xbf16>
    %16 = vector.shape_cast %13 : vector<8x8x192xbf16> to vector<1x8x8x192xbf16>
    tpu.vector_store %arg15[%c0_12, %c2_13, %c2_14, %c0_15], %16 {strides = array<i32>} : memref<4x12x12x192xbf16, #tpu.memory_space<vmem>>, vector<1x8x8x192xbf16>,
    %c0_16 = arith.constant 0 : index
    %c2_17 = arith.constant 2 : index
    %c2_18 = arith.constant 2 : index
    %c0_19 = arith.constant 0 : index
    %17 = vector.load %arg2[%c0_16, %c2_17, %c2_18, %c0_19] : memref<1x12x12x64xbf16, #tpu.memory_space<vmem>>, vector<1x8x8x64xbf16>
    %18 = vector.shape_cast %17 : vector<1x8x8x64xbf16> to vector<8x8x64xbf16>
    %19 = vector.shape_cast %18 : vector<8x8x64xbf16> to vector<64x64xbf16>
    %c0_20 = arith.constant 0 : index
    %c0_21 = arith.constant 0 : index
    %20 = vector.load %arg5[%c0_20, %c0_21] : memref<64x192xbf16, #tpu.memory_space<vmem>>, vector<64x192xbf16>
    %cst_22 = arith.constant dense<0.000000e+00> : vector<64x192xf32>
    %21 = tpu.matmul %19, %20, %cst_22 {dimension_numbers = #tpu.dot_dimension_numbers<[1], [0], [0], [1], [0, 0, 1, 1], [], []>} : vector<64x64xbf16>, vector<64x192xbf16>, vector<64x192xf32> -> vector<64x192xf32>
    %c0_23 = arith.constant 0 : index
    %c0_24 = arith.constant 0 : index
    %22 = vector.load %arg6[%c0_23, %c0_24] : memref<1x192xf32, #tpu.memory_space<vmem>>, vector<1x192xf32>
    %23 = vector.broadcast %22 : vector<1x192xf32> to vector<64x192xf32>
    %24 = arith.addf %21, %23 : vector<64x192xf32>
    %cst_25 = arith.constant 0.000000e+00 : f32
    %25 = vector.broadcast %cst_25 : f32 to vector<64x192xf32>
    %26 = arith.maximumf %24, %25 : vector<64x192xf32>
    %27 = vector.shape_cast %26 : vector<64x192xf32> to vector<8x8x192xf32>
    %28 = arith.truncf %27 : vector<8x8x192xf32> to vector<8x8x192xbf16>
    %c1 = arith.constant 1 : index
    %c2_26 = arith.constant 2 : index
    %c2_27 = arith.constant 2 : index
    %c0_28 = arith.constant 0 : index
    %29 = vector.load %arg15[%c1, %c2_26, %c2_27, %c0_28] : memref<4x12x12x192xbf16, #tpu.memory_space<vmem>>, vector<1x8x8x192xbf16>
    %30 = vector.shape_cast %29 : vector<1x8x8x192xbf16> to vector<8x8x192xbf16>
    %31 = vector.shape_cast %28 : vector<8x8x192xbf16> to vector<1x8x8x192xbf16>
    tpu.vector_store %arg15[%c1, %c2_26, %c2_27, %c0_28], %31 {strides = array<i32>} : memref<4x12x12x192xbf16, #tpu.memory_space<vmem>>, vector<1x8x8x192xbf16>,
    %c0_29 = arith.constant 0 : index
    %c2_30 = arith.constant 2 : index
    %c2_31 = arith.constant 2 : index
    %c0_32 = arith.constant 0 : index
    %32 = vector.load %arg3[%c0_29, %c2_30, %c2_31, %c0_32] : memref<1x12x12x64xbf16, #tpu.memory_space<vmem>>, vector<1x8x8x64xbf16>
    %33 = vector.shape_cast %32 : vector<1x8x8x64xbf16> to vector<8x8x64xbf16>
    %34 = vector.shape_cast %33 : vector<8x8x64xbf16> to vector<64x64xbf16>
    %c0_33 = arith.constant 0 : index
    %c0_34 = arith.constant 0 : index
    %35 = vector.load %arg5[%c0_33, %c0_34] : memref<64x192xbf16, #tpu.memory_space<vmem>>, vector<64x192xbf16>
    %cst_35 = arith.constant dense<0.000000e+00> : vector<64x192xf32>
    %36 = tpu.matmul %34, %35, %cst_35 {dimension_numbers = #tpu.dot_dimension_numbers<[1], [0], [0], [1], [0, 0, 1, 1], [], []>} : vector<64x64xbf16>, vector<64x192xbf16>, vector<64x192xf32> -> vector<64x192xf32>
    %c0_36 = arith.constant 0 : index
    %c0_37 = arith.constant 0 : index
    %37 = vector.load %arg6[%c0_36, %c0_37] : memref<1x192xf32, #tpu.memory_space<vmem>>, vector<1x192xf32>
    %38 = vector.broadcast %37 : vector<1x192xf32> to vector<64x192xf32>
    %39 = arith.addf %36, %38 : vector<64x192xf32>
    %cst_38 = arith.constant 0.000000e+00 : f32
    %40 = vector.broadcast %cst_38 : f32 to vector<64x192xf32>
    %41 = arith.maximumf %39, %40 : vector<64x192xf32>
    %42 = vector.shape_cast %41 : vector<64x192xf32> to vector<8x8x192xf32>
    %43 = arith.truncf %42 : vector<8x8x192xf32> to vector<8x8x192xbf16>
    %c2_39 = arith.constant 2 : index
    %c2_40 = arith.constant 2 : index
    %c2_41 = arith.constant 2 : index
    %c0_42 = arith.constant 0 : index
    %44 = vector.load %arg15[%c2_39, %c2_40, %c2_41, %c0_42] : memref<4x12x12x192xbf16, #tpu.memory_space<vmem>>, vector<1x8x8x192xbf16>
    %45 = vector.shape_cast %44 : vector<1x8x8x192xbf16> to vector<8x8x192xbf16>
    %46 = vector.shape_cast %43 : vector<8x8x192xbf16> to vector<1x8x8x192xbf16>
    tpu.vector_store %arg15[%c2_39, %c2_40, %c2_41, %c0_42], %46 {strides = array<i32>} : memref<4x12x12x192xbf16, #tpu.memory_space<vmem>>, vector<1x8x8x192xbf16>,
    %c0_43 = arith.constant 0 : index
    %c2_44 = arith.constant 2 : index
    %c2_45 = arith.constant 2 : index
    %c0_46 = arith.constant 0 : index
    %47 = vector.load %arg4[%c0_43, %c2_44, %c2_45, %c0_46] : memref<1x12x12x64xbf16, #tpu.memory_space<vmem>>, vector<1x8x8x64xbf16>
    %48 = vector.shape_cast %47 : vector<1x8x8x64xbf16> to vector<8x8x64xbf16>
    %49 = vector.shape_cast %48 : vector<8x8x64xbf16> to vector<64x64xbf16>
    %c0_47 = arith.constant 0 : index
    %c0_48 = arith.constant 0 : index
    %50 = vector.load %arg5[%c0_47, %c0_48] : memref<64x192xbf16, #tpu.memory_space<vmem>>, vector<64x192xbf16>
    %cst_49 = arith.constant dense<0.000000e+00> : vector<64x192xf32>
    %51 = tpu.matmul %49, %50, %cst_49 {dimension_numbers = #tpu.dot_dimension_numbers<[1], [0], [0], [1], [0, 0, 1, 1], [], []>} : vector<64x64xbf16>, vector<64x192xbf16>, vector<64x192xf32> -> vector<64x192xf32>
    %c0_50 = arith.constant 0 : index
    %c0_51 = arith.constant 0 : index
    %52 = vector.load %arg6[%c0_50, %c0_51] : memref<1x192xf32, #tpu.memory_space<vmem>>, vector<1x192xf32>
    %53 = vector.broadcast %52 : vector<1x192xf32> to vector<64x192xf32>
    %54 = arith.addf %51, %53 : vector<64x192xf32>
    %cst_52 = arith.constant 0.000000e+00 : f32
    %55 = vector.broadcast %cst_52 : f32 to vector<64x192xf32>
    %56 = arith.maximumf %54, %55 : vector<64x192xf32>
    %57 = vector.shape_cast %56 : vector<64x192xf32> to vector<8x8x192xf32>
    %58 = arith.truncf %57 : vector<8x8x192xf32> to vector<8x8x192xbf16>
    %c3 = arith.constant 3 : index
    %c2_53 = arith.constant 2 : index
    %c2_54 = arith.constant 2 : index
    %c0_55 = arith.constant 0 : index
    %59 = vector.load %arg15[%c3, %c2_53, %c2_54, %c0_55] : memref<4x12x12x192xbf16, #tpu.memory_space<vmem>>, vector<1x8x8x192xbf16>
    %60 = vector.shape_cast %59 : vector<1x8x8x192xbf16> to vector<8x8x192xbf16>
    %61 = vector.shape_cast %58 : vector<8x8x192xbf16> to vector<1x8x8x192xbf16>
    tpu.vector_store %arg15[%c3, %c2_53, %c2_54, %c0_55], %61 {strides = array<i32>} : memref<4x12x12x192xbf16, #tpu.memory_space<vmem>>, vector<1x8x8x192xbf16>,
    %c0_56 = arith.constant 0 : index
    %c0_57 = arith.constant 0 : index
    %c0_58 = arith.constant 0 : index
    %62 = vector.load %arg7[%c0_56, %c0_57, %c0_58] : memref<9x1x192xf32, #tpu.memory_space<vmem>>, vector<9x1x192xf32>
    %c3_59 = arith.constant 3 : index
    %c1_60 = arith.constant 1 : index
    %c1_61 = arith.constant 1 : index
    %c0_62 = arith.constant 0 : index
    %63 = vector.load %arg15[%c3_59, %c1_60, %c1_61, %c0_62] : memref<4x12x12x192xbf16, #tpu.memory_space<vmem>>, vector<1x8x8x192xbf16>
    %64 = vector.shape_cast %63 : vector<1x8x8x192xbf16> to vector<8x8x192xbf16>
    %65 = vector.extract_strided_slice %62 {offsets = [0, 0, 0], sizes = [1, 1, 192], strides = [1, 1, 1]} : vector<9x1x192xf32> to vector<1x1x192xf32>
    %66 = vector.shape_cast %65 : vector<1x1x192xf32> to vector<1x192xf32>
    %67 = arith.extf %64 : vector<8x8x192xbf16> to vector<8x8x192xf32>
    %68 = vector.shape_cast %66 : vector<1x192xf32> to vector<1x1x192xf32>
    %69 = vector.broadcast %68 : vector<1x1x192xf32> to vector<8x8x192xf32>
    %70 = arith.mulf %67, %69 : vector<8x8x192xf32>
    %c2_63 = arith.constant 2 : index
    %c1_64 = arith.constant 1 : index
    %c2_65 = arith.constant 2 : index
    %c0_66 = arith.constant 0 : index
    %71 = vector.load %arg15[%c2_63, %c1_64, %c2_65, %c0_66] : memref<4x12x12x192xbf16, #tpu.memory_space<vmem>>, vector<1x8x8x192xbf16>
    %72 = vector.shape_cast %71 : vector<1x8x8x192xbf16> to vector<8x8x192xbf16>
    %73 = vector.extract_strided_slice %62 {offsets = [1, 0, 0], sizes = [1, 1, 192], strides = [1, 1, 1]} : vector<9x1x192xf32> to vector<1x1x192xf32>
    %74 = vector.shape_cast %73 : vector<1x1x192xf32> to vector<1x192xf32>
    %75 = arith.extf %72 : vector<8x8x192xbf16> to vector<8x8x192xf32>
    %76 = vector.shape_cast %74 : vector<1x192xf32> to vector<1x1x192xf32>
    %77 = vector.broadcast %76 : vector<1x1x192xf32> to vector<8x8x192xf32>
    %78 = arith.mulf %75, %77 : vector<8x8x192xf32>
    %c3_67 = arith.constant 3 : index
    %c1_68 = arith.constant 1 : index
    %c2_69 = arith.constant 2 : index
    %c0_70 = arith.constant 0 : index
    %79 = vector.load %arg15[%c3_67, %c1_68, %c2_69, %c0_70] : memref<4x12x12x192xbf16, #tpu.memory_space<vmem>>, vector<1x8x8x192xbf16>
    %80 = vector.shape_cast %79 : vector<1x8x8x192xbf16> to vector<8x8x192xbf16>
    %81 = vector.extract_strided_slice %62 {offsets = [2, 0, 0], sizes = [1, 1, 192], strides = [1, 1, 1]} : vector<9x1x192xf32> to vector<1x1x192xf32>
    %82 = vector.shape_cast %81 : vector<1x1x192xf32> to vector<1x192xf32>
    %83 = arith.extf %80 : vector<8x8x192xbf16> to vector<8x8x192xf32>
    %84 = vector.shape_cast %82 : vector<1x192xf32> to vector<1x1x192xf32>
    %85 = vector.broadcast %84 : vector<1x1x192xf32> to vector<8x8x192xf32>
    %86 = arith.mulf %83, %85 : vector<8x8x192xf32>
    %87 = arith.addf %70, %86 : vector<8x8x192xf32>
    %c1_71 = arith.constant 1 : index
    %c2_72 = arith.constant 2 : index
    %c1_73 = arith.constant 1 : index
    %c0_74 = arith.constant 0 : index
    %88 = vector.load %arg15[%c1_71, %c2_72, %c1_73, %c0_74] : memref<4x12x12x192xbf16, #tpu.memory_space<vmem>>, vector<1x8x8x192xbf16>
    %89 = vector.shape_cast %88 : vector<1x8x8x192xbf16> to vector<8x8x192xbf16>
    %90 = vector.extract_strided_slice %62 {offsets = [3, 0, 0], sizes = [1, 1, 192], strides = [1, 1, 1]} : vector<9x1x192xf32> to vector<1x1x192xf32>
    %91 = vector.shape_cast %90 : vector<1x1x192xf32> to vector<1x192xf32>
    %92 = arith.extf %89 : vector<8x8x192xbf16> to vector<8x8x192xf32>
    %93 = vector.shape_cast %91 : vector<1x192xf32> to vector<1x1x192xf32>
    %94 = vector.broadcast %93 : vector<1x1x192xf32> to vector<8x8x192xf32>
    %95 = arith.mulf %92, %94 : vector<8x8x192xf32>
    %96 = arith.addf %78, %95 : vector<8x8x192xf32>
    %c0_75 = arith.constant 0 : index
    %c2_76 = arith.constant 2 : index
    %c2_77 = arith.constant 2 : index
    %c0_78 = arith.constant 0 : index
    %97 = vector.load %arg15[%c0_75, %c2_76, %c2_77, %c0_78] : memref<4x12x12x192xbf16, #tpu.memory_space<vmem>>, vector<1x8x8x192xbf16>
    %98 = vector.shape_cast %97 : vector<1x8x8x192xbf16> to vector<8x8x192xbf16>
    %99 = vector.extract_strided_slice %62 {offsets = [4, 0, 0], sizes = [1, 1, 192], strides = [1, 1, 1]} : vector<9x1x192xf32> to vector<1x1x192xf32>
    %100 = vector.shape_cast %99 : vector<1x1x192xf32> to vector<1x192xf32>
    %101 = arith.extf %98 : vector<8x8x192xbf16> to vector<8x8x192xf32>
    %102 = vector.shape_cast %100 : vector<1x192xf32> to vector<1x1x192xf32>
    %103 = vector.broadcast %102 : vector<1x1x192xf32> to vector<8x8x192xf32>
    %104 = arith.mulf %101, %103 : vector<8x8x192xf32>
    %105 = arith.addf %87, %104 : vector<8x8x192xf32>
    %c1_79 = arith.constant 1 : index
    %c2_80 = arith.constant 2 : index
    %c2_81 = arith.constant 2 : index
    %c0_82 = arith.constant 0 : index
    %106 = vector.load %arg15[%c1_79, %c2_80, %c2_81, %c0_82] : memref<4x12x12x192xbf16, #tpu.memory_space<vmem>>, vector<1x8x8x192xbf16>
    %107 = vector.shape_cast %106 : vector<1x8x8x192xbf16> to vector<8x8x192xbf16>
    %108 = vector.extract_strided_slice %62 {offsets = [5, 0, 0], sizes = [1, 1, 192], strides = [1, 1, 1]} : vector<9x1x192xf32> to vector<1x1x192xf32>
    %109 = vector.shape_cast %108 : vector<1x1x192xf32> to vector<1x192xf32>
    %110 = arith.extf %107 : vector<8x8x192xbf16> to vector<8x8x192xf32>
    %111 = vector.shape_cast %109 : vector<1x192xf32> to vector<1x1x192xf32>
    %112 = vector.broadcast %111 : vector<1x1x192xf32> to vector<8x8x192xf32>
    %113 = arith.mulf %110, %112 : vector<8x8x192xf32>
    %114 = arith.addf %96, %113 : vector<8x8x192xf32>
    %c3_83 = arith.constant 3 : index
    %c2_84 = arith.constant 2 : index
    %c1_85 = arith.constant 1 : index
    %c0_86 = arith.constant 0 : index
    %115 = vector.load %arg15[%c3_83, %c2_84, %c1_85, %c0_86] : memref<4x12x12x192xbf16, #tpu.memory_space<vmem>>, vector<1x8x8x192xbf16>
    %116 = vector.shape_cast %115 : vector<1x8x8x192xbf16> to vector<8x8x192xbf16>
    %117 = vector.extract_strided_slice %62 {offsets = [6, 0, 0], sizes = [1, 1, 192], strides = [1, 1, 1]} : vector<9x1x192xf32> to vector<1x1x192xf32>
    %118 = vector.shape_cast %117 : vector<1x1x192xf32> to vector<1x192xf32>
    %119 = arith.extf %116 : vector<8x8x192xbf16> to vector<8x8x192xf32>
    %120 = vector.shape_cast %118 : vector<1x192xf32> to vector<1x1x192xf32>
    %121 = vector.broadcast %120 : vector<1x1x192xf32> to vector<8x8x192xf32>
    %122 = arith.mulf %119, %121 : vector<8x8x192xf32>
    %123 = arith.addf %105, %122 : vector<8x8x192xf32>
    %c2_87 = arith.constant 2 : index
    %c2_88 = arith.constant 2 : index
    %c2_89 = arith.constant 2 : index
    %c0_90 = arith.constant 0 : index
    %124 = vector.load %arg15[%c2_87, %c2_88, %c2_89, %c0_90] : memref<4x12x12x192xbf16, #tpu.memory_space<vmem>>, vector<1x8x8x192xbf16>
    %125 = vector.shape_cast %124 : vector<1x8x8x192xbf16> to vector<8x8x192xbf16>
    %126 = vector.extract_strided_slice %62 {offsets = [7, 0, 0], sizes = [1, 1, 192], strides = [1, 1, 1]} : vector<9x1x192xf32> to vector<1x1x192xf32>
    %127 = vector.shape_cast %126 : vector<1x1x192xf32> to vector<1x192xf32>
    %128 = arith.extf %125 : vector<8x8x192xbf16> to vector<8x8x192xf32>
    %129 = vector.shape_cast %127 : vector<1x192xf32> to vector<1x1x192xf32>
    %130 = vector.broadcast %129 : vector<1x1x192xf32> to vector<8x8x192xf32>
    %131 = arith.mulf %128, %130 : vector<8x8x192xf32>
    %132 = arith.addf %114, %131 : vector<8x8x192xf32>
    %c3_91 = arith.constant 3 : index
    %c2_92 = arith.constant 2 : index
    %c2_93 = arith.constant 2 : index
    %c0_94 = arith.constant 0 : index
    %133 = vector.load %arg15[%c3_91, %c2_92, %c2_93, %c0_94] : memref<4x12x12x192xbf16, #tpu.memory_space<vmem>>, vector<1x8x8x192xbf16>
    %134 = vector.shape_cast %133 : vector<1x8x8x192xbf16> to vector<8x8x192xbf16>
    %135 = vector.extract_strided_slice %62 {offsets = [8, 0, 0], sizes = [1, 1, 192], strides = [1, 1, 1]} : vector<9x1x192xf32> to vector<1x1x192xf32>
    %136 = vector.shape_cast %135 : vector<1x1x192xf32> to vector<1x192xf32>
    %137 = arith.extf %134 : vector<8x8x192xbf16> to vector<8x8x192xf32>
    %138 = vector.shape_cast %136 : vector<1x192xf32> to vector<1x1x192xf32>
    %139 = vector.broadcast %138 : vector<1x1x192xf32> to vector<8x8x192xf32>
    %140 = arith.mulf %137, %139 : vector<8x8x192xf32>
    %141 = arith.addf %123, %140 : vector<8x8x192xf32>
    %142 = arith.addf %141, %132 : vector<8x8x192xf32>
    %c0_95 = arith.constant 0 : index
    %c0_96 = arith.constant 0 : index
    %143 = vector.load %arg8[%c0_95, %c0_96] : memref<1x192xf32, #tpu.memory_space<vmem>>, vector<1x192xf32>
    %144 = vector.shape_cast %143 : vector<1x192xf32> to vector<1x1x192xf32>
    %145 = vector.broadcast %144 : vector<1x1x192xf32> to vector<8x8x192xf32>
    %146 = arith.addf %142, %145 : vector<8x8x192xf32>
    %cst_97 = arith.constant 0.000000e+00 : f32
    %147 = vector.broadcast %cst_97 : f32 to vector<8x8x192xf32>
    %148 = arith.maximumf %146, %147 : vector<8x8x192xf32>
    %149 = arith.truncf %148 : vector<8x8x192xf32> to vector<8x8x192xbf16>
    %150 = vector.shape_cast %149 : vector<8x8x192xbf16> to vector<64x192xbf16>
    %c0_98 = arith.constant 0 : index
    %c0_99 = arith.constant 0 : index
    %c0_100 = arith.constant 0 : index
    %151 = vector.load %arg9[%c0_98, %c0_99, %c0_100] : memref<9x1x192xf32, #tpu.memory_space<vmem>>, vector<9x1x192xf32>
    %c0_101 = arith.constant 0 : index
    %c0_102 = arith.constant 0 : index
    %c0_103 = arith.constant 0 : index
    %c0_104 = arith.constant 0 : index
    %152 = vector.load %arg15[%c0_101, %c0_102, %c0_103, %c0_104] : memref<4x12x12x192xbf16, #tpu.memory_space<vmem>>, vector<1x8x8x192xbf16>
    %153 = vector.shape_cast %152 : vector<1x8x8x192xbf16> to vector<8x8x192xbf16>
    %154 = vector.extract_strided_slice %151 {offsets = [0, 0, 0], sizes = [1, 1, 192], strides = [1, 1, 1]} : vector<9x1x192xf32> to vector<1x1x192xf32>
    %155 = vector.shape_cast %154 : vector<1x1x192xf32> to vector<1x192xf32>
    %156 = arith.extf %153 : vector<8x8x192xbf16> to vector<8x8x192xf32>
    %157 = vector.shape_cast %155 : vector<1x192xf32> to vector<1x1x192xf32>
    %158 = vector.broadcast %157 : vector<1x1x192xf32> to vector<8x8x192xf32>
    %159 = arith.mulf %156, %158 : vector<8x8x192xf32>
    %c0_105 = arith.constant 0 : index
    %c0_106 = arith.constant 0 : index
    %c2_107 = arith.constant 2 : index
    %c0_108 = arith.constant 0 : index
    %160 = vector.load %arg15[%c0_105, %c0_106, %c2_107, %c0_108] : memref<4x12x12x192xbf16, #tpu.memory_space<vmem>>, vector<1x8x8x192xbf16>
    %161 = vector.shape_cast %160 : vector<1x8x8x192xbf16> to vector<8x8x192xbf16>
    %162 = vector.extract_strided_slice %151 {offsets = [1, 0, 0], sizes = [1, 1, 192], strides = [1, 1, 1]} : vector<9x1x192xf32> to vector<1x1x192xf32>
    %163 = vector.shape_cast %162 : vector<1x1x192xf32> to vector<1x192xf32>
    %164 = arith.extf %161 : vector<8x8x192xbf16> to vector<8x8x192xf32>
    %165 = vector.shape_cast %163 : vector<1x192xf32> to vector<1x1x192xf32>
    %166 = vector.broadcast %165 : vector<1x1x192xf32> to vector<8x8x192xf32>
    %167 = arith.mulf %164, %166 : vector<8x8x192xf32>
    %c0_109 = arith.constant 0 : index
    %c0_110 = arith.constant 0 : index
    %c4 = arith.constant 4 : index
    %c0_111 = arith.constant 0 : index
    %168 = vector.load %arg15[%c0_109, %c0_110, %c4, %c0_111] : memref<4x12x12x192xbf16, #tpu.memory_space<vmem>>, vector<1x8x8x192xbf16>
    %169 = vector.shape_cast %168 : vector<1x8x8x192xbf16> to vector<8x8x192xbf16>
    %170 = vector.extract_strided_slice %151 {offsets = [2, 0, 0], sizes = [1, 1, 192], strides = [1, 1, 1]} : vector<9x1x192xf32> to vector<1x1x192xf32>
    %171 = vector.shape_cast %170 : vector<1x1x192xf32> to vector<1x192xf32>
    %172 = arith.extf %169 : vector<8x8x192xbf16> to vector<8x8x192xf32>
    %173 = vector.shape_cast %171 : vector<1x192xf32> to vector<1x1x192xf32>
    %174 = vector.broadcast %173 : vector<1x1x192xf32> to vector<8x8x192xf32>
    %175 = arith.mulf %172, %174 : vector<8x8x192xf32>
    %176 = arith.addf %159, %175 : vector<8x8x192xf32>
    %c0_112 = arith.constant 0 : index
    %c2_113 = arith.constant 2 : index
    %c0_114 = arith.constant 0 : index
    %c0_115 = arith.constant 0 : index
    %177 = vector.load %arg15[%c0_112, %c2_113, %c0_114, %c0_115] : memref<4x12x12x192xbf16, #tpu.memory_space<vmem>>, vector<1x8x8x192xbf16>
    %178 = vector.shape_cast %177 : vector<1x8x8x192xbf16> to vector<8x8x192xbf16>
    %179 = vector.extract_strided_slice %151 {offsets = [3, 0, 0], sizes = [1, 1, 192], strides = [1, 1, 1]} : vector<9x1x192xf32> to vector<1x1x192xf32>
    %180 = vector.shape_cast %179 : vector<1x1x192xf32> to vector<1x192xf32>
    %181 = arith.extf %178 : vector<8x8x192xbf16> to vector<8x8x192xf32>
    %182 = vector.shape_cast %180 : vector<1x192xf32> to vector<1x1x192xf32>
    %183 = vector.broadcast %182 : vector<1x1x192xf32> to vector<8x8x192xf32>
    %184 = arith.mulf %181, %183 : vector<8x8x192xf32>
    %185 = arith.addf %167, %184 : vector<8x8x192xf32>
    %c0_116 = arith.constant 0 : index
    %c2_117 = arith.constant 2 : index
    %c2_118 = arith.constant 2 : index
    %c0_119 = arith.constant 0 : index
    %186 = vector.load %arg15[%c0_116, %c2_117, %c2_118, %c0_119] : memref<4x12x12x192xbf16, #tpu.memory_space<vmem>>, vector<1x8x8x192xbf16>
    %187 = vector.shape_cast %186 : vector<1x8x8x192xbf16> to vector<8x8x192xbf16>
    %188 = vector.extract_strided_slice %151 {offsets = [4, 0, 0], sizes = [1, 1, 192], strides = [1, 1, 1]} : vector<9x1x192xf32> to vector<1x1x192xf32>
    %189 = vector.shape_cast %188 : vector<1x1x192xf32> to vector<1x192xf32>
    %190 = arith.extf %187 : vector<8x8x192xbf16> to vector<8x8x192xf32>
    %191 = vector.shape_cast %189 : vector<1x192xf32> to vector<1x1x192xf32>
    %192 = vector.broadcast %191 : vector<1x1x192xf32> to vector<8x8x192xf32>
    %193 = arith.mulf %190, %192 : vector<8x8x192xf32>
    %194 = arith.addf %176, %193 : vector<8x8x192xf32>
    %c0_120 = arith.constant 0 : index
    %c2_121 = arith.constant 2 : index
    %c4_122 = arith.constant 4 : index
    %c0_123 = arith.constant 0 : index
    %195 = vector.load %arg15[%c0_120, %c2_121, %c4_122, %c0_123] : memref<4x12x12x192xbf16, #tpu.memory_space<vmem>>, vector<1x8x8x192xbf16>
    %196 = vector.shape_cast %195 : vector<1x8x8x192xbf16> to vector<8x8x192xbf16>
    %197 = vector.extract_strided_slice %151 {offsets = [5, 0, 0], sizes = [1, 1, 192], strides = [1, 1, 1]} : vector<9x1x192xf32> to vector<1x1x192xf32>
    %198 = vector.shape_cast %197 : vector<1x1x192xf32> to vector<1x192xf32>
    %199 = arith.extf %196 : vector<8x8x192xbf16> to vector<8x8x192xf32>
    %200 = vector.shape_cast %198 : vector<1x192xf32> to vector<1x1x192xf32>
    %201 = vector.broadcast %200 : vector<1x1x192xf32> to vector<8x8x192xf32>
    %202 = arith.mulf %199, %201 : vector<8x8x192xf32>
    %203 = arith.addf %185, %202 : vector<8x8x192xf32>
    %c0_124 = arith.constant 0 : index
    %c4_125 = arith.constant 4 : index
    %c0_126 = arith.constant 0 : index
    %c0_127 = arith.constant 0 : index
    %204 = vector.load %arg15[%c0_124, %c4_125, %c0_126, %c0_127] : memref<4x12x12x192xbf16, #tpu.memory_space<vmem>>, vector<1x8x8x192xbf16>
    %205 = vector.shape_cast %204 : vector<1x8x8x192xbf16> to vector<8x8x192xbf16>
    %206 = vector.extract_strided_slice %151 {offsets = [6, 0, 0], sizes = [1, 1, 192], strides = [1, 1, 1]} : vector<9x1x192xf32> to vector<1x1x192xf32>
    %207 = vector.shape_cast %206 : vector<1x1x192xf32> to vector<1x192xf32>
    %208 = arith.extf %205 : vector<8x8x192xbf16> to vector<8x8x192xf32>
    %209 = vector.shape_cast %207 : vector<1x192xf32> to vector<1x1x192xf32>
    %210 = vector.broadcast %209 : vector<1x1x192xf32> to vector<8x8x192xf32>
    %211 = arith.mulf %208, %210 : vector<8x8x192xf32>
    %212 = arith.addf %194, %211 : vector<8x8x192xf32>
    %c0_128 = arith.constant 0 : index
    %c4_129 = arith.constant 4 : index
    %c2_130 = arith.constant 2 : index
    %c0_131 = arith.constant 0 : index
    %213 = vector.load %arg15[%c0_128, %c4_129, %c2_130, %c0_131] : memref<4x12x12x192xbf16, #tpu.memory_space<vmem>>, vector<1x8x8x192xbf16>
    %214 = vector.shape_cast %213 : vector<1x8x8x192xbf16> to vector<8x8x192xbf16>
    %215 = vector.extract_strided_slice %151 {offsets = [7, 0, 0], sizes = [1, 1, 192], strides = [1, 1, 1]} : vector<9x1x192xf32> to vector<1x1x192xf32>
    %216 = vector.shape_cast %215 : vector<1x1x192xf32> to vector<1x192xf32>
    %217 = arith.extf %214 : vector<8x8x192xbf16> to vector<8x8x192xf32>
    %218 = vector.shape_cast %216 : vector<1x192xf32> to vector<1x1x192xf32>
    %219 = vector.broadcast %218 : vector<1x1x192xf32> to vector<8x8x192xf32>
    %220 = arith.mulf %217, %219 : vector<8x8x192xf32>
    %221 = arith.addf %203, %220 : vector<8x8x192xf32>
    %c0_132 = arith.constant 0 : index
    %c4_133 = arith.constant 4 : index
    %c4_134 = arith.constant 4 : index
    %c0_135 = arith.constant 0 : index
    %222 = vector.load %arg15[%c0_132, %c4_133, %c4_134, %c0_135] : memref<4x12x12x192xbf16, #tpu.memory_space<vmem>>, vector<1x8x8x192xbf16>
    %223 = vector.shape_cast %222 : vector<1x8x8x192xbf16> to vector<8x8x192xbf16>
    %224 = vector.extract_strided_slice %151 {offsets = [8, 0, 0], sizes = [1, 1, 192], strides = [1, 1, 1]} : vector<9x1x192xf32> to vector<1x1x192xf32>
    %225 = vector.shape_cast %224 : vector<1x1x192xf32> to vector<1x192xf32>
    %226 = arith.extf %223 : vector<8x8x192xbf16> to vector<8x8x192xf32>
    %227 = vector.shape_cast %225 : vector<1x192xf32> to vector<1x1x192xf32>
    %228 = vector.broadcast %227 : vector<1x1x192xf32> to vector<8x8x192xf32>
    %229 = arith.mulf %226, %228 : vector<8x8x192xf32>
    %230 = arith.addf %212, %229 : vector<8x8x192xf32>
    %231 = arith.addf %230, %221 : vector<8x8x192xf32>
    %c0_136 = arith.constant 0 : index
    %c0_137 = arith.constant 0 : index
    %232 = vector.load %arg10[%c0_136, %c0_137] : memref<1x192xf32, #tpu.memory_space<vmem>>, vector<1x192xf32>
    %233 = vector.shape_cast %232 : vector<1x192xf32> to vector<1x1x192xf32>
    %234 = vector.broadcast %233 : vector<1x1x192xf32> to vector<8x8x192xf32>
    %235 = arith.addf %231, %234 : vector<8x8x192xf32>
    %cst_138 = arith.constant 0.000000e+00 : f32
    %236 = vector.broadcast %cst_138 : f32 to vector<8x8x192xf32>
    %237 = arith.maximumf %235, %236 : vector<8x8x192xf32>
    %238 = arith.truncf %237 : vector<8x8x192xf32> to vector<8x8x192xbf16>
    %239 = vector.shape_cast %238 : vector<8x8x192xbf16> to vector<64x192xbf16>
    %c0_139 = arith.constant 0 : index
    %c0_140 = arith.constant 0 : index
    %240 = vector.load %arg11[%c0_139, %c0_140] : memref<192x64xbf16, #tpu.memory_space<vmem>>, vector<192x64xbf16>
    %cst_141 = arith.constant dense<0.000000e+00> : vector<64x64xf32>
    %241 = tpu.matmul %150, %240, %cst_141 {dimension_numbers = #tpu.dot_dimension_numbers<[1], [0], [0], [1], [0, 0, 1, 1], [], []>} : vector<64x192xbf16>, vector<192x64xbf16>, vector<64x64xf32> -> vector<64x64xf32>
    %c0_142 = arith.constant 0 : index
    %c0_143 = arith.constant 0 : index
    %242 = vector.load %arg12[%c0_142, %c0_143] : memref<192x64xbf16, #tpu.memory_space<vmem>>, vector<192x64xbf16>
    %cst_144 = arith.constant dense<0.000000e+00> : vector<64x64xf32>
    %243 = tpu.matmul %239, %242, %cst_144 {dimension_numbers = #tpu.dot_dimension_numbers<[1], [0], [0], [1], [0, 0, 1, 1], [], []>} : vector<64x192xbf16>, vector<192x64xbf16>, vector<64x64xf32> -> vector<64x64xf32>
    %244 = arith.addf %241, %243 : vector<64x64xf32>
    %c0_145 = arith.constant 0 : index
    %c0_146 = arith.constant 0 : index
    %245 = vector.load %arg13[%c0_145, %c0_146] : memref<1x64xf32, #tpu.memory_space<vmem>>, vector<1x64xf32>
    %246 = vector.broadcast %245 : vector<1x64xf32> to vector<64x64xf32>
    %247 = arith.addf %244, %246 : vector<64x64xf32>
    %248 = vector.shape_cast %247 : vector<64x64xf32> to vector<8x8x64xf32>
    %249 = arith.truncf %248 : vector<8x8x64xf32> to vector<8x8x64xbf16>
    %c0_147 = arith.constant 0 : index
    %c0_148 = arith.constant 0 : index
    %c0_149 = arith.constant 0 : index
    %c0_150 = arith.constant 0 : index
    %250 = vector.load %arg14[%c0_147, %c0_148, %c0_149, %c0_150] : memref<1x8x8x64xbf16, #tpu.memory_space<vmem>>, vector<1x8x8x64xbf16>
    %251 = vector.shape_cast %250 : vector<1x8x8x64xbf16> to vector<8x8x64xbf16>
    %252 = vector.shape_cast %249 : vector<8x8x64xbf16> to vector<1x8x8x64xbf16>
    tpu.vector_store %arg14[%c0_147, %c0_148, %c0_149, %c0_150], %252 {strides = array<i32>} : memref<1x8x8x64xbf16, #tpu.memory_space<vmem>>, vector<1x8x8x64xbf16>,
    return
  }
  func.func @transform_0(%arg0: i32) -> (i32, i32, i32, i32) {
    %c0_i32 = arith.constant 0 : i32
    %c0_i32_0 = arith.constant 0 : i32
    %c0_i32_1 = arith.constant 0 : i32
    %c0_i32_2 = arith.constant 0 : i32
    return %arg0, %c0_i32, %c0_i32_0, %c0_i32_1 : i32, i32, i32, i32
  }
  func.func @transform_1(%arg0: i32) -> (i32, i32, i32, i32) {
    %c0_i32 = arith.constant 0 : i32
    %c0_i32_0 = arith.constant 0 : i32
    %c0_i32_1 = arith.constant 0 : i32
    %c0_i32_2 = arith.constant 0 : i32
    return %arg0, %c0_i32, %c0_i32_0, %c0_i32_1 : i32, i32, i32, i32
  }
  func.func @transform_2(%arg0: i32) -> (i32, i32, i32, i32) {
    %c0_i32 = arith.constant 0 : i32
    %c0_i32_0 = arith.constant 0 : i32
    %c0_i32_1 = arith.constant 0 : i32
    %c0_i32_2 = arith.constant 0 : i32
    return %arg0, %c0_i32, %c0_i32_0, %c0_i32_1 : i32, i32, i32, i32
  }
  func.func @transform_3(%arg0: i32) -> (i32, i32, i32, i32) {
    %c0_i32 = arith.constant 0 : i32
    %c0_i32_0 = arith.constant 0 : i32
    %c0_i32_1 = arith.constant 0 : i32
    %c0_i32_2 = arith.constant 0 : i32
    return %arg0, %c0_i32, %c0_i32_0, %c0_i32_1 : i32, i32, i32, i32
  }
  func.func @transform_4(%arg0: i32) -> (i32, i32) {
    %c0_i32 = arith.constant 0 : i32
    %c0_i32_0 = arith.constant 0 : i32
    %c0_i32_1 = arith.constant 0 : i32
    return %c0_i32, %c0_i32_0 : i32, i32
  }
  func.func @transform_5(%arg0: i32) -> (i32, i32) {
    %c0_i32 = arith.constant 0 : i32
    %c0_i32_0 = arith.constant 0 : i32
    %c0_i32_1 = arith.constant 0 : i32
    return %c0_i32, %c0_i32_0 : i32, i32
  }
  func.func @transform_6(%arg0: i32) -> (i32, i32, i32) {
    %c0_i32 = arith.constant 0 : i32
    %c0_i32_0 = arith.constant 0 : i32
    %c0_i32_1 = arith.constant 0 : i32
    %c0_i32_2 = arith.constant 0 : i32
    return %c0_i32, %c0_i32_0, %c0_i32_1 : i32, i32, i32
  }
  func.func @transform_7(%arg0: i32) -> (i32, i32) {
    %c0_i32 = arith.constant 0 : i32
    %c0_i32_0 = arith.constant 0 : i32
    %c0_i32_1 = arith.constant 0 : i32
    return %c0_i32, %c0_i32_0 : i32, i32
  }
  func.func @transform_8(%arg0: i32) -> (i32, i32, i32) {
    %c0_i32 = arith.constant 0 : i32
    %c0_i32_0 = arith.constant 0 : i32
    %c0_i32_1 = arith.constant 0 : i32
    %c0_i32_2 = arith.constant 0 : i32
    return %c0_i32, %c0_i32_0, %c0_i32_1 : i32, i32, i32
  }
  func.func @transform_9(%arg0: i32) -> (i32, i32) {
    %c0_i32 = arith.constant 0 : i32
    %c0_i32_0 = arith.constant 0 : i32
    %c0_i32_1 = arith.constant 0 : i32
    return %c0_i32, %c0_i32_0 : i32, i32
  }
  func.func @transform_10(%arg0: i32) -> (i32, i32) {
    %c0_i32 = arith.constant 0 : i32
    %c0_i32_0 = arith.constant 0 : i32
    %c0_i32_1 = arith.constant 0 : i32
    return %c0_i32, %c0_i32_0 : i32, i32
  }
  func.func @transform_11(%arg0: i32) -> (i32, i32) {
    %c0_i32 = arith.constant 0 : i32
    %c0_i32_0 = arith.constant 0 : i32
    %c0_i32_1 = arith.constant 0 : i32
    return %c0_i32, %c0_i32_0 : i32, i32
  }
  func.func @transform_12(%arg0: i32) -> (i32, i32) {
    %c0_i32 = arith.constant 0 : i32
    %c0_i32_0 = arith.constant 0 : i32
    %c0_i32_1 = arith.constant 0 : i32
    return %c0_i32, %c0_i32_0 : i32, i32
  }
  func.func @transform_13(%arg0: i32) -> (i32, i32, i32, i32) {
    %c0_i32 = arith.constant 0 : i32
    %c0_i32_0 = arith.constant 0 : i32
    %c0_i32_1 = arith.constant 0 : i32
    %c0_i32_2 = arith.constant 0 : i32
    return %arg0, %c0_i32, %c0_i32_0, %c0_i32_1 : i32, i32, i32, i32
  }
}

</mosaic_0001>

<bundles_post_ra>
// kernel: fused_block.1
= control target key start
LH: loop header
LB: loop body
LE: loop exit
PB: predicated region body
PF: predicated region fallthrough
CT: control target
= control target key end

     0   :  { %s9250_s0 = inlined_call_operand.vmem [shape: bf16[2,12,12,64], index: 0, kind: input, shape index: {}]   ;;  %s9251_s1 = inlined_call_operand.vmem [shape: bf16[2,12,12,64], index: 1, kind: input, shape index: {}]   ;;  %s9252_s2 = inlined_call_operand.vmem [shape: bf16[2,12,12,64], index: 2, kind: input, shape index: {}]   ;;  %s9253_s3 = inlined_call_operand.vmem [shape: bf16[2,12,12,64], index: 3, kind: input, shape index: {}]   ;;  %s9254_s4 = inlined_call_operand.vmem [shape: bf16[64,192], index: 4, kind: input, shape index: {}]   ;;  %s9255_s5 = inlined_call_operand.vmem [shape: f32[1,192], index: 5, kind: input, shape index: {}]   ;;  %s9256_s6 = inlined_call_operand.vmem [shape: f32[9,1,192], index: 6, kind: input, shape index: {}]   ;;  %s9257_s7 = inlined_call_operand.vmem [shape: f32[1,192], index: 7, kind: input, shape index: {}]   ;;  %s9258_s8 = inlined_call_operand.vmem [shape: f32[9,1,192], index: 8, kind: input, shape index: {}]   ;;  %s9259_s9 = inlined_call_operand.vmem [shape: f32[1,192], index: 9, kind: input, shape index: {}]   ;;  %s9260_s10 = inlined_call_operand.vmem [shape: bf16[192,64], index: 10, kind: input, shape index: {}]   ;;  %s9261_s11 = inlined_call_operand.vmem [shape: bf16[192,64], index: 11, kind: input, shape index: {}]   ;;  %s9262_s12 = inlined_call_operand.vmem [shape: f32[1,64], index: 12, kind: input, shape index: {}]   ;;  %s9263_s13 = inlined_call_operand.hbm [shape: bf16[2,8,8,64], index: 13, kind: output, shape index: {}]  }
   0x1   :  { %9406 = sst [smem:[#allocation43_spill]] %s9250_s0 }
   0x2   :  { %9407 = sst [smem:[#allocation44_spill]] %s9251_s1 }
   0x3   :  { %18 = vsyncpa [#allocation4], 0 }
   0x4   :  { %20 = vsyncpa [#allocation4 + $0x1], 0  ;;  %s5987_s25 = smov 0   ;;  %s5989_s26 = smov 0  }
   0x5   :  { %s5991_s27 = smov 0   ;;  %s5993_s28 = smov 0  }
   0x6 LB: > { %9408 = sst [smem:[#allocation6_spill]] %s5908_s27  ;;  %s6008_s29 = sadd.s32 4294967295, %s5912_s28   ;;  %s5912_s28 = sphi %s5993_s28, %s9657_s28   ;;  %s5908_s27 = sphi %s5991_s27, %s9659_s27   ;;  %s5904_s26 = sphi %s5989_s26, %s9661_s26   ;;  %s5900_s25 = sphi %s5987_s25, %s9660_s25  }
   0x7   : > { %s5375_s30 = sadd.s32 4294967294, %s5912_s28   ;;  %s6012_s14 = sadd.s32 1, %s5912_s28  }
   0x8   : > { %9409 = sst [smem:[#allocation7_spill]] %s6012_s14  ;;  %s326_s15 = sadd.s32 1, %s5908_s27 }
   0x9   : > { %s323_s16 = ssub.s32 %s5912_s28, %s6012_s14  ;;  %p336_p0 = scmp.ne.s32.totalorder %s5908_s27, %s5904_s26 }
   0xa   : > { %p324_p1 = scmp.eq.s32.totalorder %s323_s16, 0  ;;  %p337_p2 = scmp.eq.s32.totalorder %s6008_s29, 1 }
   0xb   : > { %p342_p3 = scmp.ne.s32.totalorder %s5904_s26, %s5900_s25  ;;  %p343_p4 = scmp.eq.s32.totalorder %s5375_s30, 1 }
   0xc   : > { %s6023_s17 = scalar_select %p324_p1, %s5908_s27, %s326_s15  }
   0xd   : > { %p6025_p5 = por %p337_p2, %p336_p0  ;;  %p6029_p6 = por %p343_p4, %p342_p3 }
   0xe   : > { %9410 = sst [smem:[#allocation8_spill]] %s6023_s17  ;;  %p5378_p7 = scmp.ge.s32.totalorder %s5912_s28, 1 }
   0xf   : > { %s9412_s19 = scalar_select %p6029_p6, 1, 0 }
  0x10   : > { %p420_p8 = scmp.lt.s32.totalorder %s5912_s28, 3 }
  0x11   : > { %9413 = sst [smem:[#allocation9_spill]] %s9412_s19 }
  0x12   : > { %p421_p9 = pnand %p5378_p7, %p420_p8 }
  0x14   : > { %424 = sbr.rel (%p421_p9) target bundleno = 971 (0x3cb), region = 72 }
  0x19   : > { %v5434_v0 = vld [vmem:[%s9254_s4 + $0x30] sm:$0xf]  ;;  %v5756_v1 = vld [vmem:[%s9254_s4 + $0x34] sm:$0xf0]  ;;  %v5755_v2 = vld [vmem:[%s9254_s4 + $0x34] sm:$0xf] }
  0x1a   : > { %v5435_v3 = vor.u32 %v5756_v1, %v5434_v0  ;;  %v5436_v4 = vld [vmem:[%s9254_s4 + $0x38] sm:$0xf0]  ;;  %v5498_v5 = vld [vmem:[%s9254_s4 + $0x30] sm:$0xf]  ;;  %v5764_v6 = vld [vmem:[%s9254_s4 + $0x34] sm:$0xf0] }
  0x1b   : > { %v5439_v7 = vor.u32 %v5755_v2, %v5436_v4  ;;  %v5499_v8 = vor.u32 %v5764_v6, %v5498_v5  ;;  %v5763_v9 = vld [vmem:[%s9254_s4 + $0x34] sm:$0xf]  ;;  %v5500_v10 = vld [vmem:[%s9254_s4 + $0x38] sm:$0xf0]  ;;  %v5426_v11 = vld [vmem:[%s9254_s4 + $0x20] sm:$0xf] }
  0x1c   : > { %753 = vmatpush.bf16.msra.mxu0 %v5435_v3  ;;  %v5503_v12 = vor.u32 %v5763_v9, %v5500_v10  ;;  %v5754_v13 = vld [vmem:[%s9254_s4 + $0x24] sm:$0xf0]  ;;  %v5753_v14 = vld [vmem:[%s9254_s4 + $0x24] sm:$0xf]  ;;  %v5428_v15 = vld [vmem:[%s9254_s4 + $0x28] sm:$0xf0] }
  0x1d   : > { %782 = vmatpush.bf16.msra.mxu1 %v5439_v7  ;;  %1041 = vmatpush.bf16.msra.mxu2 %v5499_v8  ;;  %v5427_v16 = vor.u32 %v5754_v13, %v5426_v11  ;;  %v5431_v17 = vor.u32 %v5753_v14, %v5428_v15  ;;  %v5490_v18 = vld [vmem:[%s9254_s4 + $0x20] sm:$0xf]  ;;  %v5762_v19 = vld [vmem:[%s9254_s4 + $0x24] sm:$0xf0]  ;;  %v5761_v20 = vld [vmem:[%s9254_s4 + $0x24] sm:$0xf] }
  0x1e   : > { %1070 = vmatpush.bf16.msra.mxu3 %v5503_v12  ;;  %v5491_v21 = vor.u32 %v5762_v19, %v5490_v18  ;;  %v5492_v22 = vld [vmem:[%s9254_s4 + $0x28] sm:$0xf0]  ;;  %v5418_v23 = vld [vmem:[%s9254_s4 + $0x10] sm:$0xf]  ;;  %v5752_v24 = vld [vmem:[%s9254_s4 + $0x14] sm:$0xf0] }
  0x1f   : > { %v5495_v25 = vor.u32 %v5761_v20, %v5492_v22  ;;  %v5751_v26 = vld [vmem:[%s9254_s4 + $0x14] sm:$0xf]  ;;  %v5420_v27 = vld [vmem:[%s9254_s4 + $0x18] sm:$0xf0]  ;;  %v5482_v28 = vld [vmem:[%s9254_s4 + $0x10] sm:$0xf]  ;;  %v5419_v29 = vor.u32 %v5752_v24, %v5418_v23 }
  0x20   : > { %754 = vmatpush.bf16.msra.mxu0 %v5427_v16  ;;  %v5760_v30 = vld [vmem:[%s9254_s4 + $0x14] sm:$0xf0]  ;;  %v5759_v31 = vld [vmem:[%s9254_s4 + $0x14] sm:$0xf]  ;;  %v5484_v32 = vld [vmem:[%s9254_s4 + $0x18] sm:$0xf0]  ;;  %v5423_v33 = vor.u32 %v5751_v26, %v5420_v27 }
  0x21   : > { %783 = vmatpush.bf16.msra.mxu1 %v5431_v17  ;;  %1042 = vmatpush.bf16.msra.mxu2 %v5491_v21  ;;  %v5483_v34 = vor.u32 %v5760_v30, %v5482_v28  ;;  %v5410_v35 = vld [vmem:[%s9254_s4] sm:$0xf]  ;;  %v5750_v36 = vld [vmem:[%s9254_s4 + $0x4] sm:$0xf0]  ;;  %v5749_v37 = vld [vmem:[%s9254_s4 + $0x4] sm:$0xf]  ;;  %v5487_v38 = vor.u32 %v5759_v31, %v5484_v32 }
  0x22   : > { %1071 = vmatpush.bf16.msra.mxu3 %v5495_v25  ;;  %v5412_v39 = vld [vmem:[%s9254_s4 + $0x8] sm:$0xf0]  ;;  %v5474_v40 = vld [vmem:[%s9254_s4] sm:$0xf]  ;;  %v5758_v41 = vld [vmem:[%s9254_s4 + $0x4] sm:$0xf0]  ;;  %v5411_v44 = vor.u32 %v5750_v36, %v5410_v35 }
  0x23   : > { %v5757_v42 = vld [vmem:[%s9254_s4 + $0x4] sm:$0xf]  ;;  %v5476_v43 = vld [vmem:[%s9254_s4 + $0x8] sm:$0xf0]  ;;  %p479_p10 = scmp.lt.s32.totalorder %s6008_s29, 1  ;;  %vm635_vm0 = vcmask 1042432   ;;  %v5415_v47 = vor.u32 %v5749_v37, %v5412_v39  ;;  %v5475_v48 = vor.u32 %v5758_v41, %v5474_v40 }
  0x24   : > { %755 = vmatpush.bf16.msra.mxu0 %v5419_v29  ;;  %v5626_v45 = vld [vmem:[%s9254_s4 + $0x30] sm:$0xf]  ;;  %v5780_v46 = vld [vmem:[%s9254_s4 + $0x34] sm:$0xf0]  ;;  %vm636_vm1 = vcmask 1046532   ;;  %v5479_v51 = vor.u32 %v5757_v42, %v5476_v43  ;;  %s9414_s0 = sld [smem:[#allocation43_spill]] }
  0x25   : > { %784 = vmatpush.bf16.msra.mxu1 %v5423_v33  ;;  %1043 = vmatpush.bf16.msra.mxu2 %v5483_v34  ;;  %s480_s22 = scalar_select %p479_p10, %s6008_s29, 1  ;;  %v5779_v49 = vld [vmem:[%s9254_s4 + $0x34] sm:$0xf]  ;;  %v5628_v50 = vld [vmem:[%s9254_s4 + $0x38] sm:$0xf0]  ;;  %v5627_v52 = vor.u32 %v5780_v46, %v5626_v45  ;;  %vm6179_vm2 = vmor %vm635_vm0, %vm636_vm1  ;;  %vm736_vm3 = vcmask 523264  }
  0x26   : > { %1072 = vmatpush.bf16.msra.mxu3 %v5487_v38  ;;  %v5562_v53 = vld [vmem:[%s9254_s4 + $0x30] sm:$0xf]  ;;  %v5772_v54 = vld [vmem:[%s9254_s4 + $0x34] sm:$0xf0]  ;;  %v5771_v55 = vld [vmem:[%s9254_s4 + $0x34] sm:$0xf]  ;;  %v5631_v56 = vor.u32 %v5779_v49, %v5628_v50 }
  0x27   : > { %s6154_s23 = smul.u32 96, %s480_s22  ;;  %v5563_v57 = vor.u32 %v5772_v54, %v5562_v53  ;;  %v5564_v58 = vld [vmem:[%s9254_s4 + $0x38] sm:$0xf0]  ;;  %v5618_v59 = vld [vmem:[%s9254_s4 + $0x20] sm:$0xf]  ;;  %s9417_s1 = sld [smem:[#allocation44_spill]] }
  0x28   : > { %756 = vmatpush.bf16.msra.mxu0 %v5411_v44  ;;  %v5567_v60 = vor.u32 %v5771_v55, %v5564_v58  ;;  %v5778_v61 = vld [vmem:[%s9254_s4 + $0x24] sm:$0xf0]  ;;  %v5777_v62 = vld [vmem:[%s9254_s4 + $0x24] sm:$0xf]  ;;  %v5620_v63 = vld [vmem:[%s9254_s4 + $0x28] sm:$0xf0] }
  0x29   : > { %785 = vmatpush.bf16.msra.mxu1 %v5415_v47  ;;  %1044 = vmatpush.bf16.msra.mxu2 %v5475_v48  ;;  %v5554_v1 = vld [vmem:[%s9254_s4 + $0x20] sm:$0xf]  ;;  %v5770_v2 = vld [vmem:[%s9254_s4 + $0x24] sm:$0xf0]  ;;  %v5619_v6 = vor.u32 %v5778_v61, %v5618_v59  ;;  %v5623_v7 = vor.u32 %v5777_v62, %v5620_v63  ;;  %v5769_v30 = vld [vmem:[%s9254_s4 + $0x24] sm:$0xf]  ;;  %s6335_s21 = scalar_lea.vmem %s9253_s3, %s6154_s23 }
  0x2a   : > { %s6175_s15 = scalar_lea.vmem %s9414_s0, %s6154_s23  ;;  %1073 = vmatpush.bf16.msra.mxu3 %v5479_v51  ;;  %v5555_v12 = vor.u32 %v5770_v2, %v5554_v1  ;;  %v5556_v37 = vld [vmem:[%s9254_s4 + $0x28] sm:$0xf0]  ;;  %v5610_v51 = vld [vmem:[%s9254_s4 + $0x10] sm:$0xf]  ;;  %v5767_v61 = vld [vmem:[%s9254_s4 + $0x14] sm:$0xf] }
  0x2b   : > { %v5384_v3 = vld [vmem:[%s6175_s15 + $0x10] sm:$0xe]  ;;  %v5385_v4 = vld [vmem:[%s6175_s15 + $0x14] sm:$0x1]  ;;  %v5386_v5 = vld [vmem:[%s6175_s15 + $0x18] sm:$0xe]  ;;  %v5559_v42 = vor.u32 %v5769_v30, %v5556_v37 }
  0x2c   : > { %v5387_v8 = vld [vmem:[%s6175_s15 + $0x1c] sm:$0x1]  ;;  %v5400_v9 = vrot.slane %v5384_v3, 9  ;;  %v640_v10 = vrot.slane %v5385_v4, 5  ;;  %v5401_v11 = vrot.slane %v5386_v5, 9  ;;  %1323 = vmatpush.bf16.msrb.mxu0 %v5563_v57  ;;  %vm500_vm4 = vcmask 1043456  }
  0x2d   : > { %s6187_s14 = scalar_lea.vmem %s9417_s1, %s6154_s23  ;;  %1605 = vmatpush.bf16.msrb.mxu2 %v5627_v52  ;;  %v644_v13 = vrot.slane %v5387_v8, 5  ;;  %1352 = vmatpush.bf16.msrb.mxu1 %v5567_v60  ;;  %v5388_v29 = vld [vmem:[%s6175_s15 + $0x20] sm:$0xe]  ;;  %v5389_v33 = vld [vmem:[%s6175_s15 + $0x24] sm:$0x1]  ;;  %vm501_vm5 = vcmask 523268  }
  0x2e   : > { %1634 = vmatpush.bf16.msrb.mxu3 %v5631_v56  ;;  %v5448_v14 = vld [vmem:[%s6187_s14 + $0x10] sm:$0xe]  ;;  %v5449_v15 = vld [vmem:[%s6187_s14 + $0x14] sm:$0x1]  ;;  %v641_v16 = vsel %vm6179_vm2, %v5400_v9, %v640_v10  ;;  %v5450_v17 = vld [vmem:[%s6187_s14 + $0x18] sm:$0xe] }
  0x2f   : > { %v5451_v18 = vld [vmem:[%s6187_s14 + $0x1c] sm:$0x1]  ;;  %v5464_v19 = vrot.slane %v5448_v14, 9  ;;  %v929_v20 = vrot.slane %v5449_v15, 5  ;;  %v645_v21 = vsel %vm6179_vm2, %v5401_v11, %v644_v13  ;;  %v684_v22 = vunpack.c.l.b16 %v641_v16  ;;  %v5390_v34 = vld [vmem:[%s6175_s15 + $0x28] sm:$0xe]  ;;  %vm6408_vm7 = vmor %vm501_vm5, %vm500_vm4 }
  0x30   : > { %v5465_v23 = vrot.slane %v5450_v17, 9  ;;  %v933_v24 = vrot.slane %v5451_v18, 5  ;;  %v685_v25 = vunpack.c.l.b16 %v645_v21  ;;  %1324 = vmatpush.bf16.msrb.mxu0 %v5555_v12  ;;  %v5391_v35 = vld [vmem:[%s6175_s15 + $0x2c] sm:$0x1]  ;;  %v5452_v36 = vld [vmem:[%s6187_s14 + $0x20] sm:$0xe] }
  0x31   : > { %1606 = vmatpush.bf16.msrb.mxu2 %v5619_v6  ;;  %v930_v26 = vsel %vm6179_vm2, %v5464_v19, %v929_v20  ;;  %v5453_v39 = vld [vmem:[%s6187_s14 + $0x24] sm:$0x1]  ;;  %v5454_v40 = vld [vmem:[%s6187_s14 + $0x28] sm:$0xe]  ;;  %v5455_v41 = vld [vmem:[%s6187_s14 + $0x2c] sm:$0x1]  ;;  %1353 = vmatpush.bf16.msrb.mxu1 %v5559_v42 }
  0x32   : > { %1635 = vmatpush.bf16.msrb.mxu3 %v5623_v7  ;;  %v934_v27 = vsel %vm6179_vm2, %v5465_v23, %v933_v24  ;;  %v973_v28 = vunpack.c.l.b16 %v930_v26  ;;  %v692_v31 = vpack.c.b16 %v685_v25, %v684_v22  ;;  %v5402_v43 = vrot.slane %v5388_v29, 9  ;;  %v5776_v52 = vld [vmem:[%s9254_s4 + $0x14] sm:$0xf0]  ;;  %v5775_v56 = vld [vmem:[%s9254_s4 + $0x14] sm:$0xf]  ;;  %s476_s20 = sand.u32 1, %s5904_s26  }
  0x33   : > { %v974_v32 = vunpack.c.l.b16 %v934_v27  ;;  %v648_v44 = vrot.slane %v5389_v33, 5  ;;  %v5403_v45 = vrot.slane %v5390_v34, 9  ;;  %v652_v46 = vrot.slane %v5391_v35, 5  ;;  %v5612_v57 = vld [vmem:[%s9254_s4 + $0x18] sm:$0xf0]  ;;  %s5379_s24 = sshll.u32 %s476_s20, 5 }
  0x34   : > { %5440 = vmatmul.msk.bf16.vlgmr.msra.gmra.mxu0 %vm736_vm3, %v692_v31  ;;  %5444 = vmatmul.msk.bf16.vlgmr.msra.gmra.mxu1 %vm736_vm3, %v692_v31  ;;  %v5466_v47 = vrot.slane %v5452_v36, 9  ;;  %v937_v48 = vrot.slane %v5453_v39, 5  ;;  %v5467_v49 = vrot.slane %v5454_v40, 9  ;;  %v941_v50 = vrot.slane %v5455_v41, 5  ;;  %v5546_v58 = vld [vmem:[%s9254_s4 + $0x10] sm:$0xf] }
  0x35   : > { %v981_v38 = vpack.c.b16 %v974_v32, %v973_v28  ;;  %v649_v53 = vsel %vm6179_vm2, %v5402_v43, %v648_v44  ;;  %v653_v54 = vsel %vm6179_vm2, %v5403_v45, %v652_v46  ;;  %v5611_v55 = vor.u32 %v5776_v52, %v5610_v51  ;;  %v5768_v60 = vld [vmem:[%s9254_s4 + $0x14] sm:$0xf0]  ;;  %v5548_v62 = vld [vmem:[%s9254_s4 + $0x18] sm:$0xf0]  ;;  %v5392_v9 = vld [vmem:[%s6175_s15 + $0x30] sm:$0xe] }
  0x36   : > { %v5615_v59 = vor.u32 %v5775_v56, %v5612_v57  ;;  %v938_v63 = vsel %vm6179_vm2, %v5466_v47, %v937_v48  ;;  %v942_v1 = vsel %vm6179_vm2, %v5467_v49, %v941_v50  ;;  %v5547_v2 = vor.u32 %v5768_v60, %v5546_v58  ;;  %v5393_v10 = vld [vmem:[%s6175_s15 + $0x34] sm:$0x1]  ;;  %v5394_v11 = vld [vmem:[%s6175_s15 + $0x38] sm:$0xe]  ;;  %v5395_v12 = vld [vmem:[%s6175_s15 + $0x3c] sm:$0x1] }
  0x37   : > { %5504 = vmatmul.msk.bf16.vlgmr.msra.gmra.mxu2 %vm736_vm3, %v981_v38  ;;  %5508 = vmatmul.msk.bf16.vlgmr.msra.gmra.mxu3 %vm736_vm3, %v981_v38  ;;  %v5551_v3 = vor.u32 %v5767_v61, %v5548_v62  ;;  %v686_v4 = vunpack.c.l.b16 %v649_v53  ;;  %v687_v5 = vunpack.c.l.b16 %v653_v54  ;;  %v975_v6 = vunpack.c.l.b16 %v938_v63  ;;  %v5456_v13 = vld [vmem:[%s6187_s14 + $0x30] sm:$0xe]  ;;  %v5457_v15 = vld [vmem:[%s6187_s14 + $0x34] sm:$0x1]  ;;  %v5458_v16 = vld [vmem:[%s6187_s14 + $0x38] sm:$0xe] }
  0x38   : > { %1607 = vmatpush.bf16.msrb.mxu2 %v5611_v55  ;;  %1636 = vmatpush.bf16.msrb.mxu3 %v5615_v59  ;;  %v976_v7 = vunpack.c.l.b16 %v942_v1  ;;  %v5459_v17 = vld [vmem:[%s6187_s14 + $0x3c] sm:$0x1]  ;;  %v5404_v18 = vrot.slane %v5392_v9, 9  ;;  %v656_v19 = vrot.slane %v5393_v10, 5  ;;  %v5405_v20 = vrot.slane %v5394_v11, 9  ;;  %s9191_s30 = scalar_lea.vmem [#allocation3], %s5379_s24 }
  0x39   : > { %1325 = vmatpush.bf16.msrb.mxu0 %v5547_v2  ;;  %1354 = vmatpush.bf16.msrb.mxu1 %v5551_v3  ;;  %v693_v8 = vpack.c.b16 %v687_v5, %v686_v4  ;;  %v660_v21 = vrot.slane %v5395_v12, 5  ;;  %v5468_v22 = vrot.slane %v5456_v13, 9  ;;  %v945_v23 = vrot.slane %v5457_v15, 5  ;;  %v5602_v26 = vld [vmem:[%s9254_s4] sm:$0xf]  ;;  %s5805_s0 = sshll.u32 %s6008_s29, 5 }
  0x3a   : > { %v982_v14 = vpack.c.b16 %v976_v7, %v975_v6  ;;  %v5469_v24 = vrot.slane %v5458_v16, 9  ;;  %v949_v25 = vrot.slane %v5459_v17, 5  ;;  %v5774_v27 = vld [vmem:[%s9254_s4 + $0x4] sm:$0xf0]  ;;  %v5773_v28 = vld [vmem:[%s9254_s4 + $0x4] sm:$0xf]  ;;  %v657_v37 = vsel %vm6179_vm2, %v5404_v18, %v656_v19  ;;  %s5273_s17 = scalar_lea.hbm %s9263_s13, %s5805_s0 }
  0x3b   : > { %v5603_v29 = vor.u32 %v5774_v27, %v5602_v26  ;;  %v5604_v30 = vld [vmem:[%s9254_s4 + $0x8] sm:$0xf0]  ;;  %v5538_v31 = vld [vmem:[%s9254_s4] sm:$0xf]  ;;  %v5766_v32 = vld [vmem:[%s9254_s4 + $0x4] sm:$0xf0]  ;;  %v661_v38 = vsel %vm6179_vm2, %v5405_v20, %v660_v21  ;;  %v946_v40 = vsel %vm6179_vm2, %v5468_v22, %v945_v23  ;;  %v688_v42 = vunpack.c.l.b16 %v657_v37 }
  0x3c   : > { %v5607_v33 = vor.u32 %v5773_v28, %v5604_v30  ;;  %v5539_v34 = vor.u32 %v5766_v32, %v5538_v31  ;;  %v5765_v35 = vld [vmem:[%s9254_s4 + $0x4] sm:$0xf]  ;;  %v5540_v36 = vld [vmem:[%s9254_s4 + $0x8] sm:$0xf0]  ;;  %v950_v41 = vsel %vm6179_vm2, %v5469_v24, %v949_v25  ;;  %v689_v43 = vunpack.c.l.b16 %v661_v38  ;;  %v5396_v47 = vld [vmem:[%s6175_s15 + $0x40] sm:$0xe] }
  0x3d   : > { %1608 = vmatpush.bf16.msrb.mxu2 %v5603_v29  ;;  %v5543_v39 = vor.u32 %v5765_v35, %v5540_v36  ;;  %v977_v44 = vunpack.c.l.b16 %v946_v40  ;;  %v978_v45 = vunpack.c.l.b16 %v950_v41  ;;  %v5397_v49 = vld [vmem:[%s6175_s15 + $0x44] sm:$0x1]  ;;  %v5398_v50 = vld [vmem:[%s6175_s15 + $0x48] sm:$0xe]  ;;  %v5399_v51 = vld [vmem:[%s6175_s15 + $0x4c] sm:$0x1] }
  0x3e   : > { %1637 = vmatpush.bf16.msrb.mxu3 %v5607_v33  ;;  %1326 = vmatpush.bf16.msrb.mxu0 %v5539_v34  ;;  %v694_v46 = vpack.c.b16 %v689_v43, %v688_v42  ;;  %v5460_v52 = vld [vmem:[%s6187_s14 + $0x40] sm:$0xe]  ;;  %v5461_v53 = vld [vmem:[%s6187_s14 + $0x44] sm:$0x1]  ;;  %v5462_v54 = vld [vmem:[%s6187_s14 + $0x48] sm:$0xe] }
  0x3f   : > { %1355 = vmatpush.bf16.msrb.mxu1 %v5543_v39  ;;  %v983_v48 = vpack.c.b16 %v978_v45, %v977_v44  ;;  %v5463_v55 = vld [vmem:[%s6187_s14 + $0x4c] sm:$0x1]  ;;  %v5406_v56 = vrot.slane %v5396_v47, 9  ;;  %v664_v57 = vrot.slane %v5397_v49, 5  ;;  %v5407_v58 = vrot.slane %v5398_v50, 9  ;;  %s6329_s14 = scalar_lea.vmem %s9252_s2, %s6154_s23  ;;  %s5274_s22 = sshll.u32 %s9191_s30, 4  ;;  %s5275_s22 = int_to_ptr.vmem [resolvable:$true] %s5274_s22 }
  0x40   : > { %v668_v59 = vrot.slane %v5399_v51, 5  ;;  %v5470_v60 = vrot.slane %v5460_v52, 9  ;;  %v953_v61 = vrot.slane %v5461_v53, 5  ;;  %v5471_v62 = vrot.slane %v5462_v54, 9  ;;  %v5512_v10 = vld [vmem:[%s6329_s14 + $0x10] sm:$0xe] }
  0x41   : > { %v957_v63 = vrot.slane %v5463_v55, 5  ;;  %v665_v1 = vsel %vm6179_vm2, %v5406_v56, %v664_v57  ;;  %v5513_v12 = vld [vmem:[%s6329_s14 + $0x14] sm:$0x1]  ;;  %v5514_v13 = vld [vmem:[%s6329_s14 + $0x18] sm:$0xe]  ;;  %v5528_v19 = vrot.slane %v5512_v10, 9 }
  0x42   : > { %v669_v2 = vsel %vm6179_vm2, %v5407_v58, %v668_v59  ;;  %v954_v3 = vsel %vm6179_vm2, %v5470_v60, %v953_v61  ;;  %v690_v5 = vunpack.c.l.b16 %v665_v1  ;;  %v5576_v15 = vld [vmem:[%s6335_s21 + $0x10] sm:$0xe]  ;;  %v5577_v16 = vld [vmem:[%s6335_s21 + $0x14] sm:$0x1]  ;;  %v5578_v17 = vld [vmem:[%s6335_s21 + $0x18] sm:$0xe] }
  0x43   : > { %v958_v4 = vsel %vm6179_vm2, %v5471_v62, %v957_v63  ;;  %v691_v6 = vunpack.c.l.b16 %v669_v2  ;;  %v979_v7 = vunpack.c.l.b16 %v954_v3  ;;  %v5579_v18 = vld [vmem:[%s6335_s21 + $0x1c] sm:$0x1]  ;;  %v1211_v20 = vrot.slane %v5513_v12, 5  ;;  %v5516_v36 = vld [vmem:[%s6329_s14 + $0x20] sm:$0xe]  ;;  %s5276_s19 = sshll.u32 %s5273_s17, 4  ;;  %s5277_s19 = int_to_ptr.hbm [resolvable:$true] %s5276_s19 }
  0x44   : > { %5441 = vmatmul.msk.bf16.gmra.mxu0 %vm736_vm3, %v693_v8  ;;  %5445 = vmatmul.msk.bf16.gmra.mxu1 %vm736_vm3, %v693_v8  ;;  %v980_v8 = vunpack.c.l.b16 %v958_v4  ;;  %v5529_v21 = vrot.slane %v5514_v13, 9  ;;  %v5592_v23 = vrot.slane %v5576_v15, 9  ;;  %v1493_v24 = vrot.slane %v5577_v16, 5  ;;  %v5517_v38 = vld [vmem:[%s6329_s14 + $0x24] sm:$0x1]  ;;  %s5262_s29 = scalar_lea.sflag [#allocation4], %s476_s20 }
  0x45   : > { %v695_v9 = vpack.c.b16 %v691_v6, %v690_v5  ;;  %v5593_v25 = vrot.slane %v5578_v17, 9  ;;  %v1497_v26 = vrot.slane %v5579_v18, 5  ;;  %v1212_v27 = vsel %vm6179_vm2, %v5528_v19, %v1211_v20  ;;  %v5518_v39 = vld [vmem:[%s6329_s14 + $0x28] sm:$0xe]  ;;  %v5519_v40 = vld [vmem:[%s6329_s14 + $0x2c] sm:$0x1] }
  0x46   : > { %v984_v11 = vpack.c.b16 %v980_v8, %v979_v7  ;;  %v1494_v29 = vsel %vm6179_vm2, %v5592_v23, %v1493_v24  ;;  %v1255_v31 = vunpack.c.l.b16 %v1212_v27  ;;  %v5580_v41 = vld [vmem:[%s6335_s21 + $0x20] sm:$0xe]  ;;  %v5581_v42 = vld [vmem:[%s6335_s21 + $0x24] sm:$0x1]  ;;  %v5582_v43 = vld [vmem:[%s6335_s21 + $0x28] sm:$0xe] }
  0x47   : > { %5505 = vmatmul.msk.bf16.gmra.mxu2 %vm736_vm3, %v982_v14  ;;  %5509 = vmatmul.msk.bf16.gmra.mxu3 %vm736_vm3, %v982_v14  ;;  %v5515_v14 = vld [vmem:[%s6329_s14 + $0x1c] sm:$0x1]  ;;  %v1498_v30 = vsel %vm6179_vm2, %v5593_v25, %v1497_v26  ;;  %v1537_v33 = vunpack.c.l.b16 %v1494_v29  ;;  %v5583_v44 = vld [vmem:[%s6335_s21 + $0x2c] sm:$0x1]  ;;  %v5530_v45 = vrot.slane %v5516_v36, 9  ;;  %v5531_v47 = vrot.slane %v5518_v39, 9 }
  0x48   : > { %v1215_v22 = vrot.slane %v5515_v14, 5  ;;  %v1538_v34 = vunpack.c.l.b16 %v1498_v30  ;;  %v5594_v49 = vrot.slane %v5580_v41, 9  ;;  %v1501_v50 = vrot.slane %v5581_v42, 5  ;;  %v5520_v62 = vld [vmem:[%s6329_s14 + $0x30] sm:$0xe]  ;;  %s5864_s15 = sshra.s32 %s5277_s19, 4  ;;  %s5865_s15 = int_to_ptr.hbm [resolvable:$true] %s5864_s15 }
  0x49   : > { %v5595_v51 = vrot.slane %v5582_v43, 9  ;;  %v1505_v52 = vrot.slane %v5583_v44, 5  ;;  %v5521_v1 = vld [vmem:[%s6329_s14 + $0x34] sm:$0x1]  ;;  %v5522_v2 = vld [vmem:[%s6329_s14 + $0x38] sm:$0xe]  ;;  %p5871_p0 = scmp.lt.s32.totalorder %s5865_s15, %s9263_s13 }
  0x4a   : > { %v1216_v28 = vsel %vm6179_vm2, %v5529_v21, %v1215_v22  ;;  %v1545_v37 = vpack.c.b16 %v1538_v34, %v1537_v33  ;;  %v1502_v55 = vsel %vm6179_vm2, %v5594_v49, %v1501_v50  ;;  %v5523_v3 = vld [vmem:[%s6329_s14 + $0x3c] sm:$0x1]  ;;  %v5584_v4 = vld [vmem:[%s6335_s21 + $0x30] sm:$0xe]  ;;  %v5585_v5 = vld [vmem:[%s6335_s21 + $0x34] sm:$0x1] }
  0x4b   : > { %v1256_v32 = vunpack.c.l.b16 %v1216_v28  ;;  %v1506_v56 = vsel %vm6179_vm2, %v5595_v51, %v1505_v52  ;;  %v1539_v59 = vunpack.c.l.b16 %v1502_v55  ;;  %v5586_v6 = vld [vmem:[%s6335_s21 + $0x38] sm:$0xe]  ;;  %v5587_v7 = vld [vmem:[%s6335_s21 + $0x3c] sm:$0x1]  ;;  %v5532_v8 = vrot.slane %v5520_v62, 9  ;;  %s5870_s23 = scalar_lea.hbm %s9263_s13, 64 }
  0x4c   : > { %v1540_v60 = vunpack.c.l.b16 %v1506_v56  ;;  %v5533_v10 = vrot.slane %v5522_v2, 9  ;;  %v5596_v12 = vrot.slane %v5584_v4, 9  ;;  %v1509_v13 = vrot.slane %v5585_v5, 5  ;;  %v5524_v24 = vld [vmem:[%s6329_s14 + $0x40] sm:$0xe] }
  0x4d   : > { %v1263_v35 = vpack.c.b16 %v1256_v32, %v1255_v31  ;;  %v5597_v14 = vrot.slane %v5586_v6, 9  ;;  %v1513_v15 = vrot.slane %v5587_v7, 5  ;;  %v5525_v26 = vld [vmem:[%s6329_s14 + $0x44] sm:$0x1]  ;;  %v5526_v28 = vld [vmem:[%s6329_s14 + $0x48] sm:$0xe] }
  0x4e   : > { %v1546_v63 = vpack.c.b16 %v1540_v60, %v1539_v59  ;;  %v1510_v18 = vsel %vm6179_vm2, %v5596_v12, %v1509_v13  ;;  %v5527_v29 = vld [vmem:[%s6329_s14 + $0x4c] sm:$0x1]  ;;  %v5534_v30 = vrot.slane %v5524_v24, 9  ;;  %v5588_v31 = vld [vmem:[%s6335_s21 + $0x40] sm:$0xe]  ;;  %vm504_vm6 = vcmask 1041408  }
  0x4f   : > { %v1514_v19 = vsel %vm6179_vm2, %v5597_v14, %v1513_v15  ;;  %v1541_v22 = vunpack.c.l.b16 %v1510_v18  ;;  %v5589_v32 = vld [vmem:[%s6335_s21 + $0x44] sm:$0x1]  ;;  %v5590_v33 = vld [vmem:[%s6335_s21 + $0x48] sm:$0xe]  ;;  %v5591_v34 = vld [vmem:[%s6335_s21 + $0x4c] sm:$0x1] }
  0x50   : > { %v1542_v23 = vunpack.c.l.b16 %v1514_v19  ;;  %v5535_v36 = vrot.slane %v5526_v28, 9  ;;  %vm505_vm8 = vcmask 521220   ;;  %v5598_v41 = vrot.slane %v5588_v31, 9  ;;  %v967_v5 = vld [vmem:[%s9255_s5] sm:$0x3]  ;;  %s5866_s14 = scalar_lea.hbm %s5865_s15, 32 }
  0x51   : > { %vm6414_vm9 = vmor %vm505_vm8, %vm504_vm6  ;;  %v1517_v42 = vrot.slane %v5589_v32, 5  ;;  %v5599_v43 = vrot.slane %v5590_v33, 9  ;;  %v1521_v44 = vrot.slane %v5591_v34, 5  ;;  %vm872_vm10 = vcmask 1043457   ;;  %p5867_p11 = scmp.ne.s32.totalorder %s5865_s15, %s5866_s14  ;;  %p5872_p1 = scmp.lt.s32.totalorder %s5870_s23, %s5866_s14 }
  0x52   : > { %v1547_v27 = vpack.c.b16 %v1542_v23, %v1541_v22  ;;  %vm873_vm11 = vcmask 523269   ;;  %vm876_vm12 = vcmask 1040384   ;;  %vm877_vm13 = vcmask 520196  }
  0x53   : > { %vm6526_vm14 = vmor %vm873_vm11, %vm872_vm10  ;;  %v6581_v6 = vperm.slane %v967_v5, 0  ;;  %v6583_v7 = vperm.slane %v967_v5, 1  ;;  %vm3992_vm0 = vcmask 1045504   ;;  %vm2014_vm1 = vcmask 1046528   ;;  %p5868_p12 = pnand %p5867_p11, %p6025_p5  ;;  %p5873_p2 = por %p5872_p1, %p5871_p0 }
  0x54   : > { %5442 = vmatmul.msk.bf16.gmra.mxu0 %vm736_vm3, %v694_v46  ;;  %5446 = vmatmul.msk.bf16.gmra.mxu1 %vm736_vm3, %v694_v46  ;;  %v1219_v46 = vrot.slane %v5517_v38, 5  ;;  %vm6537_vm15 = vmor %vm877_vm13, %vm876_vm12  ;;  %v6891_v38 = vld [vmem:[%s9258_s8 + $0x6] sm:$0x3]  ;;  %vm5252_vm6 = vcmask 519168  }
  0x55   : > { %p5869_p13 = pneg %p5868_p12 }
  0x56   : > { %v1220_v53 = vsel %vm6179_vm2, %v5530_v45, %v1219_v46 }
  0x57   : > { %5506 = vmatmul.msk.bf16.gmra.mxu2 %vm736_vm3, %v983_v48  ;;  %5510 = vmatmul.msk.bf16.gmra.mxu3 %vm736_vm3, %v983_v48  ;;  %v1223_v48 = vrot.slane %v5519_v40, 5  ;;  %v1257_v57 = vunpack.c.l.b16 %v1220_v53  ;;  %v5914_v40 = vmov 0   ;;  %p5874_p3 = pnand %p5873_p2, %p5869_p13 }
  0x58   : > { %510 = vst.msk [vmem:[#allocation2 + $0x20] sm:$0xff] %vm6408_vm7, %v5914_v40 }
  0x59   : > { %v1224_v54 = vsel %vm6179_vm2, %v5531_v47, %v1223_v48  ;;  %511 = vst.msk [vmem:[#allocation2 + $0x28] sm:$0x33] %vm6414_vm9, %v5914_v40  ;;  %v1518_v47 = vsel %vm6179_vm2, %v5598_v41, %v1517_v42  ;;  %v1522_v48 = vsel %vm6179_vm2, %v5599_v43, %v1521_v44 }
  0x5a   : > { %v1258_v58 = vunpack.c.l.b16 %v1224_v54  ;;  %503 = vst.msk [vmem:[#allocation2] sm:$0xff] %vm6408_vm7, %v5914_v40  ;;  %v1543_v51 = vunpack.c.l.b16 %v1518_v47  ;;  %v1544_v52 = vunpack.c.l.b16 %v1522_v48  ;;  %v678_v54 = vld [vmem:[%s9255_s5] sm:$0x3] }
  0x5b   : > { %507 = vst.msk [vmem:[#allocation2 + $0x8] sm:$0x33] %vm6414_vm9, %v5914_v40  ;;  %v6505_v55 = vperm.slane %v678_v54, 0  ;;  %v6507_v56 = vperm.slane %v678_v54, 1 }
  0x5c   : > { %v1264_v61 = vpack.c.b16 %v1258_v58, %v1257_v57  ;;  %508 = vst.msk [vmem:[#allocation2 + $0x10] sm:$0xff] %vm6408_vm7, %v5914_v40  ;;  %v1548_v53 = vpack.c.b16 %v1544_v52, %v1543_v51  ;;  %v1744_v52 = vld [vmem:[%s9256_s6 + $0x8] sm:$0x3] }
  0x5d   : > { %509 = vst.msk [vmem:[#allocation2 + $0x18] sm:$0x33] %vm6414_vm9, %v5914_v40 }
  0x5e   : > { %512 = vst.msk [vmem:[#allocation2 + $0x30] sm:$0xff] %vm6408_vm7, %v5914_v40 }
  0x5f   : > { %513 = vst.msk [vmem:[#allocation2 + $0x38] sm:$0x33] %vm6414_vm9, %v5914_v40 }
  0x60   : > { %514 = vst.msk [vmem:[#allocation2 + $0x40] sm:$0xff] %vm6408_vm7, %v5914_v40 }
  0x61   : > { %515 = vst.msk [vmem:[#allocation2 + $0x48] sm:$0x33] %vm6414_vm9, %v5914_v40  ;;  %v6650_v41 = vld [vmem:[#allocation2] sm:$0xcc] }
  0x62   : > { %516 = vst.msk [vmem:[#allocation2 + $0x50] sm:$0xff] %vm6408_vm7, %v5914_v40  ;;  %v6652_v42 = vld [vmem:[#allocation2 + $0x8] sm:$0x33] }
  0x63   : > { %517 = vst.msk [vmem:[#allocation2 + $0x58] sm:$0x33] %vm6414_vm9, %v5914_v40 }
  0x64   : > { %5443 = vmatmul.msk.bf16.gmra.mxu0 %vm736_vm3, %v695_v9  ;;  %5447 = vmatmul.msk.bf16.gmra.mxu1 %vm736_vm3, %v695_v9  ;;  %v1227_v9 = vrot.slane %v5521_v1, 5  ;;  %518 = vst.msk [vmem:[#allocation2 + $0x60] sm:$0xff] %vm6408_vm7, %v5914_v40 }
  0x65   : > { %519 = vst.msk [vmem:[#allocation2 + $0x68] sm:$0x33] %vm6414_vm9, %v5914_v40 }
  0x66   : > { %v1228_v16 = vsel %vm6179_vm2, %v5532_v8, %v1227_v9  ;;  %520 = vst.msk [vmem:[#allocation2 + $0x70] sm:$0xff] %vm6408_vm7, %v5914_v40 }
  0x67   : > { %5507 = vmatmul.msk.bf16.gmra.mxu2 %vm736_vm3, %v984_v11  ;;  %5511 = vmatmul.msk.bf16.gmra.mxu3 %vm736_vm3, %v984_v11  ;;  %v1231_v11 = vrot.slane %v5523_v3, 5  ;;  %v1259_v20 = vunpack.c.l.b16 %v1228_v16  ;;  %521 = vst.msk [vmem:[#allocation2 + $0x78] sm:$0x33] %vm6414_vm9, %v5914_v40  ;;  %v1742_v3 = vld [vmem:[%s9256_s6 + $0x4] sm:$0x3] }
  0x68   : > { %522 = vst.msk [vmem:[#allocation2 + $0x80] sm:$0xff] %vm6408_vm7, %v5914_v40 }
  0x69   : > { %v1232_v17 = vsel %vm6179_vm2, %v5533_v10, %v1231_v11  ;;  %523 = vst.msk [vmem:[#allocation2 + $0x88] sm:$0x33] %vm6414_vm9, %v5914_v40 }
  0x6a   : > { %v1260_v21 = vunpack.c.l.b16 %v1232_v17  ;;  %524 = vst.msk [vmem:[#allocation2 + $0x90] sm:$0xff] %vm6408_vm7, %v5914_v40 }
  0x6b   : > { %525 = vst.msk [vmem:[#allocation2 + $0x98] sm:$0x33] %vm6414_vm9, %v5914_v40 }
  0x6c   : > { %v1265_v25 = vpack.c.b16 %v1260_v21, %v1259_v20  ;;  %526 = vst.msk [vmem:[#allocation2 + $0xa0] sm:$0xff] %vm6408_vm7, %v5914_v40 }
  0x6d   : > { %527 = vst.msk [vmem:[#allocation2 + $0xa8] sm:$0x33] %vm6414_vm9, %v5914_v40 }
  0x6e   : > { %528 = vst.msk [vmem:[#allocation2 + $0xb0] sm:$0xff] %vm6408_vm7, %v5914_v40 }
  0x6f   : > { %529 = vst.msk [vmem:[#allocation2 + $0xb8] sm:$0x33] %vm6414_vm9, %v5914_v40 }
  0x70   : > { %534 = vst.msk [vmem:[#allocation2 + $0xe0] sm:$0xff] %vm6408_vm7, %v5914_v40 }
  0x71   : > { %535 = vst.msk [vmem:[#allocation2 + $0xe8] sm:$0x33] %vm6414_vm9, %v5914_v40 }
  0x72   : > { %536 = vst.msk [vmem:[#allocation2 + $0xf0] sm:$0xff] %vm6408_vm7, %v5914_v40 }
  0x73   : > { %537 = vst.msk [vmem:[#allocation2 + $0xf8] sm:$0x33] %vm6414_vm9, %v5914_v40 }
  0x74   : > { %5568 = vmatmul.msk.bf16.vlgmr.msrb.gmra.mxu0 %vm736_vm3, %v1263_v35  ;;  %5572 = vmatmul.msk.bf16.vlgmr.msrb.gmra.mxu1 %vm736_vm3, %v1263_v35  ;;  %v1235_v35 = vrot.slane %v5525_v26, 5  ;;  %538 = vst.msk [vmem:[#allocation2 + $0x100] sm:$0xff] %vm6408_vm7, %v5914_v40 }
  0x75   : > { %539 = vst.msk [vmem:[#allocation2 + $0x108] sm:$0x33] %vm6414_vm9, %v5914_v40 }
  0x76   : > { %v1236_v45 = vsel %vm6179_vm2, %v5534_v30, %v1235_v35  ;;  %540 = vst.msk [vmem:[#allocation2 + $0x110] sm:$0xff] %vm6408_vm7, %v5914_v40 }
  0x77   : > { %5632 = vmatmul.msk.bf16.vlgmr.msrb.gmra.mxu2 %vm736_vm3, %v1545_v37  ;;  %5636 = vmatmul.msk.bf16.vlgmr.msrb.gmra.mxu3 %vm736_vm3, %v1545_v37  ;;  %v1239_v37 = vrot.slane %v5527_v29, 5  ;;  %v1261_v49 = vunpack.c.l.b16 %v1236_v45  ;;  %541 = vst.msk [vmem:[#allocation2 + $0x118] sm:$0x33] %vm6414_vm9, %v5914_v40 }
  0x78   : > { %542 = vst.msk [vmem:[#allocation2 + $0x120] sm:$0xff] %vm6408_vm7, %v5914_v40 }
  0x79   : > { %v1240_v46 = vsel %vm6179_vm2, %v5535_v36, %v1239_v37  ;;  %543 = vst.msk [vmem:[#allocation2 + $0x128] sm:$0x33] %vm6414_vm9, %v5914_v40  ;;  %vm3347_vm2 = vsmask.f32 3328 }
  0x7a   : > { %v1262_v50 = vunpack.c.l.b16 %v1240_v46  ;;  %544 = vst.msk [vmem:[#allocation2 + $0x130] sm:$0xff] %vm6408_vm7, %v5914_v40 }
  0x7b   : > { %545 = vst.msk [vmem:[#allocation2 + $0x138] sm:$0x33] %vm6414_vm9, %v5914_v40 }
  0x7c   : > { %v1266_v0 = vpack.c.b16 %v1262_v50, %v1261_v49  ;;  %546 = vst.msk [vmem:[#allocation2 + $0x140] sm:$0xff] %vm6408_vm7, %v5914_v40 }
  0x7d   : > { %547 = vst.msk [vmem:[#allocation2 + $0x148] sm:$0x33] %vm6414_vm9, %v5914_v40 }
  0x7e   : > { %548 = vst.msk [vmem:[#allocation2 + $0x150] sm:$0xff] %vm6408_vm7, %v5914_v40 }
  0x7f   : > { %549 = vst.msk [vmem:[#allocation2 + $0x158] sm:$0x33] %vm6414_vm9, %v5914_v40 }
  0x80   : > { %556 = vst.msk [vmem:[#allocation2 + $0x190] sm:$0xff] %vm6408_vm7, %v5914_v40 }
  0x81   : > { %557 = vst.msk [vmem:[#allocation2 + $0x198] sm:$0x33] %vm6414_vm9, %v5914_v40 }
  0x82   : > { %558 = vst.msk [vmem:[#allocation2 + $0x1a0] sm:$0xff] %vm6408_vm7, %v5914_v40 }
  0x83   : > { %559 = vst.msk [vmem:[#allocation2 + $0x1a8] sm:$0x33] %vm6414_vm9, %v5914_v40 }
  0x84   : > { %5569 = vmatmul.msk.bf16.gmra.mxu0 %vm736_vm3, %v1264_v61  ;;  %5573 = vmatmul.msk.bf16.gmra.mxu1 %vm736_vm3, %v1264_v61  ;;  %560 = vst.msk [vmem:[#allocation2 + $0x1b0] sm:$0xff] %vm6408_vm7, %v5914_v40 }
  0x85   : > { %561 = vst.msk [vmem:[#allocation2 + $0x1b8] sm:$0x33] %vm6414_vm9, %v5914_v40 }
  0x86   : > { %562 = vst.msk [vmem:[#allocation2 + $0x1c0] sm:$0xff] %vm6408_vm7, %v5914_v40 }
  0x87   : > { %5633 = vmatmul.msk.bf16.gmra.mxu2 %vm736_vm3, %v1546_v63  ;;  %5637 = vmatmul.msk.bf16.gmra.mxu3 %vm736_vm3, %v1546_v63  ;;  %563 = vst.msk [vmem:[#allocation2 + $0x1c8] sm:$0x33] %vm6414_vm9, %v5914_v40 }
  0x88   : > { %564 = vst.msk [vmem:[#allocation2 + $0x1d0] sm:$0xff] %vm6408_vm7, %v5914_v40 }
  0x89   : > { %565 = vst.msk [vmem:[#allocation2 + $0x1d8] sm:$0x33] %vm6414_vm9, %v5914_v40 }
  0x8a   : > { %566 = vst.msk [vmem:[#allocation2 + $0x1e0] sm:$0xff] %vm6408_vm7, %v5914_v40 }
  0x8b   : > { %567 = vst.msk [vmem:[#allocation2 + $0x1e8] sm:$0x33] %vm6414_vm9, %v5914_v40 }
  0x8c   : > { %568 = vst.msk [vmem:[#allocation2 + $0x1f0] sm:$0xff] %vm6408_vm7, %v5914_v40 }
  0x8d   : > { %569 = vst.msk [vmem:[#allocation2 + $0x1f8] sm:$0x33] %vm6414_vm9, %v5914_v40 }
  0x8e   : > { %570 = vst.msk [vmem:[#allocation2 + $0x200] sm:$0xff] %vm6408_vm7, %v5914_v40 }
  0x8f   : > { %571 = vst.msk [vmem:[#allocation2 + $0x208] sm:$0x33] %vm6414_vm9, %v5914_v40 }
  0x90   : > { %572 = vst.msk [vmem:[#allocation2 + $0x210] sm:$0xff] %vm6408_vm7, %v5914_v40 }
  0x91   : > { %573 = vst.msk [vmem:[#allocation2 + $0x218] sm:$0x33] %vm6414_vm9, %v5914_v40 }
  0x92   : > { %580 = vst.msk [vmem:[#allocation2 + $0x250] sm:$0xff] %vm6408_vm7, %v5914_v40 }
  0x93   : > { %581 = vst.msk [vmem:[#allocation2 + $0x258] sm:$0x33] %vm6414_vm9, %v5914_v40 }
  0x94   : > { %5570 = vmatmul.msk.bf16.gmra.mxu0 %vm736_vm3, %v1265_v25  ;;  %5574 = vmatmul.msk.bf16.gmra.mxu1 %vm736_vm3, %v1265_v25  ;;  %582 = vst.msk [vmem:[#allocation2 + $0x260] sm:$0xff] %vm6408_vm7, %v5914_v40 }
  0x95   : > { %583 = vst.msk [vmem:[#allocation2 + $0x268] sm:$0x33] %vm6414_vm9, %v5914_v40 }
  0x96   : > { %584 = vst.msk [vmem:[#allocation2 + $0x270] sm:$0xff] %vm6408_vm7, %v5914_v40 }
  0x97   : > { %5634 = vmatmul.msk.bf16.gmra.mxu2 %vm736_vm3, %v1547_v27  ;;  %5638 = vmatmul.msk.bf16.gmra.mxu3 %vm736_vm3, %v1547_v27  ;;  %585 = vst.msk [vmem:[#allocation2 + $0x278] sm:$0x33] %vm6414_vm9, %v5914_v40 }
  0x98   : > { %586 = vst.msk [vmem:[#allocation2 + $0x280] sm:$0xff] %vm6408_vm7, %v5914_v40 }
  0x99   : > { %587 = vst.msk [vmem:[#allocation2 + $0x288] sm:$0x33] %vm6414_vm9, %v5914_v40 }
  0x9a   : > { %588 = vst.msk [vmem:[#allocation2 + $0x290] sm:$0xff] %vm6408_vm7, %v5914_v40 }
  0x9b   : > { %589 = vst.msk [vmem:[#allocation2 + $0x298] sm:$0x33] %vm6414_vm9, %v5914_v40 }
  0x9c   : > { %590 = vst.msk [vmem:[#allocation2 + $0x2a0] sm:$0xff] %vm6408_vm7, %v5914_v40 }
  0x9d   : > { %591 = vst.msk [vmem:[#allocation2 + $0x2a8] sm:$0x33] %vm6414_vm9, %v5914_v40 }
  0x9e   : > { %592 = vst.msk [vmem:[#allocation2 + $0x2b0] sm:$0xff] %vm6408_vm7, %v5914_v40 }
  0x9f   : > { %593 = vst.msk [vmem:[#allocation2 + $0x2b8] sm:$0x33] %vm6414_vm9, %v5914_v40 }
  0xa0   : > { %594 = vst.msk [vmem:[#allocation2 + $0x2c0] sm:$0xff] %vm6408_vm7, %v5914_v40 }
  0xa1   : > { %595 = vst.msk [vmem:[#allocation2 + $0x2c8] sm:$0x33] %vm6414_vm9, %v5914_v40 }
  0xa2   : > { %596 = vst.msk [vmem:[#allocation2 + $0x2d0] sm:$0xff] %vm6408_vm7, %v5914_v40 }
  0xa3   : > { %597 = vst.msk [vmem:[#allocation2 + $0x2d8] sm:$0x33] %vm6414_vm9, %v5914_v40 }
  0xa4   : > { %5571 = vmatmul.msk.bf16.gmra.mxu0 %vm736_vm3, %v1266_v0  ;;  %5575 = vmatmul.msk.bf16.gmra.mxu1 %vm736_vm3, %v1266_v0 }
  0xa7   : > { %5635 = vmatmul.msk.bf16.gmra.mxu2 %vm736_vm3, %v1548_v53  ;;  %5639 = vmatmul.msk.bf16.gmra.mxu3 %vm736_vm3, %v1548_v53 }
  0xb1   : > { %v758_v57 = vpop.f32.mrf.mxu0  ;;  %v787_v58 = vpop.f32.mrf.mxu1 }
  0xb2   : > { %v759_v59 = vadd.f32 %v758_v57, %v6505_v55  ;;  %v788_v60 = vadd.f32 %v787_v58, %v6507_v56 }
  0xb4   : > { %v807_v61 = vmax.f32 %v759_v59, 0.0  ;;  %v808_v62 = vmax.f32 %v788_v60, 0.0 }
  0xb6   : > { %v823_v63 = vpack.c.bf16 %v808_v62, %v807_v61 }
  0xb8   : > { %v839_v2 = vrot.slane %v823_v63, 7  ;;  %v6683_v63 = vld [vmem:[#allocation2] sm:$0xff] }
  0xb9   : > { %v760_v12 = vpop.f32.mrf.mxu0  ;;  %v789_v13 = vpop.f32.mrf.mxu1 }
  0xba   : > { %v840_v4 = vrot.slane %v839_v2, 4  ;;  %875 = vst.msk [vmem:[#allocation2 + $0x20] sm:$0xee] %vm6526_vm14, %v839_v2  ;;  %v1046_v8 = vpop.f32.mrf.mxu2  ;;  %v1075_v9 = vpop.f32.mrf.mxu3  ;;  %v761_v14 = vadd.f32 %v760_v12, %v6505_v55  ;;  %v790_v15 = vadd.f32 %v789_v13, %v6507_v56  ;;  %v6698_v12 = vperm.slane %v1744_v52, 0 }
  0xbb   : > { %v1047_v10 = vadd.f32 %v1046_v8, %v6581_v6  ;;  %v1076_v11 = vadd.f32 %v1075_v9, %v6583_v7  ;;  %v3462_v9 = vld [vmem:[%s9258_s8] sm:$0x3]  ;;  %v6700_v13 = vperm.slane %v1744_v52, 1 }
  0xbc   : > { %879 = vst.msk [vmem:[#allocation2 + $0x28] sm:$0x11] %vm6537_vm15, %v840_v4  ;;  %v809_v18 = vmax.f32 %v761_v14, 0.0  ;;  %v810_v19 = vmax.f32 %v790_v15, 0.0 }
  0xbd   : > { %v1095_v16 = vmax.f32 %v1047_v10, 0.0  ;;  %v1096_v17 = vmax.f32 %v1076_v11, 0.0  ;;  %9428 = vst [vmem:[#allocation12_spill] sm:$0xff] %v6700_v13 }
  0xbe   : > { %v6627_v21 = vpack.c.bf16 %v810_v19, %v809_v18 }
  0xbf   : > { %v6625_v20 = vpack.c.bf16 %v1096_v17, %v1095_v16  ;;  %v3479_v17 = vunpack.c.l.bf16 %v6683_v63 }
  0xc0   : > { %v9274_v32 = vrot.slane %v6627_v21, 7 }
  0xc1   : > { %v763_v26 = vpop.f32.mrf.mxu0  ;;  %v792_v27 = vpop.f32.mrf.mxu1  ;;  %v9275_v31 = vrot.slane %v6625_v20, 7  ;;  %v6664_v48 = vld [vmem:[#allocation2 + $0x20] sm:$0xee] }
  0xc2   : > { %v1048_v22 = vpop.f32.mrf.mxu2  ;;  %v1077_v23 = vpop.f32.mrf.mxu3  ;;  %v764_v30 = vadd.f32 %v763_v26, %v6505_v55  ;;  %v793_v33 = vadd.f32 %v792_v27, %v6507_v56  ;;  %v6660_v44 = vrot.slane %v9274_v32, 4  ;;  %9426 = vst [vmem:[#allocation10_spill] sm:$0xff] %v6664_v48  ;;  %v9269_v61 = vunpack.c.l.bf16 %v6664_v48  ;;  %v6852_v32 = vld [vmem:[#allocation2 + $0x18] sm:$0x33] }
  0xc3   : > { %v1049_v24 = vadd.f32 %v1048_v22, %v6581_v6  ;;  %v1078_v25 = vadd.f32 %v1077_v23, %v6583_v7  ;;  %v6656_v43 = vrot.slane %v9275_v31, 4  ;;  %v6672_v0 = vld [vmem:[#allocation2 + $0x28] sm:$0x11]  ;;  %v9268_v62 = vunpack.c.h.bf16 %v6664_v48  ;;  %v3472_v23 = vld [vmem:[#allocation2 + $0x10] sm:$0xff] }
  0xc4   : > { %v811_v35 = vmax.f32 %v764_v30, 0.0  ;;  %v812_v36 = vmax.f32 %v793_v33, 0.0  ;;  %9427 = vst [vmem:[#allocation11_spill] sm:$0xff] %v6672_v0  ;;  %v6718_v19 = vmul.f32 %v6698_v12, %v9269_v61  ;;  %v3480_v27 = vunpack.c.h.bf16 %v6683_v63  ;;  %v5798_v61 = vld [vmem:[%s9261_s11 + $0x28] sm:$0xff] }
  0xc5   : > { %v1097_v28 = vmax.f32 %v1049_v24, 0.0  ;;  %v1098_v29 = vmax.f32 %v1078_v25, 0.0  ;;  %v6723_v22 = vmul.f32 %v6700_v13, %v9268_v62  ;;  %v6725_v24 = vperm.slane %v3462_v9, 0  ;;  %1161 = vst.msk [vmem:[#allocation2 + $0xe8] sm:$0x11] %vm6537_vm15, %v6656_v43 }
  0xc6   : > { %v6662_v45 = vpack.c.bf16 %v812_v36, %v811_v35  ;;  %9429 = vst [vmem:[#allocation13_spill] sm:$0xff] %v6718_v19  ;;  %v5800_v35 = vld [vmem:[%s9261_s11 + $0x38] sm:$0xff]  ;;  %v9445_v43 = vunpack.c.h.bf16 %v6652_v42 }
  0xc7   : > { %v6647_v34 = vpack.c.bf16 %v1098_v29, %v1097_v28  ;;  %9430 = vst [vmem:[#allocation14_spill] sm:$0xff] %v6723_v22  ;;  %v3481_v28 = vunpack.c.l.bf16 %v3472_v23  ;;  %v6734_v29 = vld [vmem:[#allocation2] sm:$0xee]  ;;  %v6755_v63 = vmul.f32 %v6725_v24, %v3479_v17  ;;  %5004 = vmatpush.bf16.msra.mxu0 %v5800_v35  ;;  %v6771_v17 = vld [vmem:[#allocation2 + $0x10] sm:$0xee]  ;;  %v5796_v22 = vld [vmem:[%s9261_s11 + $0x18] sm:$0xff] }
  0xc8   : > { %v9272_v58 = vrot.slane %v6662_v45, 7  ;;  %9431 = vst [vmem:[#allocation15_spill] sm:$0xff] %v6725_v24  ;;  %v3533_v35 = vunpack.c.h.bf16 %v6734_v29  ;;  %v3536_v10 = vunpack.c.l.bf16 %v6771_v17 }
  0xc9   : > { %v9273_v37 = vrot.slane %v6647_v34, 7  ;;  %v765_v59 = vpop.f32.mrf.mxu0  ;;  %v794_v60 = vpop.f32.mrf.mxu1  ;;  %881 = vst.msk [vmem:[#allocation2 + $0x38] sm:$0x11] %vm6537_vm15, %v6660_v44 }
  0xca   : > { %v1051_v46 = vpop.f32.mrf.mxu2  ;;  %v1080_v47 = vpop.f32.mrf.mxu3  ;;  %v766_v5 = vadd.f32 %v765_v59, %v6505_v55  ;;  %v795_v8 = vadd.f32 %v794_v60, %v6507_v56  ;;  %v6713_v18 = vrot.slane %v9272_v58, 4  ;;  %v5799_v60 = vld [vmem:[%s9261_s11 + $0x30] sm:$0xff]  ;;  %v5804_v58 = vld [vmem:[%s9261_s11 + $0x58] sm:$0xff] }
  0xcb   : > { %v1052_v50 = vadd.f32 %v1051_v46, %v6581_v6  ;;  %v1081_v51 = vadd.f32 %v1080_v47, %v6583_v7  ;;  %v6678_v57 = vrot.slane %v9273_v37, 4  ;;  %v3482_v47 = vunpack.c.h.bf16 %v3472_v23  ;;  %5005 = vmatpush.bf16.msra.mxu0 %v5799_v60  ;;  %5037 = vmatpush.bf16.msra.mxu1 %v5804_v58 }
  0xcc   : > { %v813_v15 = vmax.f32 %v766_v5, 0.0  ;;  %v814_v16 = vmax.f32 %v795_v8, 0.0  ;;  %v3532_v23 = vunpack.c.l.bf16 %v6734_v29  ;;  %883 = vst.msk [vmem:[#allocation2 + $0x48] sm:$0x11] %vm6537_vm15, %v6713_v18 }
  0xcd   : > { %v1099_v2 = vmax.f32 %v1052_v50, 0.0  ;;  %v1100_v4 = vmax.f32 %v1081_v51, 0.0  ;;  %1163 = vst.msk [vmem:[#allocation2 + $0xf8] sm:$0x11] %vm6537_vm15, %v6678_v57 }
  0xce   : > { %v6731_v26 = vpack.c.bf16 %v814_v16, %v813_v15  ;;  %v6766_v15 = vperm.slane %v3462_v9, 1  ;;  %v6769_v16 = vmul.f32 %v6725_v24, %v3481_v28  ;;  %v3463_v9 = vld [vmem:[%s9258_s8 + $0x2] sm:$0x3] }
  0xcf   : > { %v6705_v14 = vpack.c.bf16 %v1100_v4, %v1099_v2  ;;  %v6757_v2 = vld [vmem:[#allocation2 + $0x8] sm:$0x11]  ;;  %v6823_v60 = vperm.slane %v3463_v9, 1  ;;  %5006 = vmatpush.bf16.msra.mxu0 %v5798_v61 }
  0xd0   : > { %v9270_v51 = vrot.slane %v6731_v26, 7  ;;  %9432 = vst [vmem:[#allocation16_spill] sm:$0xff] %v6766_v15  ;;  %v6802_v62 = vmul.f32 %v6766_v15, %v3482_v47  ;;  %v6815_v47 = vperm.slane %v3463_v9, 0 }
  0xd1   : > { %v9271_v25 = vrot.slane %v6705_v14, 7  ;;  %v768_v5 = vpop.f32.mrf.mxu0  ;;  %v797_v8 = vpop.f32.mrf.mxu1  ;;  %9434 = vst [vmem:[#allocation18_spill] sm:$0xff] %v6823_v60  ;;  %v6869_v31 = vmul.f32 %v6823_v60, %v3533_v35 }
  0xd2   : > { %v1053_v30 = vpop.f32.mrf.mxu2  ;;  %v1082_v33 = vpop.f32.mrf.mxu3  ;;  %v769_v46 = vadd.f32 %v768_v5, %v6505_v55  ;;  %v6787_v28 = vrot.slane %v9270_v51, 4  ;;  %v798_v36 = vadd.f32 %v797_v8, %v6507_v56  ;;  %v3534_v5 = vunpack.c.l.bf16 %v6757_v2  ;;  %v6805_v8 = vld [vmem:[#allocation2 + $0x10] sm:$0xcc]  ;;  %9433 = vst [vmem:[#allocation17_spill] sm:$0xff] %v6815_v47 }
  0xd3   : > { %v1054_v52 = vadd.f32 %v1053_v30, %v6581_v6  ;;  %v1083_v59 = vadd.f32 %v1082_v33, %v6583_v7  ;;  %v6764_v4 = vrot.slane %v9271_v25, 4  ;;  %v6834_v37 = vmul.f32 %v6815_v47, %v3532_v23 }
  0xd4   : > { %v815_v11 = vmax.f32 %v769_v46, 0.0  ;;  %v3537_v46 = vunpack.c.h.bf16 %v6771_v17  ;;  %v6847_v50 = vmul.f32 %v6815_v47, %v3534_v5  ;;  %v6850_v23 = vmul.f32 %v6815_v47, %v3536_v10  ;;  %v5797_v10 = vld [vmem:[%s9261_s11 + $0x20] sm:$0xff]  ;;  %v5803_v5 = vld [vmem:[%s9261_s11 + $0x50] sm:$0xff]  ;;  %885 = vst.msk [vmem:[#allocation2 + $0x58] sm:$0x11] %vm6537_vm15, %v6787_v28 }
  0xd5   : > { %v1101_v30 = vmax.f32 %v1054_v52, 0.0  ;;  %v1102_v33 = vmax.f32 %v1083_v59, 0.0  ;;  %v6791_v52 = vmul.f32 %v6766_v15, %v3480_v27  ;;  %v6793_v59 = vld [vmem:[#allocation2 + $0x18] sm:$0x11]  ;;  %v816_v27 = vmax.f32 %v798_v36, 0.0  ;;  %5007 = vmatpush.bf16.msra.mxu0 %v5797_v10  ;;  %5038 = vmatpush.bf16.msra.mxu1 %v5803_v5 }
  0xd6   : > { %v3538_v51 = vunpack.c.l.bf16 %v6793_v59  ;;  %v3539_v36 = vunpack.c.h.bf16 %v6793_v59  ;;  %v6950_v10 = vperm.slane %v6891_v38, 0  ;;  %1165 = vst.msk [vmem:[#allocation2 + $0x108] sm:$0x11] %vm6537_vm15, %v6764_v4  ;;  %v9453_v4 = vrot.slane %v6731_v26, 7 }
  0xd7   : > { %v6799_v29 = vpack.c.bf16 %v1102_v33, %v1101_v30  ;;  %v3535_v30 = vunpack.c.h.bf16 %v6757_v2  ;;  %v6828_v2 = vpack.c.bf16 %v816_v27, %v815_v11  ;;  %v3464_v27 = vld [vmem:[%s9258_s8 + $0x4] sm:$0x3] }
  0xd8   : > { %v6910_v19 = vperm.slane %v3464_v27, 0  ;;  %884 = vst.msk [vmem:[#allocation2 + $0x50] sm:$0xee] %vm6526_vm14, %v9453_v4 }
  0xd9   : > { %v9276_v33 = vrot.slane %v6799_v29, 7  ;;  %v770_v9 = vpop.f32.mrf.mxu0  ;;  %v799_v54 = vpop.f32.mrf.mxu1  ;;  %v9435_v35 = vrot.slane %v6828_v2, 7  ;;  %5008 = vmatpush.bf16.msra.mxu0 %v5796_v22 }
  0xda   : > { %v1056_v17 = vpop.f32.mrf.mxu2  ;;  %v1085_v25 = vpop.f32.mrf.mxu3  ;;  %v771_v49 = vadd.f32 %v770_v9, %v6505_v55  ;;  %v800_v58 = vadd.f32 %v799_v54, %v6507_v56  ;;  %v6897_v54 = vmul.f32 %v6815_v47, %v3538_v51  ;;  %v3623_v9 = vunpack.c.l.bf16 %v6852_v32  ;;  %v5788_v51 = vld [vmem:[%s9260_s10 + $0x38] sm:$0xff] }
  0xdb   : > { %v1057_v11 = vadd.f32 %v1056_v17, %v6581_v6  ;;  %v1086_v59 = vadd.f32 %v1085_v25, %v6583_v7  ;;  %v6859_v17 = vrot.slane %v9276_v33, 4  ;;  %v6872_v33 = vmul.f32 %v6823_v60, %v3535_v30  ;;  %v6879_v25 = vld [vmem:[#allocation2 + $0x20] sm:$0xff]  ;;  %5174 = vmatpush.bf16.msra.mxu2 %v5788_v51 }
  0xdc   : > { %v6886_v30 = vrot.slane %v9435_v35, 4  ;;  %9437 = vst [vmem:[#allocation20_spill] sm:$0xff] %v6897_v54  ;;  %v817_v40 = vmax.f32 %v771_v49, 0.0  ;;  %v818_v35 = vmax.f32 %v800_v58, 0.0  ;;  %v1249_v49 = vld [vmem:[%s9255_s5] sm:$0x3]  ;;  %v9441_v47 = vunpack.c.h.bf16 %v6650_v41 }
  0xdd   : > { %v1103_v61 = vmax.f32 %v1057_v11, 0.0  ;;  %v1104_v53 = vmax.f32 %v1086_v59, 0.0  ;;  %v6894_v11 = vmul.f32 %v6823_v60, %v3537_v46  ;;  %v6900_v59 = vld [vmem:[#allocation2 + $0x20] sm:$0xcc]  ;;  %v5802_v46 = vld [vmem:[%s9261_s11 + $0x48] sm:$0xff]  ;;  %v6922_v58 = vperm.slane %v3464_v27, 1 }
  0xde   : > { %9438 = vst [vmem:[#allocation21_spill] sm:$0xff] %v6900_v59  ;;  %v6926_v5 = vpack.c.bf16 %v818_v35, %v817_v40  ;;  %v6930_v54 = vperm.slane %v1249_v49, 0  ;;  %v9442_v35 = vrot.slane %v6625_v20, 7  ;;  %5039 = vmatpush.bf16.msra.mxu1 %v5802_v46 }
  0xdf   : > { %9436 = vst [vmem:[#allocation19_spill] sm:$0xff] %v6894_v11  ;;  %v6902_v39 = vpack.c.bf16 %v1104_v53, %v1103_v61  ;;  %v6919_v53 = vmul.f32 %v6823_v60, %v3539_v36  ;;  %v3624_v61 = vunpack.c.h.bf16 %v6852_v32  ;;  %v6932_v36 = vperm.slane %v1249_v49, 1 }
  0xe0   : > { %v9440_v32 = vunpack.c.l.bf16 %v6650_v41  ;;  %v3655_v40 = vmul.f32 %v6922_v58, %v9441_v47  ;;  %1160 = vst.msk [vmem:[#allocation2 + $0xe0] sm:$0xee] %vm6526_vm14, %v9442_v35  ;;  %v9443_v49 = vunpack.c.l.bf16 %v6652_v42  ;;  %v5801_v35 = vld [vmem:[%s9261_s11 + $0x40] sm:$0xff]  ;;  %v9447_v60 = vrot.slane %v6627_v21, 7 }
  0xe1   : > { %9439 = vst [vmem:[#allocation22_spill] sm:$0xff] %v6919_v53  ;;  %v9444_v20 = vrot.slane %v6902_v39, 7  ;;  %v9448_v53 = vunpack.c.h.bf16 %v6805_v8  ;;  %v3661_v21 = vmul.f32 %v6922_v58, %v3624_v61  ;;  %v9451_v57 = vrot.slane %v6926_v5, 7 }
  0xe2   : > { %v1058_v0 = vpop.f32.mrf.mxu2  ;;  %v1087_v48 = vpop.f32.mrf.mxu3  ;;  %v3654_v27 = vmul.f32 %v6910_v19, %v9440_v32  ;;  %v3656_v15 = vmul.f32 %v6910_v19, %v9443_v49  ;;  %v3657_v49 = vmul.f32 %v6922_v58, %v9445_v43  ;;  %880 = vst.msk [vmem:[#allocation2 + $0x30] sm:$0xee] %vm6526_vm14, %v9447_v60  ;;  %v3660_v43 = vmul.f32 %v6910_v19, %v3623_v9 }
  0xe3   : > { %v1059_v24 = vadd.f32 %v1058_v0, %v6581_v6  ;;  %v1088_v51 = vadd.f32 %v1087_v48, %v6583_v7  ;;  %v6957_v41 = vrot.slane %v9444_v20, 4  ;;  %v773_v0 = vpop.f32.mrf.mxu0  ;;  %v802_v32 = vpop.f32.mrf.mxu1  ;;  %v5795_v48 = vld [vmem:[%s9261_s11 + $0x10] sm:$0xff]  ;;  %v9446_v20 = vunpack.c.l.bf16 %v6805_v8  ;;  %5040 = vmatpush.bf16.msra.mxu1 %v5801_v35  ;;  %1167 = vst.msk [vmem:[#allocation2 + $0x118] sm:$0x11] %vm6537_vm15, %v6859_v17 }
  0xe4   : > { %v774_v46 = vadd.f32 %v773_v0, %v6505_v55  ;;  %v3659_v11 = vmul.f32 %v6922_v58, %v9448_v53  ;;  %v803_v42 = vadd.f32 %v802_v32, %v6507_v56  ;;  %v5794_v53 = vld [vmem:[%s9261_s11 + $0x8] sm:$0xff]  ;;  %v3719_v44 = vrot.slane %v3656_v15, 4  ;;  %5009 = vmatpush.bf16.msra.mxu0 %v5795_v48  ;;  %887 = vst.msk [vmem:[#allocation2 + $0x68] sm:$0x11] %vm6537_vm15, %v6886_v30 }
  0xe5   : > { %v3658_v47 = vmul.f32 %v6910_v19, %v9446_v20  ;;  %v1105_v22 = vmax.f32 %v1059_v24, 0.0  ;;  %v1106_v59 = vmax.f32 %v1088_v51, 0.0  ;;  %v3718_v20 = vrot.slane %v3654_v27, 4  ;;  %1169 = vst.msk [vmem:[#allocation2 + $0x128] sm:$0x11] %vm6537_vm15, %v6957_v41 }
  0xe6   : > { %v9449_v24 = vrot.slane %v6647_v34, 7  ;;  %v819_v8 = vmax.f32 %v774_v46, 0.0  ;;  %v3721_v51 = vrot.slane %v3655_v40, 4  ;;  %v820_v9 = vmax.f32 %v803_v42, 0.0 }
  0xe7   : > { %v6990_v60 = vpack.c.bf16 %v1106_v59, %v1105_v22  ;;  %v3722_v34 = vrot.slane %v3657_v49, 4  ;;  %v3724_v61 = vrot.slane %v3658_v47, 4  ;;  %v3725_v27 = vrot.slane %v3660_v43, 4  ;;  %v5793_v43 = vld [vmem:[%s9261_s11] sm:$0xff] }
  0xe8   : > { %1162 = vst.msk [vmem:[#allocation2 + $0xf0] sm:$0xee] %vm6526_vm14, %v9449_v24  ;;  %v9450_v59 = vrot.slane %v6662_v45, 7  ;;  %v3720_v15 = vsel %vm500_vm4, %v3718_v20, %v3719_v44  ;;  %v3727_v40 = vrot.slane %v3659_v11, 4  ;;  %v3728_v32 = vrot.slane %v3661_v21, 4  ;;  %5010 = vmatpush.bf16.msra.mxu0 %v5794_v53 }
  0xe9   : > { %v1137_v0 = vrot.slane %v6990_v60, 7  ;;  %v7009_v48 = vrot.slane %v9451_v57, 4  ;;  %v7011_v47 = vpack.c.bf16 %v820_v9, %v819_v8  ;;  %v3723_v49 = vsel %vm500_vm4, %v3721_v51, %v3722_v34  ;;  %v7033_v8 = vld [vmem:[#allocation2 + $0x30] sm:$0xee]  ;;  %v3466_v57 = vld [vmem:[%s9258_s8 + $0x8] sm:$0x3] }
  0xea   : > { %882 = vst.msk [vmem:[#allocation2 + $0x40] sm:$0xee] %vm6526_vm14, %v9450_v59  ;;  %v1061_v45 = vpop.f32.mrf.mxu2  ;;  %v1090_v35 = vpop.f32.mrf.mxu3  ;;  %v3726_v22 = vsel %vm500_vm4, %v3724_v61, %v3725_v27  ;;  %v9452_v46 = vrot.slane %v6705_v14, 7  ;;  %v3729_v21 = vsel %vm500_vm4, %v3727_v40, %v3728_v32  ;;  %v7036_v44 = vadd.f32 %v3720_v15, %v6755_v63  ;;  %v7044_v34 = vld [vmem:[#allocation2 + $0x30] sm:$0xff]  ;;  %v7052_v59 = vld [vmem:[#allocation2 + $0x38] sm:$0x11] }
  0xeb   : > { %v7021_v18 = vrot.slane %v1137_v0, 4  ;;  %v1062_v11 = vadd.f32 %v1061_v45, %v6581_v6  ;;  %v1091_v42 = vadd.f32 %v1090_v35, %v6583_v7  ;;  %v851_v14 = vrot.slane %v7011_v47, 7  ;;  %v775_v20 = vpop.f32.mrf.mxu0  ;;  %v804_v24 = vpop.f32.mrf.mxu1  ;;  %9454 = vst [vmem:[#allocation23_spill] sm:$0xff] %v7052_v59 }
  0xec   : > { %1164 = vst.msk [vmem:[#allocation2 + $0x100] sm:$0xee] %vm6526_vm14, %v9452_v46  ;;  %v7039_v51 = vadd.f32 %v3723_v49, %v6791_v52  ;;  %v7042_v9 = vadd.f32 %v3726_v22, %v6769_v16  ;;  %v776_v27 = vadd.f32 %v775_v20, %v6505_v55  ;;  %v805_v63 = vadd.f32 %v804_v24, %v6507_v56 }
  0xed   : > { %v1107_v61 = vmax.f32 %v1062_v11, 0.0  ;;  %v1108_v53 = vmax.f32 %v1091_v42, 0.0  ;;  %v7059_v16 = vrot.slane %v851_v14, 4  ;;  %v2376_v26 = vunpack.c.l.bf16 %v7033_v8  ;;  %5011 = vmatpush.bf16.msra.mxu0 %v5793_v43  ;;  %889 = vst.msk [vmem:[#allocation2 + $0x78] sm:$0x11] %vm6537_vm15, %v7009_v48 }
  0xee   : > { %v2377_v52 = vunpack.c.h.bf16 %v7033_v8  ;;  %v7064_v15 = vadd.f32 %v3729_v21, %v6802_v62  ;;  %v9455_v55 = vrot.slane %v6799_v29, 7  ;;  %v821_v40 = vmax.f32 %v776_v27, 0.0  ;;  %1170 = vst.msk [vmem:[#allocation2 + $0x130] sm:$0xee] %vm6526_vm14, %v1137_v0  ;;  %v9464_v0 = vld [vmem:[#allocation19_spill] sm:$0xff] }
  0xef   : > { %v7070_v56 = vpack.c.bf16 %v1108_v53, %v1107_v61  ;;  %v822_v28 = vmax.f32 %v805_v63, 0.0  ;;  %v9294_v32 = vunpack.c.l.bf16 %v7052_v59  ;;  %v9293_v62 = vunpack.c.h.bf16 %v7052_v59  ;;  %1171 = vst.msk [vmem:[#allocation2 + $0x138] sm:$0x11] %vm6537_vm15, %v7021_v18  ;;  %v9466_v18 = vld [vmem:[#allocation22_spill] sm:$0xff] }
  0xf0   : > { %1166 = vst.msk [vmem:[#allocation2 + $0x110] sm:$0xee] %vm6526_vm14, %v9455_v55  ;;  %v7083_v29 = vmul.f32 %v6698_v12, %v2376_v26  ;;  %v9300_v45 = vunpack.c.l.bf16 %v7044_v34  ;;  %v9299_v35 = vunpack.c.h.bf16 %v7044_v34  ;;  %v9457_v49 = vrot.slane %v6828_v2, 7 }
  0xf1   : > { %v1139_v22 = vrot.slane %v7070_v56, 7  ;;  %v7092_v17 = vpack.c.bf16 %v822_v28, %v821_v40  ;;  %v7095_v46 = vperm.slane %v6891_v38, 1  ;;  %v9458_v11 = vunpack.c.l.bf16 %v6879_v25  ;;  %890 = vst.msk [vmem:[#allocation2 + $0x80] sm:$0xee] %vm6526_vm14, %v851_v14 }
  0xf2   : > { %9456 = vst [vmem:[#allocation24_spill] sm:$0xff] %v7083_v29  ;;  %v1063_v43 = vpop.f32.mrf.mxu2  ;;  %v1092_v2 = vpop.f32.mrf.mxu3  ;;  %v7106_v21 = vmul.f32 %v6700_v13, %v2377_v52  ;;  %v3829_v38 = vmul.f32 %v6950_v10, %v9300_v45  ;;  %v7112_v24 = vperm.slane %v3466_v57, 0  ;;  %v9461_v4 = vrot.slane %v6902_v39, 7 }
  0xf3   : > { %886 = vst.msk [vmem:[#allocation2 + $0x60] sm:$0xee] %vm6526_vm14, %v9457_v49  ;;  %v3827_v42 = vmul.f32 %v6950_v10, %v9458_v11  ;;  %v1140_v30 = vrot.slane %v1139_v22, 4  ;;  %v853_v61 = vrot.slane %v7092_v17, 7  ;;  %v1064_v53 = vadd.f32 %v1063_v43, %v6581_v6  ;;  %v1328_v63 = vpop.f32.mrf.mxu0  ;;  %v1357_v55 = vpop.f32.mrf.mxu1 }
  0xf4   : > { %9459 = vst [vmem:[#allocation25_spill] sm:$0xff] %v7106_v21  ;;  %v1093_v27 = vadd.f32 %v1092_v2, %v6583_v7  ;;  %v9462_v56 = vunpack.c.h.bf16 %v6879_v25  ;;  %v3830_v40 = vmul.f32 %v7095_v46, %v9299_v35  ;;  %v3861_v49 = vrot.slane %v3829_v38, 6 }
  0xf5   : > { %9460 = vst [vmem:[#allocation26_spill] sm:$0xff] %v7112_v24  ;;  %v3859_v28 = vrot.slane %v3827_v42, 6  ;;  %v9463_v6 = vrot.slane %v6926_v5, 7  ;;  %v854_v7 = vrot.slane %v853_v61, 4  ;;  %v1109_v41 = vmax.f32 %v1064_v53, 0.0 }
  0xf6   : > { %1168 = vst.msk [vmem:[#allocation2 + $0x120] sm:$0xee] %vm6526_vm14, %v9461_v4  ;;  %v3828_v39 = vmul.f32 %v7095_v46, %v9462_v56  ;;  %v1110_v17 = vmax.f32 %v1093_v27, 0.0  ;;  %v1329_v11 = vadd.f32 %v1328_v63, %v6930_v54  ;;  %v1358_v43 = vadd.f32 %v1357_v55, %v6932_v36 }
  0xf7   : > { %888 = vst.msk [vmem:[#allocation2 + $0x70] sm:$0xee] %vm6526_vm14, %v9463_v6  ;;  %v3862_v42 = vrot.slane %v3830_v40, 6  ;;  %v7140_v38 = vadd.f32 %v3859_v28, %v6834_v37  ;;  %v7147_v53 = vadd.f32 %v3859_v28, %v6847_v50  ;;  %v7150_v27 = vadd.f32 %v3861_v49, %v6850_v23  ;;  %v9465_v23 = vld [vmem:[#allocation20_spill] sm:$0xff]  ;;  %v9470_v28 = vld [vmem:[#allocation11_spill] sm:$0xff] }
  0xf8   : > { %v3860_v2 = vrot.slane %v3828_v39, 6  ;;  %v1118_v5 = vpack.c.bf16 %v1110_v17, %v1109_v41  ;;  %v1377_v4 = vmax.f32 %v1329_v11, 0.0  ;;  %v1378_v48 = vmax.f32 %v1358_v43, 0.0  ;;  %891 = vst.msk [vmem:[#allocation2 + $0x88] sm:$0x11] %vm6537_vm15, %v7059_v16  ;;  %v9468_v39 = vld [vmem:[#allocation10_spill] sm:$0xff] }
  0xf9   : > { %v7162_v63 = vadd.f32 %v3862_v42, %v9464_v0  ;;  %v7169_v55 = vadd.f32 %v3861_v49, %v9465_v23  ;;  %v7172_v56 = vadd.f32 %v3862_v42, %v9466_v18  ;;  %v9469_v40 = vunpack.c.l.bf16 %v9468_v39  ;;  %1172 = vst.msk [vmem:[#allocation2 + $0x140] sm:$0xee] %vm6526_vm14, %v1139_v22 }
  0xfa   : > { %v7156_v37 = vadd.f32 %v3860_v2, %v6869_v31  ;;  %v7159_v60 = vadd.f32 %v3860_v2, %v6872_v33  ;;  %v1141_v50 = vrot.slane %v1118_v5, 7  ;;  %v7174_v31 = vperm.slane %v3466_v57, 1  ;;  %v4074_v2 = vld [vmem:[#allocation2 + $0x28] sm:$0x33]  ;;  %1173 = vst.msk [vmem:[#allocation2 + $0x148] sm:$0x11] %vm6537_vm15, %v1140_v30 }
  0xfb   : > { %v1393_v33 = vpack.c.bf16 %v1378_v48, %v1377_v4  ;;  %v3928_v47 = vmul.f32 %v7112_v24, %v9469_v40  ;;  %v9471_v14 = vunpack.c.l.bf16 %v9470_v28  ;;  %v3932_v49 = vmul.f32 %v7112_v24, %v2376_v26  ;;  %v4075_v4 = vld [vmem:[#allocation2 + $0x30] sm:$0xcc]  ;;  %892 = vst.msk [vmem:[#allocation2 + $0x90] sm:$0xee] %vm6526_vm14, %v853_v61 }
  0xfc   : > { %9467 = vst [vmem:[#allocation19_spill] sm:$0xff] %v7174_v31  ;;  %v1142_v57 = vrot.slane %v1141_v50, 4  ;;  %v9472_v41 = vunpack.c.h.bf16 %v9468_v39  ;;  %v9473_v17 = vunpack.c.h.bf16 %v9470_v28  ;;  %v3933_v43 = vmul.f32 %v7174_v31, %v2377_v52  ;;  %v3467_v39 = vld [vmem:[%s9258_s8 + $0xa] sm:$0x3] }
  0xfd   : > { %v3930_v6 = vmul.f32 %v7112_v24, %v9471_v14  ;;  %v1409_v26 = vrot.slane %v1393_v33, 7  ;;  %v3934_v22 = vmul.f32 %v7112_v24, %v9294_v32  ;;  %v3935_v42 = vmul.f32 %v7174_v31, %v9293_v62  ;;  %893 = vst.msk [vmem:[#allocation2 + $0x98] sm:$0x11] %vm6537_vm15, %v854_v7  ;;  %v9474_v14 = vld [vmem:[#allocation21_spill] sm:$0xff] }
  0xfe   : > { %v3929_v16 = vmul.f32 %v7174_v31, %v9472_v41  ;;  %v3931_v11 = vmul.f32 %v7174_v31, %v9473_v17  ;;  %v3993_v5 = vrot.slane %v3928_v47, 2  ;;  %v3999_v0 = vrot.slane %v3932_v49, 2  ;;  %1174 = vst.msk [vmem:[#allocation2 + $0x150] sm:$0xee] %vm6526_vm14, %v1141_v50  ;;  %v4076_v47 = vld [vmem:[#allocation2 + $0x38] sm:$0x33] }
  0xff   : > { %v3994_v8 = vrot.slane %v3930_v6, 2  ;;  %v1410_v30 = vrot.slane %v1409_v26, 4  ;;  %v4000_v23 = vrot.slane %v3934_v22, 2  ;;  %v4002_v18 = vrot.slane %v3933_v43, 2  ;;  %1175 = vst.msk [vmem:[#allocation2 + $0x158] sm:$0x11] %vm6537_vm15, %v1142_v57 }
 0x100   : > { %v3996_v52 = vrot.slane %v3929_v16, 2  ;;  %v3997_v48 = vrot.slane %v3931_v11, 2  ;;  %v4003_v33 = vrot.slane %v3935_v42, 2  ;;  %v4090_v6 = vunpack.c.h.bf16 %v9474_v14  ;;  %v7229_v17 = vld [vmem:[#allocation2 + $0x40] sm:$0xff]  ;;  %v7231_v11 = vld [vmem:[#allocation2 + $0x50] sm:$0xff] }
 0x101   : > { %v3995_v61 = vsel %vm3992_vm0, %v3993_v5, %v3994_v8  ;;  %v4091_v49 = vunpack.c.l.bf16 %v4074_v2  ;;  %v4001_v7 = vsel %vm3992_vm0, %v3999_v0, %v4000_v23  ;;  %1442 = vst.msk [vmem:[#allocation2 + $0x1a0] sm:$0xee] %vm6526_vm14, %v1409_v26  ;;  %v4092_v22 = vunpack.c.h.bf16 %v4074_v2 }
 0x102   : > { %v3998_v40 = vsel %vm3992_vm0, %v3996_v52, %v3997_v48  ;;  %v4004_v41 = vsel %vm3992_vm0, %v4002_v18, %v4003_v33  ;;  %v7224_v50 = vadd.f32 %v3995_v61, %v7036_v44  ;;  %v7236_v43 = vadd.f32 %v4001_v7, %v7042_v9  ;;  %1443 = vst.msk [vmem:[#allocation2 + $0x1a8] sm:$0x11] %vm6537_vm15, %v1410_v30 }
 0x103   : > { %v7227_v16 = vadd.f32 %v3998_v40, %v7039_v51  ;;  %v7239_v57 = vadd.f32 %v4004_v41, %v7064_v15  ;;  %v4093_v42 = vunpack.c.l.bf16 %v4075_v4  ;;  %v4094_v44 = vunpack.c.h.bf16 %v4075_v4 }
 0x104   : > { %v4095_v51 = vunpack.c.l.bf16 %v4076_v47  ;;  %v4096_v5 = vunpack.c.h.bf16 %v4076_v47  ;;  %v7243_v8 = vperm.slane %v3467_v39, 0  ;;  %v7245_v52 = vperm.slane %v3467_v39, 1 }
 0x105   : > { %v9298_v26 = vunpack.c.l.bf16 %v7229_v17  ;;  %v9297_v9 = vunpack.c.h.bf16 %v7229_v17  ;;  %v9296_v48 = vunpack.c.l.bf16 %v7231_v11  ;;  %v9477_v15 = vunpack.c.l.bf16 %v9474_v14 }
 0x106   : > { %9475 = vst [vmem:[#allocation20_spill] sm:$0xff] %v7243_v8  ;;  %v4128_v0 = vmul.f32 %v7243_v8, %v4091_v49  ;;  %v4130_v4 = vmul.f32 %v7243_v8, %v4093_v42  ;;  %v4132_v30 = vmul.f32 %v7243_v8, %v4095_v51  ;;  %v4127_v23 = vmul.f32 %v7245_v52, %v4090_v6  ;;  %v3468_v42 = vld [vmem:[%s9258_s8 + $0xc] sm:$0x3] }
 0x107   : > { %9476 = vst [vmem:[#allocation22_spill] sm:$0xff] %v7245_v52  ;;  %v4126_v2 = vmul.f32 %v7243_v8, %v9477_v15  ;;  %v4129_v18 = vmul.f32 %v7245_v52, %v4092_v22  ;;  %v4131_v33 = vmul.f32 %v7245_v52, %v4094_v44  ;;  %v4133_v39 = vmul.f32 %v7245_v52, %v4096_v5  ;;  %v4364_v5 = vld [vmem:[#allocation2 + $0x40] sm:$0xee] }
 0x108   : > { %v4191_v40 = vrot.slane %v4128_v0, 2  ;;  %v4196_v47 = vrot.slane %v4130_v4, 2  ;;  %v4197_v14 = vrot.slane %v4132_v30, 2  ;;  %v4193_v7 = vrot.slane %v4127_v23, 2  ;;  %v4365_v23 = vld [vmem:[#allocation2 + $0x48] sm:$0x11] }
 0x109   : > { %v4190_v61 = vrot.slane %v4126_v2, 2  ;;  %v4194_v41 = vrot.slane %v4129_v18, 2  ;;  %v4199_v15 = vrot.slane %v4131_v33, 2  ;;  %v4200_v49 = vrot.slane %v4133_v39, 2  ;;  %v4366_v18 = vld [vmem:[#allocation2 + $0x50] sm:$0xee] }
 0x10a   : > { %v4198_v22 = vsel %vm3992_vm0, %v4196_v47, %v4197_v14  ;;  %v4272_v44 = vadd.f32 %v4191_v40, %v7147_v53  ;;  %v4276_v51 = vadd.f32 %v4197_v14, %v7169_v55  ;;  %v3469_v55 = vld [vmem:[%s9258_s8 + $0xe] sm:$0x3]  ;;  %v7279_v47 = vperm.slane %v3468_v42, 0 }
 0x10b   : > { %v4192_v6 = vsel %vm3992_vm0, %v4190_v61, %v4191_v40  ;;  %v4195_v2 = vsel %vm3992_vm0, %v4193_v7, %v4194_v41  ;;  %v4201_v0 = vsel %vm3992_vm0, %v4199_v15, %v4200_v49  ;;  %v4273_v30 = vadd.f32 %v4194_v41, %v7159_v60  ;;  %v4367_v60 = vld [vmem:[#allocation2 + $0x58] sm:$0x11] }
 0x10c   : > { %v4270_v4 = vadd.f32 %v4192_v6, %v7140_v38  ;;  %v4271_v33 = vadd.f32 %v4195_v2, %v7156_v37  ;;  %v4274_v39 = vadd.f32 %v4198_v22, %v7150_v27  ;;  %v4275_v61 = vadd.f32 %v4201_v0, %v7162_v63  ;;  %9478 = vst [vmem:[#allocation10_spill] sm:$0xff] %v7279_v47  ;;  %v4481_v2 = vld [vmem:[#allocation2 + $0x40] sm:$0xcc]  ;;  %v4482_v0 = vld [vmem:[#allocation2 + $0x48] sm:$0x33] }
 0x10d   : > { %v4277_v53 = vadd.f32 %v4200_v49, %v7172_v56  ;;  %v9295_v40 = vunpack.c.h.bf16 %v7231_v11  ;;  %v7281_v38 = vperm.slane %v3468_v42, 1  ;;  %v4380_v14 = vunpack.c.l.bf16 %v4364_v5 }
 0x10e   : > { %v4381_v7 = vunpack.c.h.bf16 %v4364_v5  ;;  %v4382_v37 = vunpack.c.l.bf16 %v4365_v23  ;;  %v4383_v41 = vunpack.c.h.bf16 %v4365_v23  ;;  %v4384_v27 = vunpack.c.l.bf16 %v4366_v18  ;;  %v5792_v23 = vld [vmem:[%s9260_s10 + $0x58] sm:$0xff] }
 0x10f   : > { %9479 = vst [vmem:[#allocation21_spill] sm:$0xff] %v7281_v38  ;;  %v4332_v63 = vmul.f32 %v7279_v47, %v9298_v26  ;;  %v4333_v56 = vmul.f32 %v7281_v38, %v9297_v9  ;;  %v4334_v15 = vmul.f32 %v7279_v47, %v9296_v48  ;;  %v4335_v49 = vmul.f32 %v7281_v38, %v9295_v40 }
 0x110   : > { %v4385_v42 = vunpack.c.h.bf16 %v4366_v18  ;;  %v4386_v6 = vunpack.c.l.bf16 %v4367_v60  ;;  %v4387_v22 = vunpack.c.h.bf16 %v4367_v60  ;;  %v7295_v5 = vperm.slane %v3469_v55, 0  ;;  %5207 = vmatpush.bf16.msra.mxu3 %v5792_v23 }
 0x111   : > { %v7301_v20 = vadd.f32 %v4332_v63, %v7224_v50  ;;  %v7304_v62 = vadd.f32 %v4333_v56, %v7227_v16  ;;  %v7307_v32 = vadd.f32 %v4334_v15, %v7236_v43  ;;  %v7310_v18 = vadd.f32 %v4335_v49, %v7239_v57  ;;  %v5787_v43 = vld [vmem:[%s9260_s10 + $0x30] sm:$0xff] }
 0x112   : > { %9480 = vst [vmem:[#allocation27_spill] sm:$0xff] %v7295_v5  ;;  %v7312_v60 = vperm.slane %v3469_v55, 1  ;;  %v4417_v40 = vmul.f32 %v7295_v5, %v4380_v14  ;;  %v4419_v48 = vmul.f32 %v7295_v5, %v4382_v37  ;;  %v4421_v9 = vmul.f32 %v7295_v5, %v4384_v27  ;;  %v4483_v15 = vld [vmem:[#allocation2 + $0x50] sm:$0xcc]  ;;  %v4484_v27 = vld [vmem:[#allocation2 + $0x58] sm:$0x33]  ;;  %5175 = vmatpush.bf16.msra.mxu2 %v5787_v43 }
 0x113   : > { %v4423_v50 = vmul.f32 %v7295_v5, %v4386_v6  ;;  %v4497_v63 = vunpack.c.l.bf16 %v4481_v2  ;;  %v4498_v16 = vunpack.c.h.bf16 %v4481_v2  ;;  %v4499_v56 = vunpack.c.l.bf16 %v4482_v0  ;;  %v3470_v49 = vld [vmem:[%s9258_s8 + $0x10] sm:$0x3] }
 0x114   : > { %9481 = vst [vmem:[#allocation28_spill] sm:$0xff] %v7312_v60  ;;  %v4418_v57 = vmul.f32 %v7312_v60, %v4381_v7  ;;  %v4420_v55 = vmul.f32 %v7312_v60, %v4383_v41  ;;  %v4422_v14 = vmul.f32 %v7312_v60, %v4385_v42  ;;  %v4424_v37 = vmul.f32 %v7312_v60, %v4387_v22  ;;  %v5786_v7 = vld [vmem:[%s9260_s10 + $0x28] sm:$0xff] }
 0x115   : > { %v4449_v6 = vadd.f32 %v4417_v40, %v4270_v4  ;;  %v4451_v2 = vadd.f32 %v4419_v48, %v4272_v44  ;;  %v4453_v23 = vadd.f32 %v4421_v9, %v4274_v39  ;;  %v4455_v26 = vadd.f32 %v4423_v50, %v4276_v51  ;;  %v1610_v40 = vpop.f32.mrf.mxu2 }
 0x116   : > { %v4450_v41 = vadd.f32 %v4418_v57, %v4271_v33  ;;  %v4452_v35 = vadd.f32 %v4420_v55, %v4273_v30  ;;  %v4454_v42 = vadd.f32 %v4422_v14, %v4275_v61  ;;  %v4456_v45 = vadd.f32 %v4424_v37, %v4277_v53  ;;  %5176 = vmatpush.bf16.msra.mxu2 %v5786_v7  ;;  %v1330_v55 = vpop.f32.mrf.mxu0 }
 0x117   : > { %v4500_v22 = vunpack.c.h.bf16 %v4482_v0  ;;  %v4501_v29 = vunpack.c.l.bf16 %v4483_v15  ;;  %v4502_v59 = vunpack.c.h.bf16 %v4483_v15  ;;  %v4503_v28 = vunpack.c.l.bf16 %v4484_v27  ;;  %v1639_v0 = vpop.f32.mrf.mxu3 }
 0x118   : > { %v4504_v60 = vunpack.c.h.bf16 %v4484_v27  ;;  %v7331_v5 = vperm.slane %v3470_v49, 0  ;;  %v7333_v4 = vperm.slane %v3470_v49, 1  ;;  %v4710_v9 = vrot.slane %v4449_v6, 2 }
 0x119   : > { %v4711_v48 = vrot.slane %v4451_v2, 2  ;;  %v4713_v44 = vrot.slane %v4450_v41, 2  ;;  %v4714_v51 = vrot.slane %v4452_v35, 2  ;;  %v4716_v39 = vrot.slane %v4453_v23, 2 }
 0x11a   : > { %v4534_v33 = vmul.f32 %v7331_v5, %v4497_v63  ;;  %v4535_v30 = vmul.f32 %v7333_v4, %v4498_v16  ;;  %v4536_v61 = vmul.f32 %v7331_v5, %v4499_v56  ;;  %v4537_v53 = vmul.f32 %v7333_v4, %v4500_v22  ;;  %v1359_v16 = vpop.f32.mrf.mxu1 }
 0x11b   : > { %v4538_v50 = vmul.f32 %v7331_v5, %v4501_v29  ;;  %v4539_v43 = vmul.f32 %v7333_v4, %v4502_v59  ;;  %v4540_v57 = vmul.f32 %v7331_v5, %v4503_v28  ;;  %v4541_v35 = vmul.f32 %v7333_v4, %v4504_v60  ;;  %v4790_v60 = vld [vmem:[%s9259_s9] sm:$0x3] }
 0x11c   : > { %v4598_v14 = vrot.slane %v4534_v33, 4  ;;  %v4599_v37 = vrot.slane %v4536_v61, 4  ;;  %v4601_v63 = vrot.slane %v4535_v30, 4  ;;  %v4602_v15 = vrot.slane %v4537_v53, 4  ;;  %v1531_v33 = vld [vmem:[%s9255_s5] sm:$0x3] }
 0x11d   : > { %v4604_v27 = vrot.slane %v4538_v50, 4  ;;  %v4605_v56 = vrot.slane %v4540_v57, 4  ;;  %v4607_v49 = vrot.slane %v4539_v43, 4  ;;  %v4608_v6 = vrot.slane %v4541_v35, 4 }
 0x11e   : > { %v4600_v2 = vsel %vm500_vm4, %v4598_v14, %v4599_v37  ;;  %v4603_v29 = vsel %vm500_vm4, %v4601_v63, %v4602_v15  ;;  %v4712_v59 = vsel %vm3992_vm0, %v4710_v9, %v4711_v48  ;;  %v4715_v28 = vsel %vm3992_vm0, %v4713_v44, %v4714_v51  ;;  %v1612_v37 = vpop.f32.mrf.mxu2 }
 0x11f   : > { %v4606_v23 = vsel %vm500_vm4, %v4604_v27, %v4605_v56  ;;  %v4609_v7 = vsel %vm500_vm4, %v4607_v49, %v4608_v6  ;;  %v4662_v41 = vadd.f32 %v4600_v2, %v7301_v20  ;;  %v4663_v22 = vadd.f32 %v4603_v29, %v7304_v62  ;;  %v1641_v63 = vpop.f32.mrf.mxu3  ;;  %v1333_v6 = vpop.f32.mrf.mxu0 }
 0x120   : > { %v4664_v9 = vadd.f32 %v4606_v23, %v7307_v32  ;;  %v4665_v48 = vadd.f32 %v4609_v7, %v7310_v18  ;;  %v4717_v44 = vrot.slane %v4455_v26, 2  ;;  %v4719_v51 = vrot.slane %v4454_v42, 2 }
 0x121   : > { %v4720_v30 = vrot.slane %v4456_v45, 2  ;;  %v4774_v61 = vadd.f32 %v4712_v59, %v4662_v41  ;;  %v4775_v53 = vadd.f32 %v4715_v28, %v4663_v22  ;;  %v7359_v50 = vperm.slane %v4790_v60, 0 }
 0x122   : > { %v4718_v43 = vsel %vm3992_vm0, %v4716_v39, %v4717_v44  ;;  %v7362_v20 = vperm.slane %v4790_v60, 1  ;;  %v7364_v62 = vperm.slane %v1531_v33, 0  ;;  %v7366_v57 = vperm.slane %v1531_v33, 1  ;;  %v1362_v28 = vpop.f32.mrf.mxu1 }
 0x123   : > { %v4721_v35 = vsel %vm3992_vm0, %v4719_v51, %v4720_v30  ;;  %v4776_v32 = vadd.f32 %v4718_v43, %v4664_v9  ;;  %v4796_v18 = vadd.f32 %v7359_v50, %v4774_v61  ;;  %v1331_v26 = vadd.f32 %v1330_v55, %v6930_v54  ;;  %v7382_v43 = vld [vmem:[#allocation2 + $0x40] sm:$0xee] }
 0x124   : > { %v4777_v45 = vadd.f32 %v4721_v35, %v4665_v48  ;;  %v4797_v42 = vadd.f32 %v7362_v20, %v4775_v53  ;;  %v1611_v14 = vadd.f32 %v1610_v40, %v7364_v62  ;;  %v1640_v39 = vadd.f32 %v1639_v0, %v7366_v57 }
 0x125   : > { %v4798_v15 = vadd.f32 %v7359_v50, %v4776_v32  ;;  %v4812_v27 = vmax.f32 %v4796_v18, 0.0  ;;  %v1379_v56 = vmax.f32 %v1331_v26, 0.0  ;;  %v1360_v49 = vadd.f32 %v1359_v16, %v6932_v36 }
 0x126   : > { %v4799_v2 = vadd.f32 %v7362_v20, %v4777_v45  ;;  %v4813_v29 = vmax.f32 %v4797_v42, 0.0  ;;  %v1659_v55 = vmax.f32 %v1611_v14, 0.0  ;;  %v1660_v59 = vmax.f32 %v1640_v39, 0.0  ;;  %v7384_v45 = vld [vmem:[#allocation2 + $0x48] sm:$0x11] }
 0x127   : > { %v4814_v60 = vmax.f32 %v4798_v15, 0.0  ;;  %v1380_v23 = vmax.f32 %v1360_v49, 0.0  ;;  %v1613_v40 = vadd.f32 %v1612_v37, %v7364_v62  ;;  %v1642_v0 = vadd.f32 %v1641_v63, %v7366_v57  ;;  %9482 = vst [vmem:[#allocation29_spill] sm:$0xff] %v7384_v45  ;;  %v7388_v63 = vld [vmem:[#allocation2 + $0x50] sm:$0xee] }
 0x128   : > { %v4815_v7 = vmax.f32 %v4799_v2, 0.0  ;;  %v4828_v41 = vpack.c.bf16 %v4813_v29, %v4812_v27  ;;  %v1675_v22 = vpack.c.bf16 %v1660_v59, %v1659_v55  ;;  %v1334_v33 = vadd.f32 %v1333_v6, %v6930_v54  ;;  %v7392_v49 = vld [vmem:[#allocation2 + $0x58] sm:$0x11] }
 0x129   : > { %v1394_v9 = vpack.c.bf16 %v1380_v23, %v1379_v56  ;;  %v1661_v16 = vmax.f32 %v1613_v40, 0.0  ;;  %v1662_v48 = vmax.f32 %v1642_v0, 0.0  ;;  %v1363_v44 = vadd.f32 %v1362_v28, %v6932_v36  ;;  %9483 = vst [vmem:[#allocation30_spill] sm:$0xff] %v7392_v49 }
 0x12a   : > { %v4829_v30 = vpack.c.bf16 %v4815_v7, %v4814_v60  ;;  %v4892_v61 = vunpack.c.l.b16 %v4828_v41  ;;  %v1691_v53 = vrot.slane %v1675_v22, 7  ;;  %v1381_v18 = vmax.f32 %v1334_v33, 0.0  ;;  %v3520_v33 = vld [vmem:[#allocation2 + $0x20] sm:$0xee] }
 0x12b   : > { %v1411_v35 = vrot.slane %v1394_v9, 7  ;;  %v1676_v32 = vpack.c.bf16 %v1662_v48, %v1661_v16  ;;  %v1382_v26 = vmax.f32 %v1363_v44, 0.0  ;;  %v4893_v42 = vunpack.c.h.b16 %v4828_v41  ;;  %v3521_v9 = vld [vmem:[#allocation2 + $0x28] sm:$0x11] }
 0x12c   : > { %v4894_v14 = vunpack.c.l.b16 %v4829_v30  ;;  %v4895_v39 = vunpack.c.h.b16 %v4829_v30  ;;  %v1692_v37 = vrot.slane %v1691_v53, 4  ;;  %1724 = vst.msk [vmem:[#allocation2 + $0x260] sm:$0xee] %vm6526_vm14, %v1691_v53  ;;  %v9312_v6 = vunpack.c.l.bf16 %v7382_v43 }
 0x12d   : > { %v1412_v15 = vrot.slane %v1411_v35, 4  ;;  %1444 = vst.msk [vmem:[#allocation2 + $0x1b0] sm:$0xee] %vm6526_vm14, %v1411_v35  ;;  %v1693_v27 = vrot.slane %v1676_v32, 7  ;;  %v1395_v56 = vpack.c.bf16 %v1382_v26, %v1381_v18  ;;  %v9311_v55 = vunpack.c.h.bf16 %v7382_v43  ;;  %v9488_v32 = vld [vmem:[#allocation15_spill] sm:$0xff] }
 0x12e   : > { %v4908_v2 = vpack.c.b16 %v4894_v14, %v4892_v61  ;;  %v4909_v29 = vpack.c.b16 %v4895_v39, %v4893_v42  ;;  %1725 = vst.msk [vmem:[#allocation2 + $0x268] sm:$0x11] %vm6537_vm15, %v1692_v37  ;;  %v9310_v23 = vunpack.c.l.bf16 %v7388_v63  ;;  %v9309_v40 = vunpack.c.h.bf16 %v7388_v63  ;;  %v3522_v61 = vld [vmem:[#allocation2 + $0x30] sm:$0xee]  ;;  %v3523_v37 = vld [vmem:[#allocation2 + $0x38] sm:$0x11] }
 0x12f   : > { %1445 = vst.msk [vmem:[#allocation2 + $0x1b8] sm:$0x11] %vm6537_vm15, %v1412_v15  ;;  %v1694_v28 = vrot.slane %v1693_v27, 4  ;;  %v1413_v60 = vrot.slane %v1395_v56, 7  ;;  %v7411_v41 = vmul.f32 %v6698_v12, %v9312_v6  ;;  %v7416_v22 = vmul.f32 %v6700_v13, %v9311_v55  ;;  %v9490_v42 = vld [vmem:[#allocation16_spill] sm:$0xff] }
 0x130   : > { %5012 = vmatmul.bf16.vlgmr.msra.gmra.mxu0 %v4908_v2  ;;  %5688 = vmatmul.msk.bf16.vlgmr.msra.gmra.mxu1 %vm736_vm3, %v4909_v29  ;;  %1726 = vst.msk [vmem:[#allocation2 + $0x270] sm:$0xee] %vm6526_vm14, %v1693_v27  ;;  %v7424_v44 = vmul.f32 %v6698_v12, %v9310_v23  ;;  %v7429_v30 = vmul.f32 %v6700_v13, %v9309_v40  ;;  %v9489_v18 = vunpack.c.l.bf16 %v6879_v25  ;;  %v9491_v14 = vunpack.c.h.bf16 %v6879_v25  ;;  %v3606_v15 = vld [vmem:[#allocation2 + $0x28] sm:$0x33]  ;;  %v3607_v40 = vld [vmem:[#allocation2 + $0x30] sm:$0xcc] }
 0x131   : > { %9484 = vst [vmem:[#allocation31_spill] sm:$0xff] %v7411_v41  ;;  %v1414_v16 = vrot.slane %v1413_v60, 4  ;;  %v9492_v27 = vunpack.c.l.bf16 %v7044_v34  ;;  %v9493_v2 = vunpack.c.h.bf16 %v7044_v34  ;;  %v3543_v35 = vunpack.c.h.bf16 %v3521_v9  ;;  %v9495_v23 = vld [vmem:[#allocation18_spill] sm:$0xff] }
 0x132   : > { %9485 = vst [vmem:[#allocation32_spill] sm:$0xff] %v7416_v22  ;;  %v3504_v26 = vmul.f32 %v9489_v18, %v9488_v32  ;;  %v3505_v39 = vmul.f32 %v9491_v14, %v9490_v42  ;;  %v3542_v18 = vunpack.c.l.bf16 %v3521_v9  ;;  %v3544_v25 = vunpack.c.l.bf16 %v3522_v61  ;;  %v3605_v14 = vld [vmem:[#allocation2 + $0x20] sm:$0xcc] }
 0x133   : > { %1727 = vst.msk [vmem:[#allocation2 + $0x278] sm:$0x11] %vm6537_vm15, %v1694_v28  ;;  %v3506_v56 = vmul.f32 %v9492_v27, %v9488_v32  ;;  %v3507_v29 = vmul.f32 %v9493_v2, %v9490_v42  ;;  %v3540_v28 = vunpack.c.l.bf16 %v3520_v33  ;;  %v3545_v53 = vunpack.c.h.bf16 %v3522_v61 }
 0x134   : > { %9486 = vst [vmem:[#allocation33_spill] sm:$0xff] %v7424_v44  ;;  %v3546_v51 = vunpack.c.l.bf16 %v3523_v37  ;;  %v3547_v48 = vunpack.c.h.bf16 %v3523_v37  ;;  %v3580_v34 = vmul.f32 %v9495_v23, %v3543_v35  ;;  %v3625_v37 = vunpack.c.l.bf16 %v3605_v14 }
 0x135   : > { %9487 = vst [vmem:[#allocation34_spill] sm:$0xff] %v7429_v30  ;;  %v3582_v9 = vmul.f32 %v9495_v23, %v3545_v53  ;;  %v3626_v55 = vunpack.c.h.bf16 %v3605_v14  ;;  %v3628_v6 = vunpack.c.h.bf16 %v3606_v15  ;;  %v3629_v44 = vunpack.c.l.bf16 %v3607_v40 }
 0x136   : > { %1446 = vst.msk [vmem:[#allocation2 + $0x1c0] sm:$0xee] %vm6526_vm14, %v1413_v60  ;;  %v3541_v60 = vunpack.c.h.bf16 %v3520_v33  ;;  %v3608_v33 = vld [vmem:[#allocation2 + $0x38] sm:$0x33]  ;;  %v3584_v61 = vmul.f32 %v9495_v23, %v3547_v48  ;;  %v3630_v22 = vunpack.c.h.bf16 %v3607_v40 }
 0x137   : > { %1447 = vst.msk [vmem:[#allocation2 + $0x1c8] sm:$0x11] %vm6537_vm15, %v1414_v16  ;;  %v9494_v16 = vld [vmem:[#allocation17_spill] sm:$0xff]  ;;  %v3632_v41 = vunpack.c.h.bf16 %v3608_v33  ;;  %v3663_v35 = vmul.f32 %v6922_v58, %v3626_v55  ;;  %v3665_v53 = vmul.f32 %v6922_v58, %v3628_v6 }
 0x138   : > { %v3577_v7 = vmul.f32 %v9494_v16, %v3540_v28  ;;  %v3578_v0 = vmul.f32 %v9495_v23, %v3541_v60  ;;  %v3579_v27 = vmul.f32 %v9494_v16, %v3542_v18  ;;  %v3581_v2 = vmul.f32 %v9494_v16, %v3544_v25 }
 0x139   : > { %v3583_v59 = vmul.f32 %v9494_v16, %v3546_v51  ;;  %v3627_v28 = vunpack.c.l.bf16 %v3606_v15  ;;  %v3631_v60 = vunpack.c.l.bf16 %v3608_v33  ;;  %v3662_v18 = vmul.f32 %v6910_v19, %v3625_v37 }
 0x13a   : > { %v3666_v51 = vmul.f32 %v6910_v19, %v3629_v44  ;;  %v3667_v48 = vmul.f32 %v6922_v58, %v3630_v22  ;;  %v3669_v15 = vmul.f32 %v6922_v58, %v3632_v41  ;;  %v3733_v23 = vrot.slane %v3663_v35, 4 }
 0x13b   : > { %v3664_v25 = vmul.f32 %v6910_v19, %v3627_v28  ;;  %v3668_v14 = vmul.f32 %v6910_v19, %v3631_v60  ;;  %v3730_v21 = vrot.slane %v3662_v18, 4  ;;  %v3734_v33 = vrot.slane %v3665_v53, 4 }
 0x13c   : > { %v3736_v16 = vrot.slane %v3666_v51, 4  ;;  %v3739_v42 = vrot.slane %v3667_v48, 4  ;;  %v3740_v55 = vrot.slane %v3669_v15, 4  ;;  %v9496_v28 = vunpack.c.l.bf16 %v7229_v17 }
 0x13d   : > { %v3731_v40 = vrot.slane %v3664_v25, 4  ;;  %v3737_v37 = vrot.slane %v3668_v14, 4  ;;  %v3735_v22 = vsel %vm500_vm4, %v3733_v23, %v3734_v33  ;;  %v9497_v60 = vunpack.c.h.bf16 %v7229_v17 }
 0x13e   : > { %v3831_v6 = vmul.f32 %v9496_v28, %v6950_v10  ;;  %v9498_v18 = vunpack.c.l.bf16 %v7231_v11  ;;  %v3741_v53 = vsel %vm500_vm4, %v3739_v42, %v3740_v55  ;;  %v3787_v48 = vadd.f32 %v3735_v22, %v3505_v39 }
 0x13f   : > { %v3732_v44 = vsel %vm500_vm4, %v3730_v21, %v3731_v40  ;;  %v3832_v41 = vmul.f32 %v9497_v60, %v7095_v46  ;;  %v3738_v25 = vsel %vm500_vm4, %v3736_v16, %v3737_v37  ;;  %v3789_v15 = vadd.f32 %v3741_v53, %v3507_v29  ;;  %v4078_v53 = vld [vmem:[#allocation2 + $0x48] sm:$0x33] }
 0x140   : > { %v3833_v35 = vmul.f32 %v9498_v18, %v6950_v10  ;;  %v3786_v51 = vadd.f32 %v3732_v44, %v3504_v26  ;;  %v3788_v14 = vadd.f32 %v3738_v25, %v3506_v56  ;;  %v9499_v21 = vunpack.c.h.bf16 %v7231_v11 }
 0x141   : > { %v3863_v40 = vrot.slane %v3831_v6, 6  ;;  %v3864_v33 = vrot.slane %v3832_v41, 6  ;;  %v9500_v28 = vunpack.c.l.bf16 %v7382_v43  ;;  %v9501_v18 = vunpack.c.h.bf16 %v7382_v43 }
 0x142   : > { %v3834_v23 = vmul.f32 %v9499_v21, %v7095_v46  ;;  %v3865_v17 = vrot.slane %v3833_v35, 6  ;;  %v9502_v56 = vunpack.c.l.bf16 %v7384_v45  ;;  %v9503_v22 = vunpack.c.h.bf16 %v7384_v45  ;;  %v4077_v35 = vld [vmem:[#allocation2 + $0x40] sm:$0xcc]  ;;  %v4488_v45 = vld [vmem:[#allocation2 + $0x78] sm:$0x33] }
 0x143   : > { %v3936_v60 = vmul.f32 %v7112_v24, %v9500_v28  ;;  %v3937_v16 = vmul.f32 %v7174_v31, %v9501_v18  ;;  %v7488_v26 = vadd.f32 %v3863_v40, %v3577_v7  ;;  %v3901_v39 = vadd.f32 %v3863_v40, %v3579_v27 }
 0x144   : > { %v3866_v42 = vrot.slane %v3834_v23, 6  ;;  %v3938_v11 = vmul.f32 %v7112_v24, %v9502_v56  ;;  %v7493_v29 = vadd.f32 %v3864_v33, %v3578_v0  ;;  %v3902_v37 = vadd.f32 %v3864_v33, %v3580_v34 }
 0x145   : > { %v7495_v55 = vadd.f32 %v3865_v17, %v3581_v2  ;;  %v7497_v6 = vadd.f32 %v3865_v17, %v3583_v59  ;;  %v3939_v7 = vmul.f32 %v7174_v31, %v9503_v22  ;;  %v9504_v27 = vunpack.c.l.bf16 %v7388_v63 }
 0x146   : > { %v7499_v44 = vadd.f32 %v3866_v42, %v3582_v9  ;;  %v7501_v43 = vadd.f32 %v3866_v42, %v3584_v61  ;;  %v9505_v0 = vunpack.c.h.bf16 %v7388_v63  ;;  %v9506_v59 = vunpack.c.l.bf16 %v7392_v49  ;;  %v4079_v63 = vld [vmem:[#allocation2 + $0x50] sm:$0xcc] }
 0x147   : > { %v3940_v41 = vmul.f32 %v7112_v24, %v9504_v27  ;;  %v9507_v9 = vunpack.c.h.bf16 %v7392_v49  ;;  %v4005_v25 = vrot.slane %v3936_v60, 2  ;;  %v4006_v21 = vrot.slane %v3938_v11, 2  ;;  %v4080_v27 = vld [vmem:[#allocation2 + $0x58] sm:$0x33] }
 0x148   : > { %v3941_v34 = vmul.f32 %v7174_v31, %v9505_v0  ;;  %v3942_v2 = vmul.f32 %v7112_v24, %v9506_v59  ;;  %v4008_v23 = vrot.slane %v3937_v16, 2  ;;  %v4009_v40 = vrot.slane %v3939_v7, 2 }
 0x149   : > { %v3943_v61 = vmul.f32 %v7174_v31, %v9507_v9  ;;  %v4011_v33 = vrot.slane %v3940_v41, 2  ;;  %v4097_v42 = vunpack.c.l.bf16 %v4077_v35  ;;  %v4007_v56 = vsel %vm3992_vm0, %v4005_v25, %v4006_v21 }
 0x14a   : > { %v4012_v17 = vrot.slane %v3942_v2, 2  ;;  %v4014_v28 = vrot.slane %v3941_v34, 2  ;;  %v4010_v22 = vsel %vm3992_vm0, %v4008_v23, %v4009_v40  ;;  %v4098_v0 = vunpack.c.h.bf16 %v4077_v35 }
 0x14b   : > { %v4015_v18 = vrot.slane %v3943_v61, 2  ;;  %v4099_v59 = vunpack.c.l.bf16 %v4078_v53  ;;  %v4061_v11 = vadd.f32 %v4007_v56, %v3786_v51  ;;  %v7522_v16 = vadd.f32 %v4010_v22, %v3787_v48  ;;  %v7533_v48 = vld [vmem:[#allocation2 + $0x60] sm:$0xff] }
 0x14c   : > { %v4013_v9 = vsel %vm3992_vm0, %v4011_v33, %v4012_v17  ;;  %v4100_v34 = vunpack.c.h.bf16 %v4078_v53  ;;  %v4101_v2 = vunpack.c.l.bf16 %v4079_v63  ;;  %v4102_v61 = vunpack.c.h.bf16 %v4079_v63 }
 0x14d   : > { %v4016_v60 = vsel %vm3992_vm0, %v4014_v28, %v4015_v18  ;;  %v7524_v7 = vadd.f32 %v4013_v9, %v3788_v14  ;;  %v4103_v25 = vunpack.c.l.bf16 %v4080_v27  ;;  %v4104_v21 = vunpack.c.h.bf16 %v4080_v27 }
 0x14e   : > { %v7526_v41 = vadd.f32 %v4016_v60, %v3789_v15  ;;  %v4134_v23 = vmul.f32 %v7243_v8, %v4097_v42  ;;  %v4135_v35 = vmul.f32 %v7245_v52, %v4098_v0  ;;  %v4136_v40 = vmul.f32 %v7243_v8, %v4099_v59 }
 0x14f   : > { %v4137_v33 = vmul.f32 %v7245_v52, %v4100_v34  ;;  %v4138_v51 = vmul.f32 %v7243_v8, %v4101_v2  ;;  %v4139_v14 = vmul.f32 %v7245_v52, %v4102_v61  ;;  %v4140_v15 = vmul.f32 %v7243_v8, %v4103_v25  ;;  %v7541_v2 = vld [vmem:[#allocation2 + $0x70] sm:$0xff] }
 0x150   : > { %v4141_v53 = vmul.f32 %v7245_v52, %v4104_v21  ;;  %v4202_v17 = vrot.slane %v4134_v23, 2  ;;  %v4203_v28 = vrot.slane %v4136_v40, 2  ;;  %v4205_v18 = vrot.slane %v4135_v35, 2  ;;  %v4368_v35 = vld [vmem:[#allocation2 + $0x60] sm:$0xee] }
 0x151   : > { %v4206_v63 = vrot.slane %v4137_v33, 2  ;;  %v4208_v42 = vrot.slane %v4138_v51, 2  ;;  %v4209_v56 = vrot.slane %v4140_v15, 2  ;;  %v4211_v22 = vrot.slane %v4139_v14, 2  ;;  %v4369_v40 = vld [vmem:[#allocation2 + $0x68] sm:$0x11] }
 0x152   : > { %v4212_v27 = vrot.slane %v4141_v53, 2  ;;  %v9323_v0 = vunpack.c.l.bf16 %v7533_v48  ;;  %v4204_v59 = vsel %vm3992_vm0, %v4202_v17, %v4203_v28  ;;  %v4280_v60 = vadd.f32 %v4203_v28, %v3901_v39  ;;  %v4371_v17 = vld [vmem:[#allocation2 + $0x78] sm:$0x11] }
 0x153   : > { %v4207_v9 = vsel %vm3992_vm0, %v4205_v18, %v4206_v63  ;;  %v4281_v34 = vadd.f32 %v4206_v63, %v3902_v37  ;;  %v4210_v61 = vsel %vm3992_vm0, %v4208_v42, %v4209_v56  ;;  %v4278_v21 = vadd.f32 %v4204_v59, %v7488_v26 }
 0x154   : > { %v4213_v25 = vsel %vm3992_vm0, %v4211_v22, %v4212_v27  ;;  %v4279_v23 = vadd.f32 %v4207_v9, %v7493_v29  ;;  %v4282_v33 = vadd.f32 %v4210_v61, %v7495_v55  ;;  %v4284_v14 = vadd.f32 %v4209_v56, %v7497_v6  ;;  %v4370_v29 = vld [vmem:[#allocation2 + $0x70] sm:$0xee] }
 0x155   : > { %v4283_v51 = vadd.f32 %v4213_v25, %v7499_v44  ;;  %v4285_v39 = vadd.f32 %v4212_v27, %v7501_v43  ;;  %v9321_v37 = vunpack.c.h.bf16 %v7533_v48  ;;  %v9320_v15 = vunpack.c.l.bf16 %v7541_v2  ;;  %v5791_v6 = vld [vmem:[%s9260_s10 + $0x50] sm:$0xff]  ;;  %v5785_v43 = vld [vmem:[%s9260_s10 + $0x20] sm:$0xff]  ;;  %v5784_v25 = vld [vmem:[%s9260_s10 + $0x18] sm:$0xff] }
 0x156   : > { %v9322_v53 = vunpack.c.h.bf16 %v7541_v2  ;;  %v4336_v26 = vmul.f32 %v7279_v47, %v9323_v0  ;;  %v4388_v28 = vunpack.c.l.bf16 %v4368_v35  ;;  %v4389_v55 = vunpack.c.h.bf16 %v4368_v35  ;;  %5208 = vmatpush.bf16.msra.mxu3 %v5791_v6  ;;  %5177 = vmatpush.bf16.msra.mxu2 %v5785_v43  ;;  %v4485_v43 = vld [vmem:[#allocation2 + $0x60] sm:$0xcc] }
 0x157   : > { %v4390_v18 = vunpack.c.l.bf16 %v4369_v40  ;;  %v4391_v44 = vunpack.c.h.bf16 %v4369_v40  ;;  %v4337_v63 = vmul.f32 %v7281_v38, %v9321_v37  ;;  %v4338_v42 = vmul.f32 %v7279_v47, %v9320_v15  ;;  %v9508_v37 = vld [vmem:[#allocation27_spill] sm:$0xff] }
 0x158   : > { %v4339_v56 = vmul.f32 %v7281_v38, %v9322_v53  ;;  %v7572_v22 = vadd.f32 %v4336_v26, %v4061_v11  ;;  %v4392_v27 = vunpack.c.l.bf16 %v4370_v29  ;;  %v4393_v59 = vunpack.c.h.bf16 %v4370_v29  ;;  %v9509_v11 = vld [vmem:[#allocation28_spill] sm:$0xff] }
 0x159   : > { %v4394_v9 = vunpack.c.l.bf16 %v4371_v17  ;;  %v4395_v61 = vunpack.c.h.bf16 %v4371_v17  ;;  %v4353_v35 = vadd.f32 %v4337_v63, %v7522_v16  ;;  %v4354_v40 = vadd.f32 %v4338_v42, %v7524_v7  ;;  %v4486_v63 = vld [vmem:[#allocation2 + $0x68] sm:$0x33] }
 0x15a   : > { %v4355_v15 = vadd.f32 %v4339_v56, %v7526_v41  ;;  %v4425_v53 = vmul.f32 %v9508_v37, %v4388_v28  ;;  %v4426_v26 = vmul.f32 %v9509_v11, %v4389_v55  ;;  %v4427_v29 = vmul.f32 %v9508_v37, %v4390_v18  ;;  %v4487_v41 = vld [vmem:[#allocation2 + $0x70] sm:$0xcc]  ;;  %5178 = vmatpush.bf16.msra.mxu2 %v5784_v25 }
 0x15b   : > { %v4428_v17 = vmul.f32 %v9509_v11, %v4391_v44  ;;  %v4429_v6 = vmul.f32 %v9508_v37, %v4392_v27  ;;  %v4430_v0 = vmul.f32 %v9509_v11, %v4393_v59  ;;  %v4431_v49 = vmul.f32 %v9508_v37, %v4394_v9 }
 0x15c   : > { %v4432_v16 = vmul.f32 %v9509_v11, %v4395_v61  ;;  %v4457_v7 = vadd.f32 %v4425_v53, %v4278_v21  ;;  %v4458_v42 = vadd.f32 %v4426_v26, %v4279_v23  ;;  %v4459_v28 = vadd.f32 %v4427_v29, %v4280_v60  ;;  %v1615_v53 = vpop.f32.mrf.mxu2 }
 0x15d   : > { %v4460_v56 = vadd.f32 %v4428_v17, %v4281_v34  ;;  %v4461_v55 = vadd.f32 %v4429_v6, %v4282_v33  ;;  %v4462_v18 = vadd.f32 %v4430_v0, %v4283_v51  ;;  %v4463_v44 = vadd.f32 %v4431_v49, %v4284_v14  ;;  %v1644_v0 = vpop.f32.mrf.mxu3 }
 0x15e   : > { %v4464_v38 = vadd.f32 %v4432_v16, %v4285_v39  ;;  %v4505_v27 = vunpack.c.l.bf16 %v4485_v43  ;;  %v4506_v47 = vunpack.c.h.bf16 %v4485_v43  ;;  %v4507_v52 = vunpack.c.l.bf16 %v4486_v63  ;;  %v1364_v16 = vpop.f32.mrf.mxu1 }
 0x15f   : > { %v4508_v59 = vunpack.c.h.bf16 %v4486_v63  ;;  %v4509_v8 = vunpack.c.l.bf16 %v4487_v41  ;;  %v4510_v9 = vunpack.c.h.bf16 %v4487_v41  ;;  %v4511_v37 = vunpack.c.l.bf16 %v4488_v45 }
 0x160   : > { %v4512_v61 = vunpack.c.h.bf16 %v4488_v45  ;;  %v4542_v21 = vmul.f32 %v7331_v5, %v4505_v27  ;;  %v4543_v60 = vmul.f32 %v7333_v4, %v4506_v47  ;;  %v4544_v34 = vmul.f32 %v7331_v5, %v4507_v52  ;;  %v1335_v45 = vpop.f32.mrf.mxu0 }
 0x161   : > { %v4545_v23 = vmul.f32 %v7333_v4, %v4508_v59  ;;  %v4546_v49 = vmul.f32 %v7331_v5, %v4509_v8  ;;  %v4547_v33 = vmul.f32 %v7333_v4, %v4510_v9  ;;  %v4548_v51 = vmul.f32 %v7331_v5, %v4511_v37 }
 0x162   : > { %v4549_v14 = vmul.f32 %v7333_v4, %v4512_v61  ;;  %v4610_v39 = vrot.slane %v4542_v21, 4  ;;  %v4611_v25 = vrot.slane %v4544_v34, 4  ;;  %v4613_v26 = vrot.slane %v4543_v60, 4 }
 0x163   : > { %v4614_v29 = vrot.slane %v4545_v23, 4  ;;  %v4616_v17 = vrot.slane %v4546_v49, 4  ;;  %v4617_v47 = vrot.slane %v4548_v51, 4  ;;  %v4619_v6 = vrot.slane %v4547_v33, 4 }
 0x164   : > { %v4620_v52 = vrot.slane %v4549_v14, 4  ;;  %v4722_v43 = vrot.slane %v4457_v7, 2  ;;  %v4612_v8 = vsel %vm500_vm4, %v4610_v39, %v4611_v25  ;;  %v4723_v41 = vrot.slane %v4459_v28, 2 }
 0x165   : > { %v4615_v63 = vsel %vm500_vm4, %v4613_v26, %v4614_v29  ;;  %v4725_v27 = vrot.slane %v4458_v42, 2  ;;  %v4618_v37 = vsel %vm500_vm4, %v4616_v17, %v4617_v47  ;;  %v4666_v9 = vadd.f32 %v4612_v8, %v7572_v22 }
 0x166   : > { %v4621_v59 = vsel %vm500_vm4, %v4619_v6, %v4620_v52  ;;  %v4667_v61 = vadd.f32 %v4615_v63, %v4353_v35  ;;  %v4668_v21 = vadd.f32 %v4618_v37, %v4354_v40  ;;  %v4724_v34 = vsel %vm3992_vm0, %v4722_v43, %v4723_v41  ;;  %v1617_v40 = vpop.f32.mrf.mxu2 }
 0x167   : > { %v4669_v60 = vadd.f32 %v4621_v59, %v4355_v15  ;;  %v4726_v23 = vrot.slane %v4460_v56, 2  ;;  %v4728_v7 = vrot.slane %v4461_v55, 2  ;;  %v4729_v49 = vrot.slane %v4463_v44, 2  ;;  %v1646_v44 = vpop.f32.mrf.mxu3 }
 0x168   : > { %v4731_v33 = vrot.slane %v4462_v18, 2  ;;  %v4732_v51 = vrot.slane %v4464_v38, 2  ;;  %v4778_v28 = vadd.f32 %v4724_v34, %v4666_v9  ;;  %v1616_v42 = vadd.f32 %v1615_v53, %v7364_v62  ;;  %v1338_v17 = vpop.f32.mrf.mxu0 }
 0x169   : > { %v4727_v14 = vsel %vm3992_vm0, %v4725_v27, %v4726_v23  ;;  %v1645_v39 = vadd.f32 %v1644_v0, %v7366_v57  ;;  %v4730_v25 = vsel %vm3992_vm0, %v4728_v7, %v4729_v49  ;;  %v1336_v15 = vadd.f32 %v1335_v45, %v6930_v54  ;;  %v1367_v27 = vpop.f32.mrf.mxu1  ;;  %v3610_v23 = vld [vmem:[#allocation2 + $0x48] sm:$0x33] }
 0x16a   : > { %v4733_v22 = vsel %vm3992_vm0, %v4731_v33, %v4732_v51  ;;  %v4779_v35 = vadd.f32 %v4727_v14, %v4667_v61  ;;  %v4780_v56 = vadd.f32 %v4730_v25, %v4668_v21  ;;  %v4800_v18 = vadd.f32 %v7359_v50, %v4778_v28  ;;  %v7618_v51 = vld [vmem:[#allocation2 + $0x60] sm:$0xee]  ;;  %v7620_v14 = vld [vmem:[#allocation2 + $0x68] sm:$0x11] }
 0x16b   : > { %v4781_v55 = vadd.f32 %v4733_v22, %v4669_v60  ;;  %v1663_v38 = vmax.f32 %v1616_v42, 0.0  ;;  %v1664_v29 = vmax.f32 %v1645_v39, 0.0  ;;  %v1383_v53 = vmax.f32 %v1336_v15, 0.0  ;;  %9510 = vst [vmem:[#allocation15_spill] sm:$0xff] %v7620_v14 }
 0x16c   : > { %v4801_v26 = vadd.f32 %v7362_v20, %v4779_v35  ;;  %v1365_v0 = vadd.f32 %v1364_v16, %v6932_v36  ;;  %v4802_v47 = vadd.f32 %v7359_v50, %v4780_v56  ;;  %v4816_v52 = vmax.f32 %v4800_v18, 0.0  ;;  %v7624_v56 = vld [vmem:[#allocation2 + $0x70] sm:$0xee] }
 0x16d   : > { %v4803_v6 = vadd.f32 %v7362_v20, %v4781_v55  ;;  %v1618_v45 = vadd.f32 %v1617_v40, %v7364_v62  ;;  %v1677_v8 = vpack.c.bf16 %v1664_v29, %v1663_v38  ;;  %v1647_v41 = vadd.f32 %v1646_v44, %v7366_v57  ;;  %v7626_v55 = vld [vmem:[#allocation2 + $0x78] sm:$0x11] }
 0x16e   : > { %v4817_v43 = vmax.f32 %v4801_v26, 0.0  ;;  %v1384_v63 = vmax.f32 %v1365_v0, 0.0  ;;  %v4818_v37 = vmax.f32 %v4802_v47, 0.0  ;;  %v1339_v61 = vadd.f32 %v1338_v17, %v6930_v54  ;;  %9511 = vst [vmem:[#allocation28_spill] sm:$0xff] %v7626_v55  ;;  %v3475_v47 = vld [vmem:[#allocation2 + $0x40] sm:$0xff] }
 0x16f   : > { %v4819_v59 = vmax.f32 %v4803_v6, 0.0  ;;  %v1665_v9 = vmax.f32 %v1618_v45, 0.0  ;;  %v1695_v21 = vrot.slane %v1677_v8, 7  ;;  %v1666_v34 = vmax.f32 %v1647_v41, 0.0  ;;  %v3476_v8 = vld [vmem:[#allocation2 + $0x50] sm:$0xff] }
 0x170   : > { %v4830_v16 = vpack.c.bf16 %v4817_v43, %v4816_v52  ;;  %v1396_v60 = vpack.c.bf16 %v1384_v63, %v1383_v53  ;;  %v1385_v49 = vmax.f32 %v1339_v61, 0.0  ;;  %v1368_v33 = vadd.f32 %v1367_v27, %v6932_v36 }
 0x171   : > { %v4831_v7 = vpack.c.bf16 %v4819_v59, %v4818_v37  ;;  %v1696_v39 = vrot.slane %v1695_v21, 4  ;;  %1728 = vst.msk [vmem:[#allocation2 + $0x280] sm:$0xee] %vm6526_vm14, %v1695_v21  ;;  %v1678_v15 = vpack.c.bf16 %v1666_v34, %v1665_v9  ;;  %v9340_v38 = vunpack.c.l.bf16 %v7618_v51  ;;  %v3524_v21 = vld [vmem:[#allocation2 + $0x40] sm:$0xee] }
 0x172   : > { %v4896_v28 = vunpack.c.l.b16 %v4830_v16  ;;  %v4897_v42 = vunpack.c.h.b16 %v4830_v16  ;;  %v1415_v25 = vrot.slane %v1396_v60, 7  ;;  %v1386_v40 = vmax.f32 %v1368_v33, 0.0  ;;  %v3525_v60 = vld [vmem:[#allocation2 + $0x48] sm:$0x11]  ;;  %v3611_v59 = vld [vmem:[#allocation2 + $0x50] sm:$0xcc] }
 0x173   : > { %v4898_v22 = vunpack.c.l.b16 %v4831_v7  ;;  %v4899_v35 = vunpack.c.h.b16 %v4831_v7  ;;  %1729 = vst.msk [vmem:[#allocation2 + $0x288] sm:$0x11] %vm6537_vm15, %v1696_v39  ;;  %v9339_v44 = vunpack.c.h.bf16 %v7618_v51  ;;  %v1697_v0 = vrot.slane %v1678_v15, 7  ;;  %v9516_v15 = vld [vmem:[#allocation16_spill] sm:$0xff] }
 0x174   : > { %v1416_v18 = vrot.slane %v1415_v25, 4  ;;  %1448 = vst.msk [vmem:[#allocation2 + $0x1d0] sm:$0xee] %vm6526_vm14, %v1415_v25  ;;  %v1397_v17 = vpack.c.bf16 %v1386_v40, %v1385_v49  ;;  %v9338_v52 = vunpack.c.l.bf16 %v7624_v56  ;;  %v9337_v45 = vunpack.c.h.bf16 %v7624_v56 }
 0x175   : > { %v4910_v29 = vpack.c.b16 %v4898_v22, %v4896_v28  ;;  %v4911_v53 = vpack.c.b16 %v4899_v35, %v4897_v42  ;;  %v1698_v63 = vrot.slane %v1697_v0, 4  ;;  %1730 = vst.msk [vmem:[#allocation2 + $0x290] sm:$0xee] %vm6526_vm14, %v1697_v0  ;;  %v7647_v27 = vmul.f32 %v6698_v12, %v9340_v38  ;;  %v3526_v28 = vld [vmem:[#allocation2 + $0x50] sm:$0xee] }
 0x176   : > { %1449 = vst.msk [vmem:[#allocation2 + $0x1d8] sm:$0x11] %vm6537_vm15, %v1416_v18  ;;  %v1417_v41 = vrot.slane %v1397_v17, 7  ;;  %v7652_v37 = vmul.f32 %v6700_v13, %v9339_v44  ;;  %v7658_v9 = vmul.f32 %v6698_v12, %v9338_v52  ;;  %v3487_v61 = vunpack.c.l.bf16 %v3475_v47  ;;  %v3527_v35 = vld [vmem:[#allocation2 + $0x58] sm:$0x11] }
 0x177   : > { %5017 = vmatmul.bf16.gmra.mxu0 %v4910_v29  ;;  %5689 = vmatmul.msk.bf16.gmra.mxu1 %vm736_vm3, %v4911_v53  ;;  %9512 = vst [vmem:[#allocation35_spill] sm:$0xff] %v7647_v27  ;;  %v3488_v16 = vunpack.c.h.bf16 %v3475_v47  ;;  %v7665_v7 = vmul.f32 %v6700_v13, %v9337_v45  ;;  %v3489_v33 = vunpack.c.l.bf16 %v3476_v8  ;;  %v3490_v25 = vunpack.c.h.bf16 %v3476_v8 }
 0x178   : > { %9513 = vst [vmem:[#allocation36_spill] sm:$0xff] %v7652_v37  ;;  %v1418_v34 = vrot.slane %v1417_v41, 4  ;;  %v3508_v22 = vmul.f32 %v9488_v32, %v3487_v61  ;;  %v3548_v29 = vunpack.c.l.bf16 %v3524_v21  ;;  %v3549_v53 = vunpack.c.h.bf16 %v3524_v21  ;;  %v9517_v61 = vld [vmem:[#allocation17_spill] sm:$0xff] }
 0x179   : > { %9514 = vst [vmem:[#allocation37_spill] sm:$0xff] %v7658_v9  ;;  %v3509_v40 = vmul.f32 %v9516_v15, %v3488_v16  ;;  %v3510_v18 = vmul.f32 %v9488_v32, %v3489_v33  ;;  %v3511_v0 = vmul.f32 %v9516_v15, %v3490_v25  ;;  %v3550_v17 = vunpack.c.l.bf16 %v3525_v60  ;;  %v3612_v25 = vld [vmem:[#allocation2 + $0x58] sm:$0x33] }
 0x17a   : > { %1731 = vst.msk [vmem:[#allocation2 + $0x298] sm:$0x11] %vm6537_vm15, %v1698_v63  ;;  %v3551_v47 = vunpack.c.h.bf16 %v3525_v60  ;;  %v3552_v63 = vunpack.c.l.bf16 %v3526_v28  ;;  %v3553_v39 = vunpack.c.h.bf16 %v3526_v28  ;;  %v3554_v8 = vunpack.c.l.bf16 %v3527_v35 }
 0x17b   : > { %9515 = vst [vmem:[#allocation38_spill] sm:$0xff] %v7665_v7  ;;  %v3555_v42 = vunpack.c.h.bf16 %v3527_v35  ;;  %v3585_v49 = vmul.f32 %v9517_v61, %v3548_v29  ;;  %v3587_v16 = vmul.f32 %v9517_v61, %v3550_v17  ;;  %v3635_v29 = vunpack.c.l.bf16 %v3610_v23 }
 0x17c   : > { %1450 = vst.msk [vmem:[#allocation2 + $0x1e0] sm:$0xee] %vm6526_vm14, %v1417_v41  ;;  %v3609_v41 = vld [vmem:[#allocation2 + $0x40] sm:$0xcc]  ;;  %v3589_v21 = vmul.f32 %v9517_v61, %v3552_v63  ;;  %v3591_v45 = vmul.f32 %v9517_v61, %v3554_v8  ;;  %v3636_v6 = vunpack.c.h.bf16 %v3610_v23  ;;  %v3637_v26 = vunpack.c.l.bf16 %v3611_v59 }
 0x17d   : > { %1451 = vst.msk [vmem:[#allocation2 + $0x1e8] sm:$0x11] %vm6537_vm15, %v1418_v34  ;;  %v9518_v34 = vld [vmem:[#allocation18_spill] sm:$0xff]  ;;  %v3633_v35 = vunpack.c.l.bf16 %v3609_v41  ;;  %v3634_v52 = vunpack.c.h.bf16 %v3609_v41  ;;  %v3638_v44 = vunpack.c.h.bf16 %v3611_v59  ;;  %v3640_v38 = vunpack.c.h.bf16 %v3612_v25 }
 0x17e   : > { %v3586_v43 = vmul.f32 %v9518_v34, %v3549_v53  ;;  %v3588_v33 = vmul.f32 %v9518_v34, %v3551_v47  ;;  %v3590_v60 = vmul.f32 %v9518_v34, %v3553_v39  ;;  %v3592_v28 = vmul.f32 %v9518_v34, %v3555_v42 }
 0x17f   : > { %v3639_v53 = vunpack.c.l.bf16 %v3612_v25  ;;  %v3670_v17 = vmul.f32 %v6910_v19, %v3633_v35  ;;  %v3671_v47 = vmul.f32 %v6922_v58, %v3634_v52  ;;  %v3672_v63 = vmul.f32 %v6910_v19, %v3635_v29 }
 0x180   : > { %v3673_v39 = vmul.f32 %v6922_v58, %v3636_v6  ;;  %v3674_v8 = vmul.f32 %v6910_v19, %v3637_v26  ;;  %v3675_v42 = vmul.f32 %v6922_v58, %v3638_v44  ;;  %v3677_v23 = vmul.f32 %v6922_v58, %v3640_v38 }
 0x181   : > { %v3676_v41 = vmul.f32 %v6910_v19, %v3639_v53  ;;  %v3742_v9 = vrot.slane %v3670_v17, 4  ;;  %v3743_v59 = vrot.slane %v3672_v63, 4  ;;  %v3745_v37 = vrot.slane %v3671_v47, 4 }
 0x182   : > { %v3746_v25 = vrot.slane %v3673_v39, 4  ;;  %v3748_v27 = vrot.slane %v3674_v8, 4  ;;  %v3751_v30 = vrot.slane %v3675_v42, 4  ;;  %v3752_v52 = vrot.slane %v3677_v23, 4 }
 0x183   : > { %v3749_v35 = vrot.slane %v3676_v41, 4  ;;  %v9519_v29 = vunpack.c.l.bf16 %v7533_v48  ;;  %v3744_v26 = vsel %vm500_vm4, %v3742_v9, %v3743_v59  ;;  %v9520_v53 = vunpack.c.h.bf16 %v7533_v48 }
 0x184   : > { %v3747_v44 = vsel %vm500_vm4, %v3745_v37, %v3746_v25  ;;  %v9521_v17 = vunpack.c.l.bf16 %v7541_v2  ;;  %v3753_v39 = vsel %vm500_vm4, %v3751_v30, %v3752_v52  ;;  %v3790_v8 = vadd.f32 %v3744_v26, %v3508_v22 }
 0x185   : > { %v3835_v6 = vmul.f32 %v9519_v29, %v6950_v10  ;;  %v3836_v38 = vmul.f32 %v9520_v53, %v7095_v46  ;;  %v3750_v63 = vsel %vm500_vm4, %v3748_v27, %v3749_v35  ;;  %v3791_v42 = vadd.f32 %v3747_v44, %v3509_v40 }
 0x186   : > { %v3837_v47 = vmul.f32 %v9521_v17, %v6950_v10  ;;  %v3792_v41 = vadd.f32 %v3750_v63, %v3510_v18  ;;  %v3793_v23 = vadd.f32 %v3753_v39, %v3511_v0  ;;  %v9522_v9 = vunpack.c.h.bf16 %v7541_v2  ;;  %v4082_v39 = vld [vmem:[#allocation2 + $0x68] sm:$0x33] }
 0x187   : > { %v3867_v59 = vrot.slane %v3835_v6, 6  ;;  %v3868_v25 = vrot.slane %v3836_v38, 6  ;;  %v9523_v29 = vunpack.c.l.bf16 %v7618_v51  ;;  %v9524_v17 = vunpack.c.h.bf16 %v7618_v51 }
 0x188   : > { %v3838_v37 = vmul.f32 %v9522_v9, %v7095_v46  ;;  %v3869_v48 = vrot.slane %v3837_v47, 6  ;;  %v9525_v18 = vunpack.c.l.bf16 %v7620_v14  ;;  %v9526_v44 = vunpack.c.h.bf16 %v7620_v14  ;;  %v4081_v47 = vld [vmem:[#allocation2 + $0x60] sm:$0xcc] }
 0x189   : > { %v3944_v53 = vmul.f32 %v7112_v24, %v9523_v29  ;;  %v3945_v27 = vmul.f32 %v7174_v31, %v9524_v17  ;;  %v7716_v22 = vadd.f32 %v3867_v59, %v3585_v49  ;;  %v3909_v40 = vadd.f32 %v3867_v59, %v3587_v16 }
 0x18a   : > { %v3870_v30 = vrot.slane %v3838_v37, 6  ;;  %v3946_v2 = vmul.f32 %v7112_v24, %v9525_v18  ;;  %v7721_v0 = vadd.f32 %v3868_v25, %v3586_v43  ;;  %v3910_v35 = vadd.f32 %v3868_v25, %v3588_v33 }
 0x18b   : > { %v7723_v52 = vadd.f32 %v3869_v48, %v3589_v21  ;;  %v7725_v6 = vadd.f32 %v3869_v48, %v3591_v45  ;;  %v3947_v49 = vmul.f32 %v7174_v31, %v9526_v44  ;;  %v9527_v16 = vunpack.c.l.bf16 %v7624_v56 }
 0x18c   : > { %v7727_v26 = vadd.f32 %v3870_v30, %v3590_v60  ;;  %v7729_v51 = vadd.f32 %v3870_v30, %v3592_v28  ;;  %v9528_v43 = vunpack.c.h.bf16 %v7624_v56  ;;  %v9529_v45 = vunpack.c.l.bf16 %v7626_v55  ;;  %v4083_v56 = vld [vmem:[#allocation2 + $0x70] sm:$0xcc] }
 0x18d   : > { %v3948_v38 = vmul.f32 %v7112_v24, %v9527_v16  ;;  %v9530_v60 = vunpack.c.h.bf16 %v7626_v55  ;;  %v4017_v63 = vrot.slane %v3944_v53, 2  ;;  %v4018_v9 = vrot.slane %v3946_v2, 2  ;;  %v4084_v16 = vld [vmem:[#allocation2 + $0x78] sm:$0x33] }
 0x18e   : > { %v3949_v33 = vmul.f32 %v7174_v31, %v9528_v43  ;;  %v3950_v21 = vmul.f32 %v7112_v24, %v9529_v45  ;;  %v4020_v37 = vrot.slane %v3945_v27, 2  ;;  %v4021_v59 = vrot.slane %v3947_v49, 2 }
 0x18f   : > { %v3951_v28 = vmul.f32 %v7174_v31, %v9530_v60  ;;  %v4023_v25 = vrot.slane %v3948_v38, 2  ;;  %v4105_v30 = vunpack.c.l.bf16 %v4081_v47  ;;  %v4019_v18 = vsel %vm3992_vm0, %v4017_v63, %v4018_v9 }
 0x190   : > { %v4024_v48 = vrot.slane %v3950_v21, 2  ;;  %v4026_v29 = vrot.slane %v3949_v33, 2  ;;  %v4022_v44 = vsel %vm3992_vm0, %v4020_v37, %v4021_v59  ;;  %v4106_v43 = vunpack.c.h.bf16 %v4081_v47  ;;  %v9531_v37 = vld [vmem:[#allocation20_spill] sm:$0xff]  ;;  %v9532_v47 = vld [vmem:[#allocation22_spill] sm:$0xff] }
 0x191   : > { %v4027_v17 = vrot.slane %v3951_v28, 2  ;;  %v4107_v45 = vunpack.c.l.bf16 %v4082_v39  ;;  %v4065_v2 = vadd.f32 %v4019_v18, %v3790_v8  ;;  %v7750_v27 = vadd.f32 %v4022_v44, %v3791_v42  ;;  %v7761_v42 = vld [vmem:[#allocation2 + $0x80] sm:$0xff] }
 0x192   : > { %v4025_v60 = vsel %vm3992_vm0, %v4023_v25, %v4024_v48  ;;  %v4108_v33 = vunpack.c.h.bf16 %v4082_v39  ;;  %v4109_v21 = vunpack.c.l.bf16 %v4083_v56  ;;  %v4110_v28 = vunpack.c.h.bf16 %v4083_v56 }
 0x193   : > { %v4028_v53 = vsel %vm3992_vm0, %v4026_v29, %v4027_v17  ;;  %v7752_v49 = vadd.f32 %v4025_v60, %v3792_v41  ;;  %v4111_v63 = vunpack.c.l.bf16 %v4084_v16  ;;  %v4112_v9 = vunpack.c.h.bf16 %v4084_v16 }
 0x194   : > { %v7754_v38 = vadd.f32 %v4028_v53, %v3793_v23  ;;  %v4142_v59 = vmul.f32 %v9531_v37, %v4105_v30  ;;  %v4143_v55 = vmul.f32 %v9532_v47, %v4106_v43  ;;  %v4144_v25 = vmul.f32 %v9531_v37, %v4107_v45 }
 0x195   : > { %v4145_v48 = vmul.f32 %v9532_v47, %v4108_v33  ;;  %v4146_v8 = vmul.f32 %v9531_v37, %v4109_v21  ;;  %v4147_v41 = vmul.f32 %v9532_v47, %v4110_v28  ;;  %v4148_v23 = vmul.f32 %v9531_v37, %v4111_v63  ;;  %v7769_v28 = vld [vmem:[#allocation2 + $0x90] sm:$0xff] }
 0x196   : > { %v4149_v39 = vmul.f32 %v9532_v47, %v4112_v9  ;;  %v4214_v29 = vrot.slane %v4142_v59, 2  ;;  %v4215_v17 = vrot.slane %v4144_v25, 2  ;;  %v4217_v56 = vrot.slane %v4143_v55, 2  ;;  %9533 = vst [vmem:[#allocation16_spill] sm:$0xff] %v7769_v28  ;;  %v4372_v25 = vld [vmem:[#allocation2 + $0x80] sm:$0xee] }
 0x197   : > { %v4218_v30 = vrot.slane %v4145_v48, 2  ;;  %v4220_v18 = vrot.slane %v4146_v8, 2  ;;  %v4221_v44 = vrot.slane %v4148_v23, 2  ;;  %v4223_v16 = vrot.slane %v4147_v41, 2  ;;  %v4373_v48 = vld [vmem:[#allocation2 + $0x88] sm:$0x11] }
 0x198   : > { %v4224_v43 = vrot.slane %v4149_v39, 2  ;;  %v9348_v45 = vunpack.c.l.bf16 %v7761_v42  ;;  %v4216_v60 = vsel %vm3992_vm0, %v4214_v29, %v4215_v17  ;;  %v4288_v33 = vadd.f32 %v4215_v17, %v3909_v40  ;;  %v4374_v17 = vld [vmem:[#allocation2 + $0x90] sm:$0xee]  ;;  %v4492_v47 = vld [vmem:[#allocation2 + $0x98] sm:$0x33] }
 0x199   : > { %v4219_v53 = vsel %vm3992_vm0, %v4217_v56, %v4218_v30  ;;  %v4289_v21 = vadd.f32 %v4218_v30, %v3910_v35  ;;  %v4222_v63 = vsel %vm3992_vm0, %v4220_v18, %v4221_v44  ;;  %v4286_v55 = vadd.f32 %v4216_v60, %v7716_v22  ;;  %v9534_v22 = vld [vmem:[#allocation10_spill] sm:$0xff]  ;;  %v4375_v56 = vld [vmem:[#allocation2 + $0x98] sm:$0x11] }
 0x19a   : > { %v4225_v9 = vsel %vm3992_vm0, %v4223_v16, %v4224_v43  ;;  %v4287_v59 = vadd.f32 %v4219_v53, %v7721_v0  ;;  %v4290_v8 = vadd.f32 %v4222_v63, %v7723_v52  ;;  %v4292_v23 = vadd.f32 %v4221_v44, %v7725_v6  ;;  %v5790_v6 = vld [vmem:[%s9260_s10 + $0x48] sm:$0xff]  ;;  %v9535_v44 = vld [vmem:[#allocation21_spill] sm:$0xff] }
 0x19b   : > { %v4291_v41 = vadd.f32 %v4225_v9, %v7727_v26  ;;  %v4293_v40 = vadd.f32 %v4224_v43, %v7729_v51  ;;  %v9347_v35 = vunpack.c.h.bf16 %v7761_v42  ;;  %v9349_v39 = vunpack.c.l.bf16 %v7769_v28  ;;  %v5783_v51 = vld [vmem:[%s9260_s10 + $0x10] sm:$0xff]  ;;  %5209 = vmatpush.bf16.msra.mxu3 %v5790_v6  ;;  %v4489_v6 = vld [vmem:[#allocation2 + $0x80] sm:$0xcc] }
 0x19c   : > { %v9353_v29 = vunpack.c.h.bf16 %v7769_v28  ;;  %v4340_v0 = vmul.f32 %v9534_v22, %v9348_v45  ;;  %v4396_v30 = vunpack.c.l.bf16 %v4372_v25  ;;  %v4397_v52 = vunpack.c.h.bf16 %v4372_v25  ;;  %5179 = vmatpush.bf16.msra.mxu2 %v5783_v51 }
 0x19d   : > { %v4398_v18 = vunpack.c.l.bf16 %v4373_v48  ;;  %v4399_v26 = vunpack.c.h.bf16 %v4373_v48  ;;  %v4341_v16 = vmul.f32 %v9535_v44, %v9347_v35  ;;  %v4342_v43 = vmul.f32 %v9534_v22, %v9349_v39  ;;  %v5782_v35 = vld [vmem:[%s9260_s10 + $0x8] sm:$0xff] }
 0x19e   : > { %v4343_v60 = vmul.f32 %v9535_v44, %v9353_v29  ;;  %v7800_v53 = vadd.f32 %v4340_v0, %v4065_v2  ;;  %v4400_v63 = vunpack.c.l.bf16 %v4374_v17  ;;  %v4401_v9 = vunpack.c.h.bf16 %v4374_v17  ;;  %v9536_v22 = vld [vmem:[#allocation27_spill] sm:$0xff] }
 0x19f   : > { %v4402_v25 = vunpack.c.l.bf16 %v4375_v56  ;;  %v4403_v48 = vunpack.c.h.bf16 %v4375_v56  ;;  %v4357_v45 = vadd.f32 %v4341_v16, %v7750_v27  ;;  %v4358_v39 = vadd.f32 %v4342_v43, %v7752_v49  ;;  %v4490_v16 = vld [vmem:[#allocation2 + $0x88] sm:$0x33] }
 0x1a0   : > { %v4359_v14 = vadd.f32 %v4343_v60, %v7754_v38  ;;  %v4433_v29 = vmul.f32 %v9536_v22, %v4396_v30  ;;  %v4434_v2 = vmul.f32 %v9509_v11, %v4397_v52  ;;  %v4435_v0 = vmul.f32 %v9536_v22, %v4398_v18  ;;  %v4491_v38 = vld [vmem:[#allocation2 + $0x90] sm:$0xcc]  ;;  %5180 = vmatpush.bf16.msra.mxu2 %v5782_v35 }
 0x1a1   : > { %v4436_v17 = vmul.f32 %v9509_v11, %v4399_v26  ;;  %v4437_v56 = vmul.f32 %v9536_v22, %v4400_v63  ;;  %v4438_v51 = vmul.f32 %v9509_v11, %v4401_v9  ;;  %v4439_v44 = vmul.f32 %v9536_v22, %v4402_v25 }
 0x1a2   : > { %v4440_v27 = vmul.f32 %v9509_v11, %v4403_v48  ;;  %v4465_v49 = vadd.f32 %v4433_v29, %v4286_v55  ;;  %v4466_v43 = vadd.f32 %v4434_v2, %v4287_v59  ;;  %v4467_v30 = vadd.f32 %v4435_v0, %v4288_v33  ;;  %v1620_v29 = vpop.f32.mrf.mxu2 }
 0x1a3   : > { %v4468_v60 = vadd.f32 %v4436_v17, %v4289_v21  ;;  %v4469_v52 = vadd.f32 %v4437_v56, %v4290_v8  ;;  %v4470_v18 = vadd.f32 %v4438_v51, %v4291_v41  ;;  %v4471_v26 = vadd.f32 %v4439_v44, %v4292_v23  ;;  %v1649_v41 = vpop.f32.mrf.mxu3 }
 0x1a4   : > { %v4472_v37 = vadd.f32 %v4440_v27, %v4293_v40  ;;  %v4513_v63 = vunpack.c.l.bf16 %v4489_v6  ;;  %v4514_v31 = vunpack.c.h.bf16 %v4489_v6  ;;  %v4515_v24 = vunpack.c.l.bf16 %v4490_v16  ;;  %v1369_v27 = vpop.f32.mrf.mxu1 }
 0x1a5   : > { %v4516_v9 = vunpack.c.h.bf16 %v4490_v16  ;;  %v4517_v28 = vunpack.c.l.bf16 %v4491_v38  ;;  %v4518_v25 = vunpack.c.h.bf16 %v4491_v38  ;;  %v4519_v22 = vunpack.c.l.bf16 %v4492_v47 }
 0x1a6   : > { %v4520_v48 = vunpack.c.h.bf16 %v4492_v47  ;;  %v4550_v55 = vmul.f32 %v7331_v5, %v4513_v63  ;;  %v4551_v33 = vmul.f32 %v7333_v4, %v4514_v31  ;;  %v4552_v21 = vmul.f32 %v7331_v5, %v4515_v24  ;;  %v1340_v47 = vpop.f32.mrf.mxu0 }
 0x1a7   : > { %v4553_v59 = vmul.f32 %v7333_v4, %v4516_v9  ;;  %v4554_v8 = vmul.f32 %v7331_v5, %v4517_v28  ;;  %v4555_v23 = vmul.f32 %v7333_v4, %v4518_v25  ;;  %v4556_v40 = vmul.f32 %v7331_v5, %v4519_v22 }
 0x1a8   : > { %v4557_v35 = vmul.f32 %v7333_v4, %v4520_v48  ;;  %v4622_v44 = vrot.slane %v4550_v55, 4  ;;  %v4623_v2 = vrot.slane %v4552_v21, 4  ;;  %v4625_v0 = vrot.slane %v4551_v33, 4 }
 0x1a9   : > { %v4626_v17 = vrot.slane %v4553_v59, 4  ;;  %v4628_v56 = vrot.slane %v4554_v8, 4  ;;  %v4629_v31 = vrot.slane %v4556_v40, 4  ;;  %v4631_v6 = vrot.slane %v4555_v23, 4 }
 0x1aa   : > { %v4632_v24 = vrot.slane %v4557_v35, 4  ;;  %v4734_v51 = vrot.slane %v4465_v49, 2  ;;  %v4624_v28 = vsel %vm500_vm4, %v4622_v44, %v4623_v2  ;;  %v4735_v38 = vrot.slane %v4467_v30, 2 }
 0x1ab   : > { %v4627_v16 = vsel %vm500_vm4, %v4625_v0, %v4626_v17  ;;  %v4737_v63 = vrot.slane %v4466_v43, 2  ;;  %v4630_v22 = vsel %vm500_vm4, %v4628_v56, %v4629_v31  ;;  %v4670_v25 = vadd.f32 %v4624_v28, %v7800_v53  ;;  %v1622_v53 = vpop.f32.mrf.mxu2 }
 0x1ac   : > { %v4633_v9 = vsel %vm500_vm4, %v4631_v6, %v4632_v24  ;;  %v4671_v48 = vadd.f32 %v4627_v16, %v4357_v45  ;;  %v4672_v55 = vadd.f32 %v4630_v22, %v4358_v39  ;;  %v4736_v21 = vsel %vm3992_vm0, %v4734_v51, %v4735_v38 }
 0x1ad   : > { %v4673_v33 = vadd.f32 %v4633_v9, %v4359_v14  ;;  %v4738_v59 = vrot.slane %v4468_v60, 2  ;;  %v4740_v49 = vrot.slane %v4469_v52, 2  ;;  %v4741_v8 = vrot.slane %v4471_v26, 2  ;;  %v1651_v26 = vpop.f32.mrf.mxu3 }
 0x1ae   : > { %v4743_v23 = vrot.slane %v4470_v18, 2  ;;  %v4744_v40 = vrot.slane %v4472_v37, 2  ;;  %v4782_v30 = vadd.f32 %v4736_v21, %v4670_v25  ;;  %v1621_v43 = vadd.f32 %v1620_v29, %v7364_v62  ;;  %v1343_v56 = vpop.f32.mrf.mxu0 }
 0x1af   : > { %v4739_v35 = vsel %vm3992_vm0, %v4737_v63, %v4738_v59  ;;  %v1650_v44 = vadd.f32 %v1649_v41, %v7366_v57  ;;  %v4742_v2 = vsel %vm3992_vm0, %v4740_v49, %v4741_v8  ;;  %v1341_v14 = vadd.f32 %v1340_v47, %v6930_v54  ;;  %v1372_v63 = vpop.f32.mrf.mxu1 }
 0x1b0   : > { %v4745_v45 = vsel %vm3992_vm0, %v4743_v23, %v4744_v40  ;;  %v4783_v39 = vadd.f32 %v4739_v35, %v4671_v48  ;;  %v4784_v60 = vadd.f32 %v4742_v2, %v4672_v55  ;;  %v4804_v18 = vadd.f32 %v7359_v50, %v4782_v30  ;;  %v7846_v40 = vld [vmem:[#allocation2 + $0x80] sm:$0xee]  ;;  %v7848_v35 = vld [vmem:[#allocation2 + $0x88] sm:$0x11] }
 0x1b1   : > { %v4785_v52 = vadd.f32 %v4745_v45, %v4673_v33  ;;  %v1667_v37 = vmax.f32 %v1621_v43, 0.0  ;;  %v1668_v17 = vmax.f32 %v1650_v44, 0.0  ;;  %v1387_v29 = vmax.f32 %v1341_v14, 0.0  ;;  %9537 = vst [vmem:[#allocation17_spill] sm:$0xff] %v7848_v35 }
 0x1b2   : > { %v4805_v0 = vadd.f32 %v7362_v20, %v4783_v39  ;;  %v1370_v41 = vadd.f32 %v1369_v27, %v6932_v36  ;;  %v4806_v31 = vadd.f32 %v7359_v50, %v4784_v60  ;;  %v4820_v24 = vmax.f32 %v4804_v18, 0.0  ;;  %v7852_v60 = vld [vmem:[#allocation2 + $0x90] sm:$0xee] }
 0x1b3   : > { %v4807_v6 = vadd.f32 %v7362_v20, %v4785_v52  ;;  %v1623_v47 = vadd.f32 %v1622_v53, %v7364_v62  ;;  %v1679_v28 = vpack.c.bf16 %v1668_v17, %v1667_v37  ;;  %v1652_v38 = vadd.f32 %v1651_v26, %v7366_v57  ;;  %v7854_v52 = vld [vmem:[#allocation2 + $0x98] sm:$0x11] }
 0x1b4   : > { %v4821_v51 = vmax.f32 %v4805_v0, 0.0  ;;  %v1388_v16 = vmax.f32 %v1370_v41, 0.0  ;;  %v4822_v22 = vmax.f32 %v4806_v31, 0.0  ;;  %v1344_v48 = vadd.f32 %v1343_v56, %v6930_v54  ;;  %9538 = vst [vmem:[#allocation18_spill] sm:$0xff] %v7854_v52  ;;  %v3477_v31 = vld [vmem:[#allocation2 + $0x60] sm:$0xff] }
 0x1b5   : > { %v4823_v9 = vmax.f32 %v4807_v6, 0.0  ;;  %v1669_v25 = vmax.f32 %v1623_v47, 0.0  ;;  %v1699_v55 = vrot.slane %v1679_v28, 7  ;;  %v1670_v21 = vmax.f32 %v1652_v38, 0.0  ;;  %v3478_v28 = vld [vmem:[#allocation2 + $0x70] sm:$0xff] }
 0x1b6   : > { %v4832_v27 = vpack.c.bf16 %v4821_v51, %v4820_v24  ;;  %v1398_v33 = vpack.c.bf16 %v1388_v16, %v1387_v29  ;;  %v1389_v8 = vmax.f32 %v1344_v48, 0.0  ;;  %v1373_v23 = vadd.f32 %v1372_v63, %v6932_v36 }
 0x1b7   : > { %v4833_v49 = vpack.c.bf16 %v4823_v9, %v4822_v22  ;;  %v1700_v44 = vrot.slane %v1699_v55, 4  ;;  %1732 = vst.msk [vmem:[#allocation2 + $0x2a0] sm:$0xee] %vm6526_vm14, %v1699_v55  ;;  %v1680_v14 = vpack.c.bf16 %v1670_v21, %v1669_v25  ;;  %v2396_v37 = vunpack.c.l.bf16 %v7846_v40  ;;  %v3528_v55 = vld [vmem:[#allocation2 + $0x60] sm:$0xee] }
 0x1b8   : > { %v4900_v30 = vunpack.c.l.b16 %v4832_v27  ;;  %v4901_v43 = vunpack.c.h.b16 %v4832_v27  ;;  %v1419_v2 = vrot.slane %v1398_v33, 7  ;;  %v1390_v53 = vmax.f32 %v1373_v23, 0.0  ;;  %v3529_v33 = vld [vmem:[#allocation2 + $0x68] sm:$0x11] }
 0x1b9   : > { %v4902_v45 = vunpack.c.l.b16 %v4833_v49  ;;  %v4903_v39 = vunpack.c.h.b16 %v4833_v49  ;;  %1733 = vst.msk [vmem:[#allocation2 + $0x2a8] sm:$0x11] %vm6537_vm15, %v1700_v44  ;;  %v2397_v26 = vunpack.c.h.bf16 %v7846_v40  ;;  %v9366_v0 = vunpack.c.l.bf16 %v7848_v35 }
 0x1ba   : > { %v1420_v18 = vrot.slane %v1419_v2, 4  ;;  %1452 = vst.msk [vmem:[#allocation2 + $0x1f0] sm:$0xee] %vm6526_vm14, %v1419_v2  ;;  %v1701_v41 = vrot.slane %v1680_v14, 7  ;;  %v1399_v56 = vpack.c.bf16 %v1390_v53, %v1389_v8  ;;  %v9365_v24 = vunpack.c.l.bf16 %v7852_v60  ;;  %v3615_v8 = vld [vmem:[#allocation2 + $0x70] sm:$0xcc] }
 0x1bb   : > { %v4912_v17 = vpack.c.b16 %v4902_v45, %v4900_v30  ;;  %v4913_v29 = vpack.c.b16 %v4903_v39, %v4901_v43  ;;  %v9364_v47 = vunpack.c.h.bf16 %v7852_v60  ;;  %v7875_v63 = vmul.f32 %v6698_v12, %v2396_v37  ;;  %v3530_v30 = vld [vmem:[#allocation2 + $0x70] sm:$0xee]  ;;  %v3531_v39 = vld [vmem:[#allocation2 + $0x78] sm:$0x11]  ;;  %v3614_v43 = vld [vmem:[#allocation2 + $0x68] sm:$0x33] }
 0x1bc   : > { %1453 = vst.msk [vmem:[#allocation2 + $0x1f8] sm:$0x11] %vm6537_vm15, %v1420_v18  ;;  %v1702_v16 = vrot.slane %v1701_v41, 4  ;;  %v1421_v38 = vrot.slane %v1399_v56, 7  ;;  %v7880_v22 = vmul.f32 %v6700_v13, %v2397_v26  ;;  %v7886_v25 = vmul.f32 %v6698_v12, %v9365_v24 }
 0x1bd   : > { %5022 = vmatmul.bf16.gmra.mxu0 %v4912_v17  ;;  %5690 = vmatmul.msk.bf16.gmra.mxu1 %vm736_vm3, %v4913_v29  ;;  %1734 = vst.msk [vmem:[#allocation2 + $0x2b0] sm:$0xee] %vm6526_vm14, %v1701_v41  ;;  %v3491_v48 = vunpack.c.l.bf16 %v3477_v31  ;;  %v3492_v27 = vunpack.c.h.bf16 %v3477_v31  ;;  %v7893_v49 = vmul.f32 %v6700_v13, %v9364_v47  ;;  %v3493_v23 = vunpack.c.l.bf16 %v3478_v28 }
 0x1be   : > { %9539 = vst [vmem:[#allocation39_spill] sm:$0xff] %v7875_v63  ;;  %v1422_v21 = vrot.slane %v1421_v38, 4  ;;  %v3494_v2 = vunpack.c.h.bf16 %v3478_v28  ;;  %v3556_v18 = vunpack.c.l.bf16 %v3528_v55  ;;  %v3557_v17 = vunpack.c.h.bf16 %v3528_v55 }
 0x1bf   : > { %9540 = vst [vmem:[#allocation40_spill] sm:$0xff] %v7880_v22  ;;  %v3512_v45 = vmul.f32 %v9488_v32, %v3491_v48  ;;  %v3513_v14 = vmul.f32 %v9516_v15, %v3492_v27  ;;  %v3514_v53 = vmul.f32 %v9488_v32, %v3493_v23  ;;  %v3558_v41 = vunpack.c.l.bf16 %v3529_v33 }
 0x1c0   : > { %9541 = vst [vmem:[#allocation41_spill] sm:$0xff] %v7886_v25  ;;  %v3515_v29 = vmul.f32 %v9516_v15, %v3494_v2  ;;  %v3559_v56 = vunpack.c.h.bf16 %v3529_v33  ;;  %v3560_v31 = vunpack.c.l.bf16 %v3530_v30  ;;  %v3562_v28 = vunpack.c.l.bf16 %v3531_v39  ;;  %v3616_v15 = vld [vmem:[#allocation2 + $0x78] sm:$0x33] }
 0x1c1   : > { %1735 = vst.msk [vmem:[#allocation2 + $0x2b8] sm:$0x11] %vm6537_vm15, %v1702_v16  ;;  %v3613_v16 = vld [vmem:[#allocation2 + $0x60] sm:$0xcc]  ;;  %v3563_v44 = vunpack.c.h.bf16 %v3531_v39  ;;  %v3593_v48 = vmul.f32 %v9517_v61, %v3556_v18  ;;  %v3595_v27 = vmul.f32 %v9517_v61, %v3558_v41  ;;  %v3643_v18 = vunpack.c.l.bf16 %v3614_v43 }
 0x1c2   : > { %9542 = vst [vmem:[#allocation42_spill] sm:$0xff] %v7893_v49  ;;  %v3596_v32 = vmul.f32 %v9518_v34, %v3559_v56  ;;  %v3597_v55 = vmul.f32 %v9517_v61, %v3560_v31  ;;  %v3599_v23 = vmul.f32 %v9517_v61, %v3562_v28  ;;  %v3641_v2 = vunpack.c.l.bf16 %v3613_v16 }
 0x1c3   : > { %1454 = vst.msk [vmem:[#allocation2 + $0x200] sm:$0xee] %vm6526_vm14, %v1421_v38  ;;  %v3561_v38 = vunpack.c.h.bf16 %v3530_v30  ;;  %v3600_v30 = vmul.f32 %v9518_v34, %v3563_v44  ;;  %v3642_v39 = vunpack.c.h.bf16 %v3613_v16  ;;  %v3644_v59 = vunpack.c.h.bf16 %v3614_v43 }
 0x1c4   : > { %1455 = vst.msk [vmem:[#allocation2 + $0x208] sm:$0x11] %vm6537_vm15, %v1422_v21  ;;  %v3594_v21 = vmul.f32 %v9518_v34, %v3557_v17  ;;  %v3645_v9 = vunpack.c.l.bf16 %v3615_v8  ;;  %v3646_v51 = vunpack.c.h.bf16 %v3615_v8  ;;  %v3647_v17 = vunpack.c.l.bf16 %v3616_v15 }
 0x1c5   : > { %v3598_v33 = vmul.f32 %v9518_v34, %v3561_v38  ;;  %v3648_v47 = vunpack.c.h.bf16 %v3616_v15  ;;  %v3678_v41 = vmul.f32 %v6910_v19, %v3641_v2  ;;  %v3679_v56 = vmul.f32 %v6922_v58, %v3642_v39 }
 0x1c6   : > { %v3680_v31 = vmul.f32 %v6910_v19, %v3643_v18  ;;  %v3681_v38 = vmul.f32 %v6922_v58, %v3644_v59  ;;  %v3682_v61 = vmul.f32 %v6910_v19, %v3645_v9  ;;  %v3683_v34 = vmul.f32 %v6922_v58, %v3646_v51 }
 0x1c7   : > { %v3684_v44 = vmul.f32 %v6910_v19, %v3647_v17  ;;  %v3685_v43 = vmul.f32 %v6922_v58, %v3648_v47  ;;  %v3754_v16 = vrot.slane %v3678_v41, 4  ;;  %v3757_v28 = vrot.slane %v3679_v56, 4  ;;  %v9545_v47 = vld [vmem:[#allocation16_spill] sm:$0xff] }
 0x1c8   : > { %v3755_v8 = vrot.slane %v3680_v31, 4  ;;  %v3758_v15 = vrot.slane %v3681_v38, 4  ;;  %v3760_v24 = vrot.slane %v3682_v61, 4  ;;  %v3763_v6 = vrot.slane %v3683_v34, 4 }
 0x1c9   : > { %v3761_v2 = vrot.slane %v3684_v44, 4  ;;  %v3764_v39 = vrot.slane %v3685_v43, 4  ;;  %v9543_v18 = vunpack.c.l.bf16 %v7761_v42  ;;  %v9544_v19 = vunpack.c.h.bf16 %v7761_v42 }
 0x1ca   : > { %v3756_v9 = vsel %vm500_vm4, %v3754_v16, %v3755_v8  ;;  %v3759_v51 = vsel %vm500_vm4, %v3757_v28, %v3758_v15  ;;  %v9546_v17 = vunpack.c.l.bf16 %v9545_v47  ;;  %v9547_v43 = vunpack.c.h.bf16 %v9545_v47  ;;  %v9548_v15 = vld [vmem:[#allocation26_spill] sm:$0xff] }
 0x1cb   : > { %v3839_v59 = vmul.f32 %v9543_v18, %v6950_v10  ;;  %v3840_v58 = vmul.f32 %v9544_v19, %v7095_v46  ;;  %v3762_v56 = vsel %vm500_vm4, %v3760_v24, %v3761_v2  ;;  %v3765_v31 = vsel %vm500_vm4, %v3763_v6, %v3764_v39  ;;  %v4086_v19 = vld [vmem:[#allocation2 + $0x88] sm:$0x33] }
 0x1cc   : > { %v3841_v41 = vmul.f32 %v9546_v17, %v6950_v10  ;;  %v3794_v38 = vadd.f32 %v3756_v9, %v3512_v45  ;;  %v3795_v61 = vadd.f32 %v3759_v51, %v3513_v14  ;;  %v3796_v34 = vadd.f32 %v3762_v56, %v3514_v53  ;;  %v9549_v10 = vld [vmem:[#allocation19_spill] sm:$0xff]  ;;  %v4085_v9 = vld [vmem:[#allocation2 + $0x80] sm:$0xcc] }
 0x1cd   : > { %v3797_v44 = vadd.f32 %v3765_v31, %v3515_v29  ;;  %v3842_v16 = vmul.f32 %v9547_v43, %v7095_v46  ;;  %v3871_v8 = vrot.slane %v3839_v59, 6  ;;  %v3872_v28 = vrot.slane %v3840_v58, 6 }
 0x1ce   : > { %v3873_v42 = vrot.slane %v3841_v41, 6  ;;  %v3952_v18 = vmul.f32 %v9548_v15, %v2396_v37  ;;  %v3953_v24 = vmul.f32 %v9549_v10, %v2397_v26  ;;  %v3954_v53 = vmul.f32 %v9548_v15, %v9366_v0 }
 0x1cf   : > { %v3874_v6 = vrot.slane %v3842_v16, 6  ;;  %v7944_v45 = vadd.f32 %v3871_v8, %v3593_v48  ;;  %v3917_v14 = vadd.f32 %v3871_v8, %v3595_v27  ;;  %v7949_v46 = vadd.f32 %v3872_v28, %v3594_v21 }
 0x1d0   : > { %v3918_v29 = vadd.f32 %v3872_v28, %v3596_v32  ;;  %v7951_v2 = vadd.f32 %v3873_v42, %v3597_v55  ;;  %v7953_v39 = vadd.f32 %v3873_v42, %v3599_v23  ;;  %v9550_v26 = vunpack.c.h.bf16 %v7848_v35  ;;  %v4088_v42 = vld [vmem:[#allocation2 + $0x98] sm:$0x33] }
 0x1d1   : > { %v7955_v37 = vadd.f32 %v3874_v6, %v3598_v33  ;;  %v7957_v40 = vadd.f32 %v3874_v6, %v3600_v30  ;;  %v9551_v27 = vunpack.c.l.bf16 %v7852_v60  ;;  %v9552_v21 = vunpack.c.h.bf16 %v7852_v60  ;;  %v4087_v60 = vld [vmem:[#allocation2 + $0x90] sm:$0xcc] }
 0x1d2   : > { %v3955_v48 = vmul.f32 %v9549_v10, %v9550_v26  ;;  %v9553_v55 = vunpack.c.l.bf16 %v7854_v52  ;;  %v9554_v23 = vunpack.c.h.bf16 %v7854_v52  ;;  %v4029_v51 = vrot.slane %v3952_v18, 2 }
 0x1d3   : > { %v3956_v59 = vmul.f32 %v9548_v15, %v9551_v27  ;;  %v3957_v32 = vmul.f32 %v9549_v10, %v9552_v21  ;;  %v4030_v58 = vrot.slane %v3954_v53, 2  ;;  %v4032_v47 = vrot.slane %v3953_v24, 2 }
 0x1d4   : > { %v3958_v33 = vmul.f32 %v9548_v15, %v9553_v55  ;;  %v3959_v30 = vmul.f32 %v9549_v10, %v9554_v23  ;;  %v4033_v17 = vrot.slane %v3955_v48, 2  ;;  %v4113_v16 = vunpack.c.l.bf16 %v4085_v9 }
 0x1d5   : > { %v4035_v41 = vrot.slane %v3956_v59, 2  ;;  %v4038_v31 = vrot.slane %v3957_v32, 2  ;;  %v4031_v8 = vsel %vm3992_vm0, %v4029_v51, %v4030_v58  ;;  %v4114_v15 = vunpack.c.h.bf16 %v4085_v9  ;;  %v9556_v9 = vld [vmem:[#allocation22_spill] sm:$0xff] }
 0x1d6   : > { %v4036_v56 = vrot.slane %v3958_v33, 2  ;;  %v4039_v43 = vrot.slane %v3959_v30, 2  ;;  %v4034_v28 = vsel %vm3992_vm0, %v4032_v47, %v4033_v17  ;;  %v4115_v6 = vunpack.c.l.bf16 %v4086_v19  ;;  %v9555_v33 = vld [vmem:[#allocation20_spill] sm:$0xff] }
 0x1d7   : > { %v4069_v53 = vadd.f32 %v4031_v8, %v3794_v38  ;;  %v7978_v24 = vadd.f32 %v4034_v28, %v3795_v61  ;;  %v4116_v27 = vunpack.c.h.bf16 %v4086_v19  ;;  %v4117_v59 = vunpack.c.l.bf16 %v4087_v60  ;;  %v4309_v61 = vld [vmem:[#allocation2 + $0xa0] sm:$0xff] }
 0x1d8   : > { %v4037_v10 = vsel %vm3992_vm0, %v4035_v41, %v4036_v56  ;;  %v4040_v18 = vsel %vm3992_vm0, %v4038_v31, %v4039_v43  ;;  %v4118_v21 = vunpack.c.h.bf16 %v4087_v60  ;;  %v4119_v32 = vunpack.c.l.bf16 %v4088_v42 }
 0x1d9   : > { %v7980_v26 = vadd.f32 %v4037_v10, %v3796_v34  ;;  %v7982_v48 = vadd.f32 %v4040_v18, %v3797_v44  ;;  %v4120_v55 = vunpack.c.h.bf16 %v4088_v42  ;;  %v4150_v23 = vmul.f32 %v9555_v33, %v4113_v16  ;;  %v4310_v10 = vld [vmem:[#allocation2 + $0xb0] sm:$0xff] }
 0x1da   : > { %v4151_v30 = vmul.f32 %v9556_v9, %v4114_v15  ;;  %v4152_v51 = vmul.f32 %v9555_v33, %v4115_v6  ;;  %v4153_v58 = vmul.f32 %v9556_v9, %v4116_v27  ;;  %v4154_v38 = vmul.f32 %v9555_v33, %v4117_v59 }
 0x1db   : > { %v4155_v34 = vmul.f32 %v9556_v9, %v4118_v21  ;;  %v4156_v44 = vmul.f32 %v9555_v33, %v4119_v32  ;;  %v4157_v19 = vmul.f32 %v9556_v9, %v4120_v55  ;;  %v4226_v47 = vrot.slane %v4150_v23, 2  ;;  %v4376_v32 = vld [vmem:[#allocation2 + $0xa0] sm:$0xee]  ;;  %v4377_v55 = vld [vmem:[#allocation2 + $0xa8] sm:$0x11] }
 0x1dc   : > { %v4227_v17 = vrot.slane %v4152_v51, 2  ;;  %v4229_v41 = vrot.slane %v4151_v30, 2  ;;  %v4230_v56 = vrot.slane %v4153_v58, 2  ;;  %v4232_v31 = vrot.slane %v4154_v38, 2  ;;  %v9557_v58 = vld [vmem:[#allocation10_spill] sm:$0xff] }
 0x1dd   : > { %v4233_v43 = vrot.slane %v4156_v44, 2  ;;  %v4235_v60 = vrot.slane %v4155_v34, 2  ;;  %v4236_v16 = vrot.slane %v4157_v19, 2  ;;  %v4323_v8 = vunpack.c.l.bf16 %v4309_v61  ;;  %v4378_v34 = vld [vmem:[#allocation2 + $0xb0] sm:$0xee] }
 0x1de   : > { %v4228_v28 = vsel %vm3992_vm0, %v4226_v47, %v4227_v17  ;;  %v4231_v42 = vsel %vm3992_vm0, %v4229_v41, %v4230_v56  ;;  %v4296_v15 = vadd.f32 %v4227_v17, %v3917_v14  ;;  %v4297_v6 = vadd.f32 %v4230_v56, %v3918_v29  ;;  %v4379_v44 = vld [vmem:[#allocation2 + $0xb8] sm:$0x11] }
 0x1df   : > { %v4234_v18 = vsel %vm3992_vm0, %v4232_v31, %v4233_v43  ;;  %v4237_v27 = vsel %vm3992_vm0, %v4235_v60, %v4236_v16  ;;  %v4294_v59 = vadd.f32 %v4228_v28, %v7944_v45  ;;  %v4295_v21 = vadd.f32 %v4231_v42, %v7949_v46  ;;  %v9559_v42 = vld [vmem:[#allocation27_spill] sm:$0xff] }
 0x1e0   : > { %v4298_v33 = vadd.f32 %v4234_v18, %v7951_v2  ;;  %v4299_v23 = vadd.f32 %v4237_v27, %v7955_v37  ;;  %v4300_v9 = vadd.f32 %v4233_v43, %v7953_v39  ;;  %v4301_v14 = vadd.f32 %v4236_v16, %v7957_v40  ;;  %v5789_v2 = vld [vmem:[%s9260_s10 + $0x40] sm:$0xff]  ;;  %v9558_v37 = vld [vmem:[#allocation21_spill] sm:$0xff] }
 0x1e1   : > { %v4324_v29 = vunpack.c.h.bf16 %v4309_v61  ;;  %v4325_v30 = vunpack.c.l.bf16 %v4310_v10  ;;  %v4326_v51 = vunpack.c.h.bf16 %v4310_v10  ;;  %v4344_v38 = vmul.f32 %v9557_v58, %v4323_v8  ;;  %v5781_v39 = vld [vmem:[%s9260_s10] sm:$0xff]  ;;  %5210 = vmatpush.bf16.msra.mxu3 %v5789_v2 }
 0x1e2   : > { %v4404_v45 = vunpack.c.l.bf16 %v4376_v32  ;;  %v4405_v19 = vunpack.c.h.bf16 %v4376_v32  ;;  %v4406_v46 = vunpack.c.l.bf16 %v4377_v55  ;;  %v4407_v47 = vunpack.c.h.bf16 %v4377_v55  ;;  %5181 = vmatpush.bf16.msra.mxu2 %v5781_v39  ;;  %v4493_v55 = vld [vmem:[#allocation2 + $0xa0] sm:$0xcc] }
 0x1e3   : > { %v4345_v40 = vmul.f32 %v9558_v37, %v4324_v29  ;;  %v4346_v61 = vmul.f32 %v9557_v58, %v4325_v30  ;;  %v4347_v17 = vmul.f32 %v9558_v37, %v4326_v51  ;;  %v8012_v41 = vadd.f32 %v4344_v38, %v4069_v53  ;;  %v4494_v51 = vld [vmem:[#allocation2 + $0xa8] sm:$0x33] }
 0x1e4   : > { %v4408_v56 = vunpack.c.l.bf16 %v4378_v34  ;;  %v4409_v31 = vunpack.c.h.bf16 %v4378_v34  ;;  %v4410_v43 = vunpack.c.l.bf16 %v4379_v44  ;;  %v4411_v60 = vunpack.c.h.bf16 %v4379_v44 }
 0x1e5   : > { %v4361_v16 = vadd.f32 %v4345_v40, %v7978_v24  ;;  %v4362_v8 = vadd.f32 %v4346_v61, %v7980_v26  ;;  %v4363_v28 = vadd.f32 %v4347_v17, %v7982_v48  ;;  %v4441_v10 = vmul.f32 %v9559_v42, %v4404_v45  ;;  %v4495_v48 = vld [vmem:[#allocation2 + $0xb0] sm:$0xcc]  ;;  %v4496_v45 = vld [vmem:[#allocation2 + $0xb8] sm:$0x33] }
 0x1e6   : > { %v4442_v18 = vmul.f32 %v9509_v11, %v4405_v19  ;;  %v4443_v27 = vmul.f32 %v9559_v42, %v4406_v46  ;;  %v4444_v53 = vmul.f32 %v9509_v11, %v4407_v47  ;;  %v4445_v32 = vmul.f32 %v9559_v42, %v4408_v56 }
 0x1e7   : > { %v4446_v29 = vmul.f32 %v9509_v11, %v4409_v31  ;;  %v4447_v30 = vmul.f32 %v9559_v42, %v4410_v43  ;;  %v4448_v24 = vmul.f32 %v9509_v11, %v4411_v60  ;;  %v4473_v26 = vadd.f32 %v4441_v10, %v4294_v59  ;;  %v1625_v59 = vpop.f32.mrf.mxu2 }
 0x1e8   : > { %v4474_v58 = vadd.f32 %v4442_v18, %v4295_v21  ;;  %v4475_v38 = vadd.f32 %v4443_v27, %v4296_v15  ;;  %v4476_v34 = vadd.f32 %v4444_v53, %v4297_v6  ;;  %v4477_v44 = vadd.f32 %v4445_v32, %v4298_v33 }
 0x1e9   : > { %v4478_v19 = vadd.f32 %v4446_v29, %v4299_v23  ;;  %v4479_v46 = vadd.f32 %v4447_v30, %v4300_v9  ;;  %v4480_v47 = vadd.f32 %v4448_v24, %v4301_v14  ;;  %v4521_v2 = vunpack.c.l.bf16 %v4493_v55  ;;  %v1654_v23 = vpop.f32.mrf.mxu3 }
 0x1ea   : > { %v4522_v39 = vunpack.c.h.bf16 %v4493_v55  ;;  %v4523_v37 = vunpack.c.l.bf16 %v4494_v51  ;;  %v4524_v40 = vunpack.c.h.bf16 %v4494_v51  ;;  %v4525_v61 = vunpack.c.l.bf16 %v4495_v48 }
 0x1eb   : > { %v4526_v17 = vunpack.c.h.bf16 %v4495_v48  ;;  %v4527_v56 = vunpack.c.l.bf16 %v4496_v45  ;;  %v4528_v31 = vunpack.c.h.bf16 %v4496_v45  ;;  %v4558_v11 = vmul.f32 %v7331_v5, %v4521_v2 }
 0x1ec   : > { %v4559_v21 = vmul.f32 %v7333_v4, %v4522_v39  ;;  %v4560_v15 = vmul.f32 %v7331_v5, %v4523_v37  ;;  %v4561_v6 = vmul.f32 %v7333_v4, %v4524_v40  ;;  %v4562_v33 = vmul.f32 %v7331_v5, %v4525_v61 }
 0x1ed   : > { %v4563_v9 = vmul.f32 %v7333_v4, %v4526_v17  ;;  %v4564_v14 = vmul.f32 %v7331_v5, %v4527_v56  ;;  %v4565_v43 = vmul.f32 %v7333_v4, %v4528_v31  ;;  %v4634_v60 = vrot.slane %v4558_v11, 4  ;;  %v1345_v17 = vpop.f32.mrf.mxu0 }
 0x1ee   : > { %v4635_v42 = vrot.slane %v4560_v15, 4  ;;  %v4637_v10 = vrot.slane %v4559_v21, 4  ;;  %v4638_v18 = vrot.slane %v4561_v6, 4  ;;  %v4640_v27 = vrot.slane %v4562_v33, 4  ;;  %v1374_v6 = vpop.f32.mrf.mxu1 }
 0x1ef   : > { %v4641_v53 = vrot.slane %v4564_v14, 4  ;;  %v4643_v32 = vrot.slane %v4563_v9, 4  ;;  %v4644_v55 = vrot.slane %v4565_v43, 4  ;;  %v4746_v29 = vrot.slane %v4473_v26, 2  ;;  %v8048_v43 = vld [vmem:[#allocation2 + $0x250] sm:$0xff] }
 0x1f0   : > { %v4636_v30 = vsel %vm500_vm4, %v4634_v60, %v4635_v42  ;;  %v4639_v24 = vsel %vm500_vm4, %v4637_v10, %v4638_v18  ;;  %v4747_v51 = vrot.slane %v4475_v38, 2  ;;  %v4749_v48 = vrot.slane %v4474_v58, 2 }
 0x1f1   : > { %v4642_v45 = vsel %vm500_vm4, %v4640_v27, %v4641_v53  ;;  %v4645_v5 = vsel %vm500_vm4, %v4643_v32, %v4644_v55  ;;  %v4674_v4 = vadd.f32 %v4636_v30, %v8012_v41  ;;  %v4675_v2 = vadd.f32 %v4639_v24, %v4361_v16  ;;  %v1656_v33 = vpop.f32.mrf.mxu3  ;;  %v8054_v55 = vld [vmem:[#allocation2 + $0x258] sm:$0x11] }
 0x1f2   : > { %v4676_v39 = vadd.f32 %v4642_v45, %v4362_v8  ;;  %v4677_v37 = vadd.f32 %v4645_v5, %v4363_v28  ;;  %v4748_v40 = vsel %vm3992_vm0, %v4746_v29, %v4747_v51  ;;  %v4750_v61 = vrot.slane %v4476_v34, 2  ;;  %v1627_v34 = vpop.f32.mrf.mxu2 }
 0x1f3   : > { %v4752_v26 = vrot.slane %v4477_v44, 2  ;;  %v4753_v56 = vrot.slane %v4479_v46, 2  ;;  %v4755_v31 = vrot.slane %v4478_v19, 2  ;;  %v4756_v11 = vrot.slane %v4480_v47, 2 }
 0x1f4   : > { %v4751_v38 = vsel %vm3992_vm0, %v4749_v48, %v4750_v61  ;;  %v4786_v58 = vadd.f32 %v4748_v40, %v4674_v4  ;;  %v1626_v21 = vadd.f32 %v1625_v59, %v7364_v62  ;;  %v1655_v15 = vadd.f32 %v1654_v23, %v7366_v57 }
 0x1f5   : > { %v4754_v41 = vsel %vm3992_vm0, %v4752_v26, %v4753_v56  ;;  %v4757_v16 = vsel %vm3992_vm0, %v4755_v31, %v4756_v11  ;;  %v4787_v8 = vadd.f32 %v4751_v38, %v4675_v2  ;;  %v1346_v28 = vadd.f32 %v1345_v17, %v6930_v54  ;;  %v1740_v17 = vld [vmem:[%s9256_s6] sm:$0x3]  ;;  %v1836_v38 = vld [vmem:[#allocation2 + $0x190] sm:$0xee] }
 0x1f6   : > { %v4788_v44 = vadd.f32 %v4754_v41, %v4676_v39  ;;  %v4789_v46 = vadd.f32 %v4757_v16, %v4677_v37  ;;  %v4808_v19 = vadd.f32 %v7359_v50, %v4786_v58  ;;  %v1671_v47 = vmax.f32 %v1626_v21, 0.0  ;;  %v1837_v58 = vld [vmem:[#allocation2 + $0x198] sm:$0x11] }
 0x1f7   : > { %v4809_v9 = vadd.f32 %v7362_v20, %v4787_v8  ;;  %v1672_v59 = vmax.f32 %v1655_v15, 0.0  ;;  %v1391_v14 = vmax.f32 %v1346_v28, 0.0  ;;  %v1375_v23 = vadd.f32 %v1374_v6, %v6932_v36 }
 0x1f8   : > { %v4810_v60 = vadd.f32 %v7359_v50, %v4788_v44  ;;  %v4811_v42 = vadd.f32 %v7362_v20, %v4789_v46  ;;  %v4824_v54 = vmax.f32 %v4808_v19, 0.0  ;;  %v1628_v10 = vadd.f32 %v1627_v34, %v7364_v62  ;;  %v8057_v20 = vld [vmem:[#allocation2 + $0x260] sm:$0xff]  ;;  %v8059_v62 = vld [vmem:[#allocation2 + $0x268] sm:$0x11] }
 0x1f9   : > { %v4825_v18 = vmax.f32 %v4809_v9, 0.0  ;;  %v1681_v27 = vpack.c.bf16 %v1672_v59, %v1671_v47  ;;  %v1392_v53 = vmax.f32 %v1375_v23, 0.0  ;;  %v1657_v32 = vadd.f32 %v1656_v33, %v7366_v57  ;;  %v1741_v34 = vld [vmem:[%s9256_s6 + $0x2] sm:$0x3] }
 0x1fa   : > { %v4826_v29 = vmax.f32 %v4810_v60, 0.0  ;;  %v4827_v30 = vmax.f32 %v4811_v42, 0.0  ;;  %v1673_v24 = vmax.f32 %v1628_v10, 0.0  ;;  %v1766_v36 = vunpack.c.l.bf16 %v8048_v43  ;;  %v1838_v19 = vld [vmem:[#allocation2 + $0x1a0] sm:$0xee] }
 0x1fb   : > { %v4834_v51 = vpack.c.bf16 %v4825_v18, %v4824_v54  ;;  %v1703_v48 = vrot.slane %v1681_v27, 7  ;;  %v1400_v50 = vpack.c.bf16 %v1392_v53, %v1391_v14  ;;  %v1674_v45 = vmax.f32 %v1657_v32, 0.0  ;;  %v1922_v42 = vld [vmem:[#allocation2 + $0x260] sm:$0xee]  ;;  %v1921_v27 = vld [vmem:[#allocation2 + $0x250] sm:$0xee] }
 0x1fc   : > { %v4835_v5 = vpack.c.bf16 %v4827_v30, %v4826_v29  ;;  %v1767_v4 = vunpack.c.h.bf16 %v8048_v43  ;;  %v1768_v57 = vunpack.c.l.bf16 %v8054_v55  ;;  %v1769_v2 = vunpack.c.h.bf16 %v8054_v55  ;;  %v1839_v43 = vld [vmem:[#allocation2 + $0x1a8] sm:$0x11] }
 0x1fd   : > { %v4904_v39 = vunpack.c.l.b16 %v4834_v51  ;;  %v4905_v37 = vunpack.c.h.b16 %v4834_v51  ;;  %v1704_v40 = vrot.slane %v1703_v48, 4  ;;  %1736 = vst.msk [vmem:[#allocation2 + $0x2c0] sm:$0xee] %vm6526_vm14, %v1703_v48  ;;  %v1423_v61 = vrot.slane %v1400_v50, 7 }
 0x1fe   : > { %v4906_v26 = vunpack.c.l.b16 %v4835_v5  ;;  %v4907_v56 = vunpack.c.h.b16 %v4835_v5  ;;  %v1682_v31 = vpack.c.bf16 %v1674_v45, %v1673_v24  ;;  %v9368_v11 = vunpack.c.l.bf16 %v8057_v20 }
 0x1ff   : > { %1737 = vst.msk [vmem:[#allocation2 + $0x2c8] sm:$0x11] %vm6537_vm15, %v1704_v40  ;;  %v1424_v21 = vrot.slane %v1423_v61, 4  ;;  %v9367_v15 = vunpack.c.h.bf16 %v8057_v20  ;;  %v1772_v6 = vunpack.c.l.bf16 %v8059_v62  ;;  %v1773_v41 = vunpack.c.h.bf16 %v8059_v62 }
 0x200   : > { %v4914_v16 = vpack.c.b16 %v4906_v26, %v4904_v39  ;;  %v4915_v8 = vpack.c.b16 %v4907_v56, %v4905_v37  ;;  %1456 = vst.msk [vmem:[#allocation2 + $0x210] sm:$0xee] %vm6526_vm14, %v1423_v61  ;;  %v1705_v28 = vrot.slane %v1682_v31, 7  ;;  %v8080_v44 = vperm.slane %v1740_v17, 0  ;;  %v2127_v39 = vld [vmem:[#allocation2 + $0xe0] sm:$0xff]  ;;  %v2129_v56 = vld [vmem:[#allocation2 + $0xf0] sm:$0xff] }
 0x201   : > { %1457 = vst.msk [vmem:[#allocation2 + $0x218] sm:$0x11] %vm6537_vm15, %v1424_v21  ;;  %v8084_v46 = vperm.slane %v1740_v17, 1  ;;  %v1852_v47 = vunpack.c.l.bf16 %v1836_v38  ;;  %v1853_v33 = vunpack.c.h.bf16 %v1836_v38  ;;  %v1854_v9 = vunpack.c.l.bf16 %v1837_v58  ;;  %v8134_v26 = vld [vmem:[#allocation2 + $0xe8] sm:$0x11] }
 0x202   : > { %5027 = vmatmul.bf16.gmra.mxu0 %v4914_v16  ;;  %5691 = vmatmul.msk.bf16.gmra.mxu1 %vm736_vm3, %v4915_v8  ;;  %v1706_v59 = vrot.slane %v1705_v28, 4  ;;  %1738 = vst.msk [vmem:[#allocation2 + $0x2d0] sm:$0xee] %vm6526_vm14, %v1705_v28  ;;  %v8090_v14 = vmul.f32 %v8080_v44, %v1766_v36  ;;  %v1805_v23 = vmul.f32 %v8080_v44, %v1768_v57  ;;  %v1855_v60 = vunpack.c.h.bf16 %v1837_v58 }
 0x203   : > { %v8096_v54 = vmul.f32 %v8084_v46, %v1767_v4  ;;  %v1806_v10 = vmul.f32 %v8084_v46, %v1769_v2  ;;  %v1807_v1 = vmul.f32 %v8080_v44, %v9368_v11  ;;  %v1808_v18 = vmul.f32 %v8084_v46, %v9367_v15 }
 0x204   : > { %1739 = vst.msk [vmem:[#allocation2 + $0x2d8] sm:$0x11] %vm6537_vm15, %v1706_v59  ;;  %v1809_v53 = vmul.f32 %v8080_v44, %v1772_v6  ;;  %v1810_v32 = vmul.f32 %v8084_v46, %v1773_v41  ;;  %v1856_v29 = vunpack.c.l.bf16 %v1838_v19  ;;  %v1857_v30 = vunpack.c.h.bf16 %v1838_v19 }
 0x205   : > { %v1858_v24 = vunpack.c.l.bf16 %v1839_v43  ;;  %v1859_v36 = vunpack.c.h.bf16 %v1839_v43  ;;  %v8115_v51 = vperm.slane %v1741_v34, 0  ;;  %v8117_v48 = vperm.slane %v1741_v34, 1 }
 0x206   : > { %v1929_v50 = vunpack.c.l.bf16 %v1921_v27  ;;  %v1930_v45 = vunpack.c.h.bf16 %v1921_v27  ;;  %v1931_v5 = vunpack.c.l.bf16 %v1922_v42  ;;  %v1932_v4 = vunpack.c.h.bf16 %v1922_v42 }
 0x207   : > { %v8123_v37 = vmul.f32 %v8115_v51, %v1852_v47  ;;  %v8126_v40 = vmul.f32 %v8117_v48, %v1853_v33  ;;  %v8129_v61 = vmul.f32 %v8115_v51, %v1854_v9  ;;  %v8132_v17 = vmul.f32 %v8117_v48, %v1855_v60 }
 0x208   : > { %v8137_v31 = vmul.f32 %v8115_v51, %v1856_v29  ;;  %v8140_v38 = vmul.f32 %v8117_v48, %v1857_v30  ;;  %v8143_v58 = vmul.f32 %v8115_v51, %v1858_v24  ;;  %v8146_v21 = vmul.f32 %v8117_v48, %v1859_v36 }
 0x209   : > { %v8148_v16 = vperm.slane %v1742_v3, 0  ;;  %v8150_v8 = vperm.slane %v1742_v3, 1  ;;  %v2143_v28 = vunpack.c.l.bf16 %v2127_v39  ;;  %v2144_v34 = vunpack.c.h.bf16 %v2127_v39 }
 0x20a   : > { %v2145_v19 = vunpack.c.l.bf16 %v8134_v26  ;;  %v2146_v47 = vunpack.c.h.bf16 %v8134_v26  ;;  %v2147_v33 = vunpack.c.l.bf16 %v2129_v56  ;;  %vm3348_vm4 = vsmask.f32 7440 }
 0x20b   : > { %v1950_v9 = vmul.f32 %v8148_v16, %v1929_v50  ;;  %v1951_v59 = vmul.f32 %v8150_v8, %v1930_v45  ;;  %v1952_v43 = vmul.f32 %v8148_v16, %v1768_v57  ;;  %v1953_v60 = vmul.f32 %v8150_v8, %v1769_v2  ;;  %vm8428_vm5 = vmor %vm3347_vm2, %vm3348_vm4 }
 0x20c   : > { %v1954_v42 = vmul.f32 %v8148_v16, %v1931_v5  ;;  %v1955_v27 = vmul.f32 %v8150_v8, %v1932_v4  ;;  %v1956_v29 = vmul.f32 %v8148_v16, %v1772_v6  ;;  %v1957_v30 = vmul.f32 %v8150_v8, %v1773_v41  ;;  %v1743_v5 = vld [vmem:[%s9256_s6 + $0x6] sm:$0x3]  ;;  %v8179_v41 = vld [vmem:[#allocation2 + $0xf8] sm:$0x11] }
 0x20d   : > { %v2015_v24 = vrot.slane %v1950_v9, 1  ;;  %v2016_v36 = vrot.slane %v1952_v43, 1  ;;  %v2018_v3 = vrot.slane %v1951_v59, 1  ;;  %v2019_v57 = vrot.slane %v1953_v60, 1 }
 0x20e   : > { %v2021_v50 = vrot.slane %v1954_v42, 1  ;;  %v2022_v55 = vrot.slane %v1956_v29, 1  ;;  %v2024_v45 = vrot.slane %v1955_v27, 1  ;;  %v2025_v2 = vrot.slane %v1957_v30, 1 }
 0x20f   : > { %v2017_v4 = vsel %vm2014_vm1, %v2015_v24, %v2016_v36  ;;  %v2020_v6 = vsel %vm2014_vm1, %v2018_v3, %v2019_v57  ;;  %v8175_v39 = vadd.f32 %v2016_v36, %v1805_v23  ;;  %v8177_v62 = vadd.f32 %v2019_v57, %v1806_v10  ;;  %v9560_v57 = vld [vmem:[#allocation11_spill] sm:$0xff] }
 0x210   : > { %v2023_v9 = vsel %vm2014_vm1, %v2021_v50, %v2022_v55  ;;  %v2026_v59 = vsel %vm2014_vm1, %v2024_v45, %v2025_v2  ;;  %v2095_v43 = vadd.f32 %v2017_v4, %v8090_v14  ;;  %v2096_v60 = vadd.f32 %v2020_v6, %v8096_v54 }
 0x211   : > { %v8185_v42 = vadd.f32 %v2023_v9, %v1807_v1  ;;  %v8187_v27 = vadd.f32 %v2026_v59, %v1808_v18  ;;  %v2101_v29 = vadd.f32 %v2022_v55, %v1809_v53  ;;  %v2102_v30 = vadd.f32 %v2025_v2, %v1810_v32  ;;  %v9563_v18 = vld [vmem:[#allocation23_spill] sm:$0xff] }
 0x212   : > { %v2148_v23 = vunpack.c.h.bf16 %v2129_v56  ;;  %v9369_v10 = vunpack.c.l.bf16 %v8179_v41  ;;  %v9370_v24 = vunpack.c.h.bf16 %v8179_v41  ;;  %v8191_v36 = vperm.slane %v1743_v5, 0 }
 0x213   : > { %v8193_v3 = vperm.slane %v1743_v5, 1  ;;  %v9561_v50 = vunpack.c.l.bf16 %v9560_v57  ;;  %v9562_v54 = vunpack.c.h.bf16 %v9560_v57  ;;  %v9564_v53 = vunpack.c.l.bf16 %v9563_v18 }
 0x214   : > { %v2180_v56 = vmul.f32 %v8191_v36, %v2143_v28  ;;  %v2182_v55 = vmul.f32 %v8191_v36, %v2145_v19  ;;  %v2184_v45 = vmul.f32 %v8191_v36, %v2147_v33  ;;  %v2186_v2 = vmul.f32 %v8191_v36, %v9369_v10 }
 0x215   : > { %v2411_v14 = vmul.f32 %v6698_v12, %v9561_v50  ;;  %v2412_v1 = vmul.f32 %v6700_v13, %v9562_v54  ;;  %v2415_v32 = vmul.f32 %v6698_v12, %v9564_v53  ;;  %v2181_v5 = vmul.f32 %v8193_v3, %v2144_v34 }
 0x216   : > { %v2183_v4 = vmul.f32 %v8193_v3, %v2146_v47  ;;  %v2185_v6 = vmul.f32 %v8193_v3, %v2148_v23  ;;  %v2187_v28 = vmul.f32 %v8193_v3, %v9370_v24  ;;  %v2244_v9 = vrot.slane %v2180_v56, 7 }
 0x217   : > { %v2246_v59 = vrot.slane %v2182_v55, 7  ;;  %v2250_v57 = vrot.slane %v2184_v45, 7  ;;  %v2252_v33 = vrot.slane %v2186_v2, 7  ;;  %v2245_v50 = vrot.slane %v2181_v5, 7  ;;  %v2585_v45 = vld [vmem:[#allocation2 + $0xe0] sm:$0xee] }
 0x218   : > { %v2248_v54 = vrot.slane %v2183_v4, 7  ;;  %v2251_v53 = vrot.slane %v2185_v6, 7  ;;  %v2254_v0 = vrot.slane %v2187_v28, 7  ;;  %v2324_v11 = vadd.f32 %v2244_v9, %v8123_v37  ;;  %v2586_v2 = vld [vmem:[#allocation2 + $0xf0] sm:$0xee] }
 0x219   : > { %v2247_v34 = vsel %vm876_vm12, %v2244_v9, %v2246_v59  ;;  %v2253_v15 = vsel %vm876_vm12, %v2250_v57, %v2252_v33  ;;  %v2328_v23 = vadd.f32 %v2250_v57, %v8137_v31  ;;  %v2325_v56 = vadd.f32 %v2245_v50, %v8126_v40 }
 0x21a   : > { %v2249_v10 = vsel %vm876_vm12, %v2245_v50, %v2248_v54  ;;  %v2255_v24 = vsel %vm876_vm12, %v2251_v53, %v2254_v0  ;;  %v2326_v55 = vadd.f32 %v2247_v34, %v8129_v61  ;;  %v2329_v4 = vadd.f32 %v2251_v53, %v8140_v38  ;;  %v9566_v38 = vld [vmem:[#allocation13_spill] sm:$0xff]  ;;  %v8247_v50 = vld [vmem:[#allocation2 + $0x268] sm:$0x11] }
 0x21b   : > { %v2327_v5 = vadd.f32 %v2249_v10, %v8132_v17  ;;  %v2330_v6 = vadd.f32 %v2253_v15, %v8143_v58  ;;  %v2331_v37 = vadd.f32 %v2255_v24, %v8146_v21  ;;  %v9565_v31 = vunpack.c.h.bf16 %v9563_v18  ;;  %v1745_v17 = vld [vmem:[%s9256_s6 + $0xa] sm:$0x3]  ;;  %v9568_v58 = vld [vmem:[#allocation14_spill] sm:$0xff]  ;;  %v9570_v18 = vld [vmem:[#allocation24_spill] sm:$0xff] }
 0x21c   : > { %v2474_v9 = vrot.slane %v2411_v14, 1  ;;  %v2477_v0 = vrot.slane %v2412_v1, 1  ;;  %v2480_v59 = vrot.slane %v2415_v32, 1  ;;  %v2593_v40 = vunpack.c.l.bf16 %v2585_v45 }
 0x21d   : > { %v2416_v28 = vmul.f32 %v6700_v13, %v9565_v31  ;;  %v2594_v57 = vunpack.c.h.bf16 %v2585_v45  ;;  %v2595_v61 = vunpack.c.l.bf16 %v2586_v2  ;;  %v2596_v33 = vunpack.c.h.bf16 %v2586_v2  ;;  %v8251_v2 = vld [vmem:[#allocation2 + $0x270] sm:$0xff]  ;;  %v8253_v31 = vld [vmem:[#allocation2 + $0x278] sm:$0x11] }
 0x21e   : > { %v9567_v10 = vrot.slane %v9566_v38, 1  ;;  %v9569_v21 = vrot.slane %v9568_v58, 1  ;;  %v9571_v14 = vrot.slane %v9570_v18, 1  ;;  %v2555_v34 = vadd.f32 %v2474_v9, %v8175_v39  ;;  %v9572_v38 = vld [vmem:[#allocation25_spill] sm:$0xff] }
 0x21f   : > { %v2483_v32 = vrot.slane %v2416_v28, 1  ;;  %v2556_v45 = vadd.f32 %v2477_v0, %v8177_v62  ;;  %v2559_v18 = vadd.f32 %v2480_v59, %v2101_v29 }
 0x220   : > { %v2475_v15 = vsel %vm2014_vm1, %v9567_v10, %v2474_v9  ;;  %v2478_v24 = vsel %vm2014_vm1, %v9569_v21, %v2477_v0  ;;  %v2481_v1 = vsel %vm2014_vm1, %v9571_v14, %v2480_v59  ;;  %v9573_v10 = vrot.slane %v9572_v38, 1  ;;  %v1746_v59 = vld [vmem:[%s9256_s6 + $0xc] sm:$0x3] }
 0x221   : > { %v2553_v54 = vadd.f32 %v2475_v15, %v2095_v43  ;;  %v2554_v53 = vadd.f32 %v2478_v24, %v2096_v60  ;;  %v2557_v21 = vadd.f32 %v2481_v1, %v8185_v42  ;;  %v2560_v28 = vadd.f32 %v2483_v32, %v2102_v30  ;;  %v2797_v15 = vld [vmem:[#allocation2 + $0x1b0] sm:$0xee] }
 0x222   : > { %v2484_v58 = vsel %vm2014_vm1, %v9573_v10, %v2483_v32  ;;  %v8260_v43 = vperm.slane %v1745_v17, 0  ;;  %v8262_v60 = vperm.slane %v1745_v17, 1  ;;  %v9577_v1 = vunpack.c.h.bf16 %v8179_v41  ;;  %v2795_v32 = vld [vmem:[#allocation2 + $0x1a0] sm:$0xee] }
 0x223   : > { %v2558_v14 = vadd.f32 %v2484_v58, %v8187_v27  ;;  %v2796_v58 = vld [vmem:[#allocation2 + $0x1a8] sm:$0x11]  ;;  %v8289_v39 = vperm.slane %v1746_v59, 0  ;;  %v2812_v25 = vunpack.c.h.bf16 %v2795_v32  ;;  %v2816_v35 = vunpack.c.h.bf16 %v2797_v15 }
 0x224   : > { %9574 = vst [vmem:[#allocation16_spill] sm:$0xff] %v8260_v43  ;;  %v2614_v42 = vmul.f32 %v8260_v43, %v2593_v40  ;;  %v2615_v29 = vmul.f32 %v8262_v60, %v2594_v57  ;;  %v2616_v27 = vmul.f32 %v8260_v43, %v2145_v19  ;;  %v2617_v30 = vmul.f32 %v8262_v60, %v2146_v47 }
 0x225   : > { %9575 = vst [vmem:[#allocation26_spill] sm:$0xff] %v8262_v60  ;;  %v2618_v17 = vmul.f32 %v8260_v43, %v2595_v61  ;;  %v2619_v24 = vmul.f32 %v8262_v60, %v2596_v33  ;;  %v9576_v40 = vunpack.c.l.bf16 %v8179_v41  ;;  %v2621_v19 = vmul.f32 %v8262_v60, %v9577_v1 }
 0x226   : > { %v2646_v26 = vadd.f32 %v2614_v42, %v2324_v11  ;;  %v2647_v38 = vadd.f32 %v2615_v29, %v2325_v56  ;;  %v2648_v47 = vadd.f32 %v2616_v27, %v2326_v55  ;;  %v2649_v10 = vadd.f32 %v2617_v30, %v2327_v5  ;;  %9578 = vst [vmem:[#allocation19_spill] sm:$0xff] %v8289_v39  ;;  %v1747_v29 = vld [vmem:[%s9256_s6 + $0xe] sm:$0x3] }
 0x227   : > { %v2620_v57 = vmul.f32 %v8260_v43, %v9576_v40  ;;  %v2650_v0 = vadd.f32 %v2618_v17, %v2328_v23  ;;  %v2651_v9 = vadd.f32 %v2619_v24, %v2329_v4  ;;  %v2653_v62 = vadd.f32 %v2621_v19, %v2331_v37  ;;  %v2798_v19 = vld [vmem:[#allocation2 + $0x1b8] sm:$0x11] }
 0x228   : > { %v9382_v33 = vunpack.c.h.bf16 %v8253_v31  ;;  %v8291_v40 = vperm.slane %v1746_v59, 1  ;;  %v2811_v41 = vunpack.c.l.bf16 %v2795_v32  ;;  %v2813_v1 = vunpack.c.l.bf16 %v2796_v58 }
 0x229   : > { %v2652_v61 = vadd.f32 %v2620_v57, %v2330_v6  ;;  %v2814_v22 = vunpack.c.h.bf16 %v2796_v58  ;;  %v2815_v11 = vunpack.c.l.bf16 %v2797_v15  ;;  %v9580_v56 = vunpack.c.l.bf16 %v8057_v20 }
 0x22a   : > { %9579 = vst [vmem:[#allocation20_spill] sm:$0xff] %v8291_v40  ;;  %v9581_v23 = vunpack.c.h.bf16 %v8057_v20  ;;  %v9582_v4 = vunpack.c.l.bf16 %v8247_v50  ;;  %v9583_v37 = vunpack.c.h.bf16 %v8247_v50  ;;  %v9584_v27 = vunpack.c.l.bf16 %v8251_v2 }
 0x22b   : > { %v2731_v55 = vmul.f32 %v8289_v39, %v9580_v56  ;;  %v9585_v20 = vunpack.c.h.bf16 %v8251_v2  ;;  %v9586_v17 = vunpack.c.l.bf16 %v8253_v31  ;;  %v2738_v57 = vmul.f32 %v8291_v40, %v9382_v33 }
 0x22c   : > { %v2732_v5 = vmul.f32 %v8291_v40, %v9581_v23  ;;  %v2733_v6 = vmul.f32 %v8289_v39, %v9582_v4  ;;  %v2734_v42 = vmul.f32 %v8291_v40, %v9583_v37  ;;  %v2735_v30 = vmul.f32 %v8289_v39, %v9584_v27  ;;  %v2912_v4 = vld [vmem:[#allocation2 + $0x260] sm:$0xee]  ;;  %v2913_v37 = vld [vmem:[#allocation2 + $0x270] sm:$0xee] }
 0x22d   : > { %v2736_v59 = vmul.f32 %v8291_v40, %v9585_v20  ;;  %v2737_v24 = vmul.f32 %v8289_v39, %v9586_v17  ;;  %v8320_v32 = vadd.f32 %v2731_v55, %v2553_v54  ;;  %v2770_v52 = vadd.f32 %v2738_v57, %v2560_v28 }
 0x22e   : > { %v8322_v58 = vadd.f32 %v2732_v5, %v2554_v53  ;;  %v2765_v56 = vadd.f32 %v2733_v6, %v2555_v34  ;;  %v2766_v23 = vadd.f32 %v2734_v42, %v2556_v45  ;;  %v2767_v27 = vadd.f32 %v2735_v30, %v2557_v21 }
 0x22f   : > { %v2768_v63 = vadd.f32 %v2736_v59, %v2558_v14  ;;  %v2769_v20 = vadd.f32 %v2737_v24, %v2559_v18  ;;  %v2817_v49 = vunpack.c.l.bf16 %v2798_v19  ;;  %v2818_v17 = vunpack.c.h.bf16 %v2798_v19  ;;  %v1748_v18 = vld [vmem:[%s9256_s6 + $0x10] sm:$0x3] }
 0x230   : > { %v8324_v7 = vperm.slane %v1747_v29, 0  ;;  %v8326_v39 = vperm.slane %v1747_v29, 1  ;;  %v2920_v33 = vunpack.c.l.bf16 %v2912_v4  ;;  %v2921_v54 = vunpack.c.h.bf16 %v2912_v4 }
 0x231   : > { %v2922_v55 = vunpack.c.l.bf16 %v2913_v37  ;;  %v2923_v59 = vunpack.c.h.bf16 %v2913_v37  ;;  %v8339_v24 = vperm.slane %v1748_v18, 0  ;;  %v8341_v57 = vperm.slane %v1748_v18, 1 }
 0x232   : > { %v2848_v53 = vmul.f32 %v8324_v7, %v2811_v41  ;;  %v2850_v34 = vmul.f32 %v8324_v7, %v2813_v1  ;;  %v2852_v45 = vmul.f32 %v8324_v7, %v2815_v11  ;;  %v2854_v21 = vmul.f32 %v8324_v7, %v2817_v49 }
 0x233   : > { %v2849_v28 = vmul.f32 %v8326_v39, %v2812_v25  ;;  %v2851_v14 = vmul.f32 %v8326_v39, %v2814_v22  ;;  %v2853_v15 = vmul.f32 %v8326_v39, %v2816_v35  ;;  %v2855_v5 = vmul.f32 %v8326_v39, %v2818_v17 }
 0x234   : > { %v2880_v6 = vadd.f32 %v2848_v53, %v2646_v26  ;;  %v2882_v41 = vadd.f32 %v2850_v34, %v2648_v47  ;;  %v2884_v42 = vadd.f32 %v2852_v45, %v2650_v0  ;;  %v2886_v1 = vadd.f32 %v2854_v21, %v2652_v61 }
 0x235   : > { %v2881_v29 = vadd.f32 %v2849_v28, %v2647_v38  ;;  %v2883_v11 = vadd.f32 %v2851_v14, %v2649_v10  ;;  %v2885_v30 = vadd.f32 %v2853_v15, %v2651_v9  ;;  %v2887_v49 = vadd.f32 %v2855_v5, %v2653_v62 }
 0x236   : > { %v3149_v25 = vrot.slane %v2880_v6, 1  ;;  %v3150_v19 = vrot.slane %v2882_v41, 1  ;;  %v3155_v35 = vrot.slane %v2884_v42, 1  ;;  %v2941_v17 = vmul.f32 %v8339_v24, %v2920_v33 }
 0x237   : > { %v3152_v22 = vrot.slane %v2881_v29, 1  ;;  %v3153_v4 = vrot.slane %v2883_v11, 1  ;;  %v2942_v26 = vmul.f32 %v8341_v57, %v2921_v54  ;;  %v9587_v0 = vunpack.c.l.bf16 %v8247_v50 }
 0x238   : > { %v9588_v62 = vunpack.c.h.bf16 %v8247_v50  ;;  %v2945_v47 = vmul.f32 %v8339_v24, %v2922_v55  ;;  %v2946_v10 = vmul.f32 %v8341_v57, %v2923_v59  ;;  %v9589_v61 = vunpack.c.l.bf16 %v8253_v31 }
 0x239   : > { %v2943_v38 = vmul.f32 %v8339_v24, %v9587_v0  ;;  %v9590_v33 = vunpack.c.h.bf16 %v8253_v31  ;;  %v3005_v53 = vrot.slane %v2941_v17, 1  ;;  %v3008_v45 = vrot.slane %v2942_v26, 1  ;;  %v3261_v0 = vld [vmem:[%s9257_s7] sm:$0x3] }
 0x23a   : > { %v2944_v9 = vmul.f32 %v8341_v57, %v9588_v62  ;;  %v2947_v37 = vmul.f32 %v8339_v24, %v9589_v61  ;;  %v3011_v18 = vrot.slane %v2945_v47, 1  ;;  %v3014_v28 = vrot.slane %v2946_v10, 1 }
 0x23b   : > { %v2948_v54 = vmul.f32 %v8341_v57, %v9590_v33  ;;  %v3006_v34 = vrot.slane %v2943_v38, 1  ;;  %v3151_v38 = vsel %vm2014_vm1, %v3149_v25, %v3150_v19  ;;  %v3158_v62 = vrot.slane %v2885_v30, 1 }
 0x23c   : > { %v3009_v21 = vrot.slane %v2944_v9, 1  ;;  %v3012_v50 = vrot.slane %v2947_v37, 1  ;;  %v3159_v9 = vrot.slane %v2887_v49, 1  ;;  %v8374_v33 = vperm.slane %v3261_v0, 1 }
 0x23d   : > { %v3015_v14 = vrot.slane %v2948_v54, 1  ;;  %v3007_v55 = vsel %vm2014_vm1, %v3005_v53, %v3006_v34  ;;  %v3087_v5 = vadd.f32 %v3006_v34, %v2765_v56  ;;  %v3154_v56 = vsel %vm2014_vm1, %v3152_v22, %v3153_v4  ;;  %v8383_v54 = vld [vmem:[#allocation2 + $0x278] sm:$0x11] }
 0x23e   : > { %v3010_v15 = vsel %vm2014_vm1, %v3008_v45, %v3009_v21  ;;  %v3088_v6 = vadd.f32 %v3009_v21, %v2766_v23  ;;  %v3013_v41 = vsel %vm2014_vm1, %v3011_v18, %v3012_v50  ;;  %v3085_v42 = vadd.f32 %v3007_v55, %v8320_v32  ;;  %v8386_v18 = vld [vmem:[#allocation2 + $0x280] sm:$0xff] }
 0x23f   : > { %v3016_v31 = vsel %vm2014_vm1, %v3014_v28, %v3015_v14  ;;  %v3086_v29 = vadd.f32 %v3010_v15, %v8322_v58  ;;  %v3089_v11 = vadd.f32 %v3013_v41, %v2767_v27  ;;  %v3091_v17 = vadd.f32 %v3012_v50, %v2769_v20  ;;  %v8388_v15 = vld [vmem:[#allocation2 + $0x288] sm:$0x11] }
 0x240   : > { %v3090_v59 = vadd.f32 %v3016_v31, %v2768_v63  ;;  %v3092_v26 = vadd.f32 %v3015_v14, %v2770_v52  ;;  %v3156_v23 = vrot.slane %v2886_v1, 1  ;;  %v3229_v47 = vadd.f32 %v3151_v38, %v3085_v42 }
 0x241   : > { %v3230_v10 = vadd.f32 %v3154_v56, %v3086_v29  ;;  %v3231_v32 = vadd.f32 %v3150_v19, %v3087_v5  ;;  %v3232_v27 = vadd.f32 %v3153_v4, %v3088_v6  ;;  %v8371_v20 = vperm.slane %v3261_v0, 0 }
 0x242   : > { %v3157_v58 = vsel %vm2014_vm1, %v3155_v35, %v3156_v23  ;;  %v3235_v63 = vadd.f32 %v3156_v23, %v3091_v17  ;;  %v3160_v52 = vsel %vm2014_vm1, %v3158_v62, %v3159_v9  ;;  %v3236_v37 = vadd.f32 %v3159_v9, %v3092_v26 }
 0x243   : > { %v3233_v61 = vadd.f32 %v3157_v58, %v3089_v11  ;;  %v3234_v25 = vadd.f32 %v3160_v52, %v3090_v59  ;;  %v3267_v1 = vadd.f32 %v8371_v20, %v3229_v47  ;;  %v3269_v30 = vadd.f32 %v8371_v20, %v3231_v32 }
 0x244   : > { %v3273_v49 = vadd.f32 %v8371_v20, %v3235_v63  ;;  %v3268_v19 = vadd.f32 %v8374_v33, %v3230_v10  ;;  %v3270_v22 = vadd.f32 %v8374_v33, %v3232_v27  ;;  %v3274_v35 = vadd.f32 %v8374_v33, %v3236_v37 }
 0x245   : > { %v3271_v4 = vadd.f32 %v8371_v20, %v3233_v61  ;;  %v3272_v53 = vadd.f32 %v8374_v33, %v3234_v25  ;;  %v3299_v34 = vmax.f32 %v3267_v1, 0.0  ;;  %v3301_v45 = vmax.f32 %v3269_v30, 0.0  ;;  %v1840_v61 = vld [vmem:[#allocation2 + $0x1b0] sm:$0xee] }
 0x246   : > { %v3305_v21 = vmax.f32 %v3273_v49, 0.0  ;;  %v3300_v50 = vmax.f32 %v3268_v19, 0.0  ;;  %v3302_v28 = vmax.f32 %v3270_v22, 0.0  ;;  %v3306_v55 = vmax.f32 %v3274_v35, 0.0  ;;  %v1841_v19 = vld [vmem:[#allocation2 + $0x1b8] sm:$0x11] }
 0x247   : > { %v3303_v14 = vmax.f32 %v3271_v4, 0.0  ;;  %v3304_v5 = vmax.f32 %v3272_v53, 0.0  ;;  %v1776_v6 = vunpack.c.l.bf16 %v8383_v54  ;;  %v1777_v29 = vunpack.c.h.bf16 %v8383_v54  ;;  %v1842_v53 = vld [vmem:[#allocation2 + $0x1c0] sm:$0xee] }
 0x248   : > { %v3331_v41 = vpack.c.bf16 %v3300_v50, %v3299_v34  ;;  %v3332_v31 = vpack.c.bf16 %v3302_v28, %v3301_v45  ;;  %v3334_v42 = vpack.c.bf16 %v3306_v55, %v3305_v21  ;;  %v9384_v59 = vunpack.c.l.bf16 %v8386_v18  ;;  %v1843_v34 = vld [vmem:[#allocation2 + $0x1c8] sm:$0x11] }
 0x249   : > { %v3333_v11 = vpack.c.bf16 %v3304_v5, %v3303_v14  ;;  %v9383_v17 = vunpack.c.h.bf16 %v8386_v18  ;;  %v1780_v26 = vunpack.c.l.bf16 %v8388_v15  ;;  %v1781_v47 = vunpack.c.h.bf16 %v8388_v15 }
 0x24a   : > { %v3351_v0 = vshrl.u32 %v3331_v41, 16  ;;  %v3354_v38 = vshll.u32 %v3331_v41, 16  ;;  %v3360_v56 = vshll.u32 %v3332_v31, 16  ;;  %v3374_v23 = vshll.u32 %v3334_v42, 16 }
 0x24b   : > { %v3365_v62 = vshrl.u32 %v3333_v11, 16  ;;  %v3368_v9 = vshll.u32 %v3333_v11, 16  ;;  %v9591_v10 = vunpack.c.l.bf16 %v8251_v2  ;;  %v9592_v1 = vunpack.c.h.bf16 %v8251_v2 }
 0x24c   : > { %v3353_v58 = vrot.slane %v3351_v0, 4  ;;  %v3356_v27 = vrot.slane %v3354_v38, 5  ;;  %v3362_v63 = vrot.slane %v3360_v56, 5  ;;  %v3376_v52 = vrot.slane %v3374_v23, 5 }
 0x24d   : > { %v8399_v32 = vmul.f32 %v9591_v10, %v8080_v44  ;;  %v3367_v37 = vrot.slane %v3365_v62, 4  ;;  %v3370_v25 = vrot.slane %v3368_v9, 5  ;;  %v8404_v30 = vmul.f32 %v9592_v1, %v8084_v46  ;;  %v1923_v10 = vld [vmem:[#allocation2 + $0x270] sm:$0xee] }
 0x24e   : > { %v8409_v49 = vmul.f32 %v8080_v44, %v1776_v6  ;;  %v3357_v22 = vor.u32 %v3356_v27, %v3353_v58  ;;  %v8414_v4 = vmul.f32 %v8084_v46, %v1777_v29  ;;  %v8419_v35 = vmul.f32 %v8080_v44, %v9384_v59 }
 0x24f   : > { %v8424_v2 = vmul.f32 %v8084_v46, %v9383_v17  ;;  %v3371_v21 = vor.u32 %v3370_v25, %v3367_v37  ;;  %v8435_v50 = vmul.f32 %v8080_v44, %v1780_v26  ;;  %v8440_v28 = vmul.f32 %v8084_v46, %v1781_v47  ;;  %v1924_v25 = vld [vmem:[#allocation2 + $0x280] sm:$0xee] }
 0x250   : > { %v1860_v14 = vunpack.c.l.bf16 %v1840_v61  ;;  %v3358_v55 = vrot.slane %v3357_v22, 4  ;;  %v1861_v5 = vunpack.c.h.bf16 %v1840_v61  ;;  %v1862_v41 = vunpack.c.l.bf16 %v1841_v19 }
 0x251   : > { %v1863_v31 = vunpack.c.h.bf16 %v1841_v19  ;;  %v3372_v42 = vrot.slane %v3371_v21, 4  ;;  %v1864_v11 = vunpack.c.l.bf16 %v1842_v53  ;;  %v1865_v0 = vunpack.c.h.bf16 %v1842_v53 }
 0x252   : > { %v1866_v38 = vunpack.c.l.bf16 %v1843_v34  ;;  %v3363_v56 = vsel %vm8428_vm5, %v3358_v55, %v3362_v63  ;;  %v1867_v23 = vunpack.c.h.bf16 %v1843_v34  ;;  %v8445_v62 = vmul.f32 %v8115_v51, %v1860_v14  ;;  %v2131_v14 = vld [vmem:[#allocation2 + $0x100] sm:$0xff] }
 0x253   : > { %v8448_v9 = vmul.f32 %v8117_v48, %v1861_v5  ;;  %v3377_v58 = vsel %vm8428_vm5, %v3372_v42, %v3376_v52  ;;  %v5062_v27 = vunpack.c.l.b16 %v3363_v56  ;;  %v5063_v61 = vunpack.c.h.b16 %v3363_v56 }
 0x254   : > { %v8453_v37 = vmul.f32 %v8115_v51, %v1862_v41  ;;  %v5064_v1 = vunpack.c.l.b16 %v3377_v58  ;;  %v5065_v19 = vunpack.c.h.b16 %v3377_v58  ;;  %v8456_v63 = vmul.f32 %v8117_v48, %v1863_v31 }
 0x255   : > { %v8459_v22 = vmul.f32 %v8115_v51, %v1864_v11  ;;  %v8462_v53 = vmul.f32 %v8117_v48, %v1865_v0  ;;  %v8465_v34 = vmul.f32 %v8115_v51, %v1866_v38  ;;  %v8468_v52 = vmul.f32 %v8117_v48, %v1867_v23 }
 0x256   : > { %v1933_v21 = vunpack.c.l.bf16 %v1923_v10  ;;  %v5078_v55 = vpack.c.b16 %v5064_v1, %v5062_v27  ;;  %v5079_v5 = vpack.c.b16 %v5065_v19, %v5063_v61  ;;  %v1934_v41 = vunpack.c.h.bf16 %v1923_v10 }
 0x257   : > { %v1935_v42 = vunpack.c.l.bf16 %v1924_v25  ;;  %v1936_v31 = vunpack.c.h.bf16 %v1924_v25  ;;  %v1960_v11 = vmul.f32 %v8148_v16, %v1776_v6  ;;  %v1961_v0 = vmul.f32 %v8150_v8, %v1777_v29 }
 0x258   : > { %v1958_v56 = vmul.f32 %v8148_v16, %v1933_v21  ;;  %5182 = vmatmul.bf16.vlgmr.msra.gmra.mxu2 %v5078_v55  ;;  %5740 = vmatmul.msk.bf16.vlgmr.msra.gmra.mxu3 %vm736_vm3, %v5079_v5  ;;  %v1959_v38 = vmul.f32 %v8150_v8, %v1934_v41  ;;  %v1964_v10 = vmul.f32 %v8148_v16, %v1780_v26  ;;  %v2151_v58 = vunpack.c.l.bf16 %v2131_v14  ;;  %v8491_v26 = vld [vmem:[#allocation2 + $0x108] sm:$0x11] }
 0x259   : > { %v1962_v23 = vmul.f32 %v8148_v16, %v1935_v42  ;;  %v1963_v27 = vmul.f32 %v8150_v8, %v1936_v31  ;;  %v1965_v54 = vmul.f32 %v8150_v8, %v1781_v47  ;;  %v2028_v29 = vrot.slane %v1960_v11, 1  ;;  %v8501_v11 = vld [vmem:[#allocation2 + $0x118] sm:$0x11] }
 0x25a   : > { %v2027_v6 = vrot.slane %v1958_v56, 1  ;;  %v2030_v61 = vrot.slane %v1959_v38, 1  ;;  %v2031_v25 = vrot.slane %v1961_v0, 1  ;;  %v2034_v19 = vrot.slane %v1964_v10, 1  ;;  %v2133_v56 = vld [vmem:[#allocation2 + $0x110] sm:$0xff] }
 0x25b   : > { %v2033_v1 = vrot.slane %v1962_v23, 1  ;;  %v2036_v55 = vrot.slane %v1963_v27, 1  ;;  %v2037_v5 = vrot.slane %v1965_v54, 1  ;;  %v8489_v41 = vadd.f32 %v2028_v29, %v8409_v49 }
 0x25c   : > { %v2029_v21 = vsel %vm2014_vm1, %v2027_v6, %v2028_v29  ;;  %v2032_v42 = vsel %vm2014_vm1, %v2030_v61, %v2031_v25  ;;  %v8499_v31 = vadd.f32 %v2031_v25, %v8414_v4  ;;  %v8511_v23 = vadd.f32 %v2034_v19, %v8435_v50 }
 0x25d   : > { %v2035_v15 = vsel %vm2014_vm1, %v2033_v1, %v2034_v19  ;;  %v8496_v47 = vadd.f32 %v2029_v21, %v8399_v32  ;;  %v2038_v0 = vsel %vm2014_vm1, %v2036_v55, %v2037_v5  ;;  %v8505_v49 = vadd.f32 %v2032_v42, %v8404_v30 }
 0x25e   : > { %v8508_v38 = vadd.f32 %v2035_v15, %v8419_v35  ;;  %v8514_v32 = vadd.f32 %v2038_v0, %v8424_v2  ;;  %v8517_v4 = vadd.f32 %v2037_v5, %v8440_v28  ;;  %v2152_v10 = vunpack.c.h.bf16 %v2131_v14 }
 0x25f   : > { %v2153_v27 = vunpack.c.l.bf16 %v8491_v26  ;;  %v2154_v54 = vunpack.c.h.bf16 %v8491_v26  ;;  %v2155_v6 = vunpack.c.l.bf16 %v2133_v56  ;;  %v2156_v30 = vunpack.c.h.bf16 %v2133_v56 }
 0x260   : > { %v2157_v29 = vunpack.c.l.bf16 %v8501_v11  ;;  %v9385_v35 = vunpack.c.h.bf16 %v8501_v11  ;;  %v2188_v50 = vmul.f32 %v8191_v36, %v2151_v58  ;;  %v2189_v61 = vmul.f32 %v8193_v3, %v2152_v10 }
 0x261   : > { %v2190_v2 = vmul.f32 %v8191_v36, %v2153_v27  ;;  %v2191_v28 = vmul.f32 %v8193_v3, %v2154_v54  ;;  %v2192_v14 = vmul.f32 %v8191_v36, %v2155_v6  ;;  %v2193_v25 = vmul.f32 %v8193_v3, %v2156_v30 }
 0x262   : > { %v2194_v1 = vmul.f32 %v8191_v36, %v2157_v29  ;;  %v2195_v19 = vmul.f32 %v8193_v3, %v9385_v35  ;;  %v2256_v21 = vrot.slane %v2188_v50, 7  ;;  %v2257_v55 = vrot.slane %v2189_v61, 7  ;;  %v2587_v61 = vld [vmem:[#allocation2 + $0x100] sm:$0xee]  ;;  %v9605_v35 = vld [vmem:[#allocation33_spill] sm:$0xff] }
 0x263   : > { %v2258_v5 = vrot.slane %v2190_v2, 7  ;;  %v2260_v58 = vrot.slane %v2191_v28, 7  ;;  %v2262_v26 = vrot.slane %v2192_v14, 7  ;;  %v2263_v42 = vrot.slane %v2193_v25, 7  ;;  %v2588_v2 = vld [vmem:[#allocation2 + $0x110] sm:$0xee] }
 0x264   : > { %v2264_v15 = vrot.slane %v2194_v1, 7  ;;  %v2266_v0 = vrot.slane %v2195_v19, 7  ;;  %v2332_v10 = vadd.f32 %v2256_v21, %v8445_v62  ;;  %v2333_v6 = vadd.f32 %v2257_v55, %v8448_v9  ;;  %v9595_v1 = vld [vmem:[#allocation29_spill] sm:$0xff] }
 0x265   : > { %v2259_v56 = vsel %vm876_vm12, %v2256_v21, %v2258_v5  ;;  %v2261_v30 = vsel %vm876_vm12, %v2257_v55, %v2260_v58  ;;  %v2336_v50 = vadd.f32 %v2262_v26, %v8459_v22  ;;  %v2337_v25 = vadd.f32 %v2263_v42, %v8462_v53  ;;  %v9598_v55 = vld [vmem:[#allocation30_spill] sm:$0xff] }
 0x266   : > { %v2265_v17 = vsel %vm876_vm12, %v2262_v26, %v2264_v15  ;;  %v2334_v59 = vadd.f32 %v2259_v56, %v8453_v37  ;;  %v2267_v28 = vsel %vm876_vm12, %v2263_v42, %v2266_v0  ;;  %v2335_v14 = vadd.f32 %v2261_v30, %v8456_v63 }
 0x267   : > { %v2338_v62 = vadd.f32 %v2265_v17, %v8465_v34  ;;  %v2339_v9 = vadd.f32 %v2267_v28, %v8468_v52  ;;  %v9596_v19 = vunpack.c.l.bf16 %v9595_v1  ;;  %v9597_v37 = vunpack.c.h.bf16 %v9595_v1 }
 0x268   : > { %v9599_v5 = vunpack.c.l.bf16 %v9598_v55  ;;  %v9600_v63 = vunpack.c.h.bf16 %v9598_v55  ;;  %v2597_v26 = vunpack.c.l.bf16 %v2587_v61  ;;  %v2598_v17 = vunpack.c.h.bf16 %v2587_v61 }
 0x269   : > { %v2419_v21 = vmul.f32 %v6698_v12, %v9596_v19  ;;  %v2420_v22 = vmul.f32 %v6700_v13, %v9597_v37  ;;  %v2599_v34 = vunpack.c.l.bf16 %v2588_v2  ;;  %v2600_v56 = vunpack.c.h.bf16 %v2588_v2  ;;  %v9601_v19 = vld [vmem:[#allocation31_spill] sm:$0xff] }
 0x26a   : > { %v2423_v58 = vmul.f32 %v6698_v12, %v9599_v5  ;;  %v2424_v53 = vmul.f32 %v6700_v13, %v9600_v63  ;;  %v2622_v30 = vmul.f32 %v8260_v43, %v2597_v26  ;;  %v2623_v28 = vmul.f32 %v8262_v60, %v2598_v17  ;;  %v9603_v5 = vld [vmem:[#allocation32_spill] sm:$0xff] }
 0x26b   : > { %v2486_v52 = vrot.slane %v2419_v21, 1  ;;  %v2489_v42 = vrot.slane %v2420_v22, 1  ;;  %v2624_v1 = vmul.f32 %v8260_v43, %v2153_v27  ;;  %v9602_v37 = vrot.slane %v9601_v19, 1 }
 0x26c   : > { %v2492_v15 = vrot.slane %v2423_v58, 1  ;;  %v2495_v0 = vrot.slane %v2424_v53, 1  ;;  %v9604_v63 = vrot.slane %v9603_v5, 1  ;;  %v9606_v21 = vrot.slane %v9605_v35, 1  ;;  %v9607_v58 = vld [vmem:[#allocation34_spill] sm:$0xff] }
 0x26d   : > { %v2487_v55 = vsel %vm2014_vm1, %v9602_v37, %v2486_v52  ;;  %v2563_v2 = vadd.f32 %v2486_v52, %v8489_v41  ;;  %v9608_v53 = vrot.slane %v9607_v58, 1  ;;  %v2564_v19 = vadd.f32 %v2489_v42, %v8499_v31 }
 0x26e   : > { %v2490_v61 = vsel %vm2014_vm1, %v9604_v63, %v2489_v42  ;;  %v2493_v22 = vsel %vm2014_vm1, %v9606_v21, %v2492_v15  ;;  %v2561_v27 = vadd.f32 %v2487_v55, %v8496_v47  ;;  %v2567_v35 = vadd.f32 %v2492_v15, %v8511_v23  ;;  %v8584_v55 = vld [vmem:[#allocation2 + $0x288] sm:$0x11] }
 0x26f   : > { %v2496_v26 = vsel %vm2014_vm1, %v9608_v53, %v2495_v0  ;;  %v2562_v17 = vadd.f32 %v2490_v61, %v8505_v49  ;;  %v2565_v37 = vadd.f32 %v2493_v22, %v8508_v38  ;;  %v2568_v63 = vadd.f32 %v2495_v0, %v8517_v4  ;;  %v8586_v49 = vld [vmem:[#allocation2 + $0x290] sm:$0xff]  ;;  %v8591_v4 = vld [vmem:[#allocation2 + $0x298] sm:$0x11] }
 0x270   : > { %v2566_v5 = vadd.f32 %v2496_v26, %v8514_v32  ;;  %v2625_v41 = vmul.f32 %v8262_v60, %v2154_v54  ;;  %v2626_v52 = vmul.f32 %v8260_v43, %v2599_v34  ;;  %v2627_v21 = vmul.f32 %v8262_v60, %v2600_v56 }
 0x271   : > { %v2628_v47 = vmul.f32 %v8260_v43, %v2157_v29  ;;  %v9609_v31 = vunpack.c.h.bf16 %v8501_v11  ;;  %v2654_v32 = vadd.f32 %v2622_v30, %v2332_v10  ;;  %v2655_v23 = vadd.f32 %v2623_v28, %v2333_v6  ;;  %v9611_v6 = vld [vmem:[#allocation19_spill] sm:$0xff]  ;;  %v2799_v28 = vld [vmem:[#allocation2 + $0x1c0] sm:$0xee] }
 0x272   : > { %v2656_v42 = vadd.f32 %v2624_v1, %v2334_v59  ;;  %v2657_v54 = vadd.f32 %v2625_v41, %v2335_v14  ;;  %v2658_v15 = vadd.f32 %v2626_v52, %v2336_v50  ;;  %v2659_v34 = vadd.f32 %v2627_v21, %v2337_v25  ;;  %v2800_v41 = vld [vmem:[#allocation2 + $0x1c8] sm:$0x11]  ;;  %v2801_v52 = vld [vmem:[#allocation2 + $0x1d0] sm:$0xee] }
 0x273   : > { %v2629_v38 = vmul.f32 %v8262_v60, %v9609_v31  ;;  %v2660_v0 = vadd.f32 %v2628_v47, %v2338_v62  ;;  %v2704_v29 = vunpack.c.l.bf16 %v8584_v55  ;;  %v2705_v61 = vunpack.c.h.bf16 %v8584_v55 }
 0x274   : > { %v9386_v22 = vunpack.c.l.bf16 %v8586_v49  ;;  %v9389_v11 = vunpack.c.h.bf16 %v8586_v49  ;;  %v2708_v58 = vunpack.c.l.bf16 %v8591_v4  ;;  %v2709_v10 = vunpack.c.h.bf16 %v8591_v4 }
 0x275   : > { %v2661_v56 = vadd.f32 %v2629_v38, %v2339_v9  ;;  %v9610_v59 = vunpack.c.l.bf16 %v8386_v18  ;;  %v9612_v50 = vunpack.c.h.bf16 %v8386_v18  ;;  %v2741_v62 = vmul.f32 %v9611_v6, %v2704_v29  ;;  %v2802_v38 = vld [vmem:[#allocation2 + $0x1d8] sm:$0x11] }
 0x276   : > { %v2742_v9 = vmul.f32 %v8291_v40, %v2705_v61  ;;  %v2743_v30 = vmul.f32 %v9611_v6, %v9386_v22  ;;  %v2744_v1 = vmul.f32 %v8291_v40, %v9389_v11  ;;  %v2745_v53 = vmul.f32 %v9611_v6, %v2708_v58 }
 0x277   : > { %v2739_v14 = vmul.f32 %v9611_v6, %v9610_v59  ;;  %v2740_v25 = vmul.f32 %v8291_v40, %v9612_v50  ;;  %v2746_v26 = vmul.f32 %v8291_v40, %v2709_v10  ;;  %v2773_v47 = vadd.f32 %v2741_v62, %v2563_v2 }
 0x278   : > { %v2774_v55 = vadd.f32 %v2742_v9, %v2564_v19  ;;  %v2775_v31 = vadd.f32 %v2743_v30, %v2565_v37  ;;  %v2776_v4 = vadd.f32 %v2744_v1, %v2566_v5  ;;  %v2777_v59 = vadd.f32 %v2745_v53, %v2567_v35  ;;  %v2914_v5 = vld [vmem:[#allocation2 + $0x280] sm:$0xee]  ;;  %v2915_v9 = vld [vmem:[#allocation2 + $0x290] sm:$0xee] }
 0x279   : > { %v8615_v18 = vadd.f32 %v2739_v14, %v2561_v27  ;;  %v8617_v21 = vadd.f32 %v2740_v25, %v2562_v17  ;;  %v2778_v50 = vadd.f32 %v2746_v26, %v2568_v63  ;;  %v2819_v22 = vunpack.c.l.bf16 %v2799_v28 }
 0x27a   : > { %v2820_v60 = vunpack.c.h.bf16 %v2799_v28  ;;  %v2821_v11 = vunpack.c.l.bf16 %v2800_v41  ;;  %v2822_v43 = vunpack.c.h.bf16 %v2800_v41  ;;  %v2823_v6 = vunpack.c.l.bf16 %v2801_v52 }
 0x27b   : > { %v2824_v13 = vunpack.c.h.bf16 %v2801_v52  ;;  %v2825_v40 = vunpack.c.l.bf16 %v2802_v38  ;;  %v2826_v27 = vunpack.c.h.bf16 %v2802_v38  ;;  %v2856_v14 = vmul.f32 %v8324_v7, %v2819_v22 }
 0x27c   : > { %v2857_v17 = vmul.f32 %v8326_v39, %v2820_v60  ;;  %v2858_v2 = vmul.f32 %v8324_v7, %v2821_v11  ;;  %v2859_v19 = vmul.f32 %v8326_v39, %v2822_v43  ;;  %v2860_v37 = vmul.f32 %v8324_v7, %v2823_v6 }
 0x27d   : > { %v2861_v35 = vmul.f32 %v8326_v39, %v2824_v13  ;;  %v2862_v63 = vmul.f32 %v8324_v7, %v2825_v40  ;;  %v2863_v25 = vmul.f32 %v8326_v39, %v2826_v27  ;;  %v2888_v62 = vadd.f32 %v2856_v14, %v2654_v32 }
 0x27e   : > { %v2889_v30 = vadd.f32 %v2857_v17, %v2655_v23  ;;  %v2890_v28 = vadd.f32 %v2858_v2, %v2656_v42  ;;  %v2891_v22 = vadd.f32 %v2859_v19, %v2657_v54  ;;  %v2892_v1 = vadd.f32 %v2860_v37, %v2658_v15 }
 0x27f   : > { %v2893_v60 = vadd.f32 %v2861_v35, %v2659_v34  ;;  %v2894_v53 = vadd.f32 %v2862_v63, %v2660_v0  ;;  %v2895_v11 = vadd.f32 %v2863_v25, %v2661_v56  ;;  %v2924_v26 = vunpack.c.l.bf16 %v2914_v5  ;;  %v8640_v25 = vld [vmem:[#allocation2 + $0x298] sm:$0x11] }
 0x280   : > { %v2925_v43 = vunpack.c.h.bf16 %v2914_v5  ;;  %v2926_v41 = vunpack.c.l.bf16 %v2915_v9  ;;  %v2927_v6 = vunpack.c.h.bf16 %v2915_v9  ;;  %v2951_v52 = vmul.f32 %v8339_v24, %v2704_v29 }
 0x281   : > { %v2949_v13 = vmul.f32 %v8339_v24, %v2924_v26  ;;  %v2952_v40 = vmul.f32 %v8341_v57, %v2705_v61  ;;  %v2955_v32 = vmul.f32 %v8339_v24, %v2708_v58  ;;  %v2956_v23 = vmul.f32 %v8341_v57, %v2709_v10 }
 0x282   : > { %v2950_v42 = vmul.f32 %v8341_v57, %v2925_v43  ;;  %v2953_v54 = vmul.f32 %v8339_v24, %v2926_v41  ;;  %v2954_v15 = vmul.f32 %v8341_v57, %v2927_v6  ;;  %v3018_v34 = vrot.slane %v2951_v52, 1 }
 0x283   : > { %v3017_v0 = vrot.slane %v2949_v13, 1  ;;  %v3021_v56 = vrot.slane %v2952_v40, 1  ;;  %v3024_v38 = vrot.slane %v2955_v32, 1  ;;  %v3027_v27 = vrot.slane %v2956_v23, 1 }
 0x284   : > { %v3020_v29 = vrot.slane %v2950_v42, 1  ;;  %v3023_v14 = vrot.slane %v2953_v54, 1  ;;  %v3026_v17 = vrot.slane %v2954_v15, 1  ;;  %v3095_v2 = vadd.f32 %v3018_v34, %v2773_v47 }
 0x285   : > { %v3019_v61 = vsel %vm2014_vm1, %v3017_v0, %v3018_v34  ;;  %v3096_v58 = vadd.f32 %v3021_v56, %v2774_v55  ;;  %v3099_v19 = vadd.f32 %v3024_v38, %v2777_v59  ;;  %v3100_v10 = vadd.f32 %v3027_v27, %v2778_v50 }
 0x286   : > { %v3022_v37 = vsel %vm2014_vm1, %v3020_v29, %v3021_v56  ;;  %v3025_v5 = vsel %vm2014_vm1, %v3023_v14, %v3024_v38  ;;  %v3028_v35 = vsel %vm2014_vm1, %v3026_v17, %v3027_v27  ;;  %v3093_v63 = vadd.f32 %v3019_v61, %v8615_v18  ;;  %v8656_v38 = vld [vmem:[#allocation2 + $0x2a0] sm:$0xff] }
 0x287   : > { %v3094_v9 = vadd.f32 %v3022_v37, %v8617_v21  ;;  %v3097_v26 = vadd.f32 %v3025_v5, %v2775_v31  ;;  %v3098_v43 = vadd.f32 %v3028_v35, %v2776_v4  ;;  %v3161_v47 = vrot.slane %v2888_v62, 1 }
 0x288   : > { %v3162_v41 = vrot.slane %v2890_v28, 1  ;;  %v3164_v6 = vrot.slane %v2889_v30, 1  ;;  %v3165_v55 = vrot.slane %v2891_v22, 1  ;;  %v3167_v59 = vrot.slane %v2892_v1, 1 }
 0x289   : > { %v3168_v50 = vrot.slane %v2894_v53, 1  ;;  %v3170_v52 = vrot.slane %v2893_v60, 1  ;;  %v3171_v13 = vrot.slane %v2895_v11, 1  ;;  %v1784_v40 = vunpack.c.l.bf16 %v8640_v25 }
 0x28a   : > { %v3163_v32 = vsel %vm2014_vm1, %v3161_v47, %v3162_v41  ;;  %v3166_v18 = vsel %vm2014_vm1, %v3164_v6, %v3165_v55  ;;  %v3239_v23 = vadd.f32 %v3162_v41, %v3095_v2  ;;  %v3240_v42 = vadd.f32 %v3165_v55, %v3096_v58  ;;  %v8658_v2 = vld [vmem:[#allocation2 + $0x2a8] sm:$0x11] }
 0x28b   : > { %v3169_v21 = vsel %vm2014_vm1, %v3167_v59, %v3168_v50  ;;  %v3172_v31 = vsel %vm2014_vm1, %v3170_v52, %v3171_v13  ;;  %v3237_v4 = vadd.f32 %v3163_v32, %v3093_v63  ;;  %v3238_v62 = vadd.f32 %v3166_v18, %v3094_v9 }
 0x28c   : > { %v3241_v30 = vadd.f32 %v3169_v21, %v3097_v26  ;;  %v3242_v28 = vadd.f32 %v3172_v31, %v3098_v43  ;;  %v3243_v22 = vadd.f32 %v3168_v50, %v3099_v19  ;;  %v3244_v1 = vadd.f32 %v3171_v13, %v3100_v10 }
 0x28d   : > { %v3275_v60 = vadd.f32 %v8371_v20, %v3237_v4  ;;  %v3276_v53 = vadd.f32 %v8374_v33, %v3238_v62  ;;  %v3277_v11 = vadd.f32 %v8371_v20, %v3239_v23  ;;  %v3278_v54 = vadd.f32 %v8374_v33, %v3240_v42  ;;  %v1844_v62 = vld [vmem:[#allocation2 + $0x1d0] sm:$0xee] }
 0x28e   : > { %v3279_v15 = vadd.f32 %v8371_v20, %v3241_v30  ;;  %v3280_v34 = vadd.f32 %v8374_v33, %v3242_v28  ;;  %v3281_v0 = vadd.f32 %v8371_v20, %v3243_v22  ;;  %v3282_v56 = vadd.f32 %v8374_v33, %v3244_v1 }
 0x28f   : > { %v3307_v27 = vmax.f32 %v3275_v60, 0.0  ;;  %v3308_v29 = vmax.f32 %v3276_v53, 0.0  ;;  %v3309_v14 = vmax.f32 %v3277_v11, 0.0  ;;  %v3310_v17 = vmax.f32 %v3278_v54, 0.0  ;;  %v1845_v60 = vld [vmem:[#allocation2 + $0x1d8] sm:$0x11] }
 0x290   : > { %v3311_v61 = vmax.f32 %v3279_v15, 0.0  ;;  %v3312_v58 = vmax.f32 %v3280_v34, 0.0  ;;  %v3313_v19 = vmax.f32 %v3281_v0, 0.0  ;;  %v3314_v10 = vmax.f32 %v3282_v56, 0.0  ;;  %v1846_v15 = vld [vmem:[#allocation2 + $0x1e0] sm:$0xee] }
 0x291   : > { %v3335_v37 = vpack.c.bf16 %v3308_v29, %v3307_v27  ;;  %v3336_v5 = vpack.c.bf16 %v3310_v17, %v3309_v14  ;;  %v1785_v35 = vunpack.c.h.bf16 %v8640_v25  ;;  %v9398_v63 = vunpack.c.l.bf16 %v8656_v38  ;;  %v1847_v34 = vld [vmem:[#allocation2 + $0x1e8] sm:$0x11] }
 0x292   : > { %v3337_v9 = vpack.c.bf16 %v3312_v58, %v3311_v61  ;;  %v3338_v26 = vpack.c.bf16 %v3314_v10, %v3313_v19  ;;  %v9397_v43 = vunpack.c.h.bf16 %v8656_v38  ;;  %v1788_v47 = vunpack.c.l.bf16 %v8658_v2 }
 0x293   : > { %v3379_v41 = vshrl.u32 %v3335_v37, 16  ;;  %v3382_v6 = vshll.u32 %v3335_v37, 16  ;;  %v3388_v55 = vshll.u32 %v3336_v5, 16  ;;  %v1789_v59 = vunpack.c.h.bf16 %v8658_v2 }
 0x294   : > { %v3393_v50 = vshrl.u32 %v3337_v9, 16  ;;  %v3396_v52 = vshll.u32 %v3337_v9, 16  ;;  %v3402_v13 = vshll.u32 %v3338_v26, 16  ;;  %v9613_v32 = vunpack.c.l.bf16 %v8586_v49 }
 0x295   : > { %v3381_v23 = vrot.slane %v3379_v41, 4  ;;  %v3384_v42 = vrot.slane %v3382_v6, 5  ;;  %v3390_v21 = vrot.slane %v3388_v55, 5  ;;  %v9614_v31 = vunpack.c.h.bf16 %v8586_v49  ;;  %v1925_v55 = vld [vmem:[#allocation2 + $0x290] sm:$0xee] }
 0x296   : > { %v8668_v18 = vmul.f32 %v9613_v32, %v8080_v44  ;;  %v3395_v30 = vrot.slane %v3393_v50, 4  ;;  %v3398_v28 = vrot.slane %v3396_v52, 5  ;;  %v3404_v22 = vrot.slane %v3402_v13, 5 }
 0x297   : > { %v8673_v4 = vmul.f32 %v9614_v31, %v8084_v46  ;;  %v8678_v1 = vmul.f32 %v8080_v44, %v1784_v40  ;;  %v3385_v53 = vor.u32 %v3384_v42, %v3381_v23  ;;  %v8683_v11 = vmul.f32 %v8084_v46, %v1785_v35  ;;  %v1926_v23 = vld [vmem:[#allocation2 + $0x2a0] sm:$0xee] }
 0x298   : > { %v8688_v49 = vmul.f32 %v8080_v44, %v9398_v63  ;;  %v8693_v54 = vmul.f32 %v8084_v46, %v9397_v43  ;;  %v3399_v0 = vor.u32 %v3398_v28, %v3395_v30  ;;  %v8698_v56 = vmul.f32 %v8080_v44, %v1788_v47  ;;  %v9626_v43 = vld [vmem:[#allocation36_spill] sm:$0xff]  ;;  %v9628_v63 = vld [vmem:[#allocation37_spill] sm:$0xff] }
 0x299   : > { %v8703_v27 = vmul.f32 %v8084_v46, %v1789_v59  ;;  %v1868_v29 = vunpack.c.l.bf16 %v1844_v62  ;;  %v3386_v14 = vrot.slane %v3385_v53, 4  ;;  %v1869_v17 = vunpack.c.h.bf16 %v1844_v62  ;;  %v2135_v53 = vld [vmem:[#allocation2 + $0x120] sm:$0xff] }
 0x29a   : > { %v1870_v61 = vunpack.c.l.bf16 %v1845_v60  ;;  %v1871_v58 = vunpack.c.h.bf16 %v1845_v60  ;;  %v3400_v19 = vrot.slane %v3399_v0, 4  ;;  %v1872_v10 = vunpack.c.l.bf16 %v1846_v15 }
 0x29b   : > { %v1873_v37 = vunpack.c.h.bf16 %v1846_v15  ;;  %v1874_v5 = vunpack.c.l.bf16 %v1847_v34  ;;  %v3391_v9 = vsel %vm8428_vm5, %v3386_v14, %v3390_v21  ;;  %v1875_v26 = vunpack.c.h.bf16 %v1847_v34 }
 0x29c   : > { %v8708_v41 = vmul.f32 %v8115_v51, %v1868_v29  ;;  %v8711_v6 = vmul.f32 %v8117_v48, %v1869_v17  ;;  %v3405_v50 = vsel %vm8428_vm5, %v3400_v19, %v3404_v22  ;;  %v5066_v52 = vunpack.c.l.b16 %v3391_v9 }
 0x29d   : > { %v5067_v13 = vunpack.c.h.b16 %v3391_v9  ;;  %v8716_v32 = vmul.f32 %v8115_v51, %v1870_v61  ;;  %v5068_v42 = vunpack.c.l.b16 %v3405_v50  ;;  %v5069_v31 = vunpack.c.h.b16 %v3405_v50 }
 0x29e   : > { %v8719_v21 = vmul.f32 %v8117_v48, %v1871_v58  ;;  %v8722_v62 = vmul.f32 %v8115_v51, %v1872_v10  ;;  %v8725_v30 = vmul.f32 %v8117_v48, %v1873_v37  ;;  %v8728_v28 = vmul.f32 %v8115_v51, %v1874_v5 }
 0x29f   : > { %v8731_v22 = vmul.f32 %v8117_v48, %v1875_v26  ;;  %v1937_v60 = vunpack.c.l.bf16 %v1925_v55  ;;  %v5080_v15 = vpack.c.b16 %v5068_v42, %v5066_v52  ;;  %v5081_v34 = vpack.c.b16 %v5069_v31, %v5067_v13 }
 0x2a0   : > { %v1938_v0 = vunpack.c.h.bf16 %v1925_v55  ;;  %v1939_v29 = vunpack.c.l.bf16 %v1926_v23  ;;  %v1940_v14 = vunpack.c.h.bf16 %v1926_v23  ;;  %v1968_v61 = vmul.f32 %v8148_v16, %v1784_v40 }
 0x2a1   : > { %v1966_v17 = vmul.f32 %v8148_v16, %v1937_v60  ;;  %v1969_v58 = vmul.f32 %v8150_v8, %v1785_v35  ;;  %5187 = vmatmul.bf16.gmra.mxu2 %v5080_v15  ;;  %5741 = vmatmul.msk.bf16.gmra.mxu3 %vm736_vm3, %v5081_v34  ;;  %v1972_v37 = vmul.f32 %v8148_v16, %v1788_v47  ;;  %v2159_v5 = vunpack.c.l.bf16 %v2135_v53  ;;  %v8754_v47 = vld [vmem:[#allocation2 + $0x128] sm:$0x11]  ;;  %v2137_v34 = vld [vmem:[#allocation2 + $0x130] sm:$0xff] }
 0x2a2   : > { %v1967_v19 = vmul.f32 %v8150_v8, %v1938_v0  ;;  %v1970_v10 = vmul.f32 %v8148_v16, %v1939_v29  ;;  %v1971_v9 = vmul.f32 %v8150_v8, %v1940_v14  ;;  %v1973_v25 = vmul.f32 %v8150_v8, %v1789_v59  ;;  %v8764_v0 = vld [vmem:[#allocation2 + $0x138] sm:$0x11] }
 0x2a3   : > { %v2039_v40 = vrot.slane %v1966_v17, 1  ;;  %v2040_v35 = vrot.slane %v1968_v61, 1  ;;  %v2043_v55 = vrot.slane %v1969_v58, 1  ;;  %v2046_v52 = vrot.slane %v1972_v37, 1 }
 0x2a4   : > { %v2042_v26 = vrot.slane %v1967_v19, 1  ;;  %v2045_v50 = vrot.slane %v1970_v10, 1  ;;  %v2048_v23 = vrot.slane %v1971_v9, 1  ;;  %v2049_v42 = vrot.slane %v1973_v25, 1 }
 0x2a5   : > { %v2041_v13 = vsel %vm2014_vm1, %v2039_v40, %v2040_v35  ;;  %v8752_v31 = vadd.f32 %v2040_v35, %v8678_v1  ;;  %v8762_v15 = vadd.f32 %v2043_v55, %v8683_v11  ;;  %v8774_v17 = vadd.f32 %v2046_v52, %v8698_v56 }
 0x2a6   : > { %v2044_v60 = vsel %vm2014_vm1, %v2042_v26, %v2043_v55  ;;  %v2047_v2 = vsel %vm2014_vm1, %v2045_v50, %v2046_v52  ;;  %v8759_v59 = vadd.f32 %v2041_v13, %v8668_v18  ;;  %v2050_v29 = vsel %vm2014_vm1, %v2048_v23, %v2049_v42 }
 0x2a7   : > { %v8768_v1 = vadd.f32 %v2044_v60, %v8673_v4  ;;  %v8771_v14 = vadd.f32 %v2047_v2, %v8688_v49  ;;  %v8777_v18 = vadd.f32 %v2050_v29, %v8693_v54  ;;  %v8780_v11 = vadd.f32 %v2049_v42, %v8703_v27 }
 0x2a8   : > { %v2160_v61 = vunpack.c.h.bf16 %v2135_v53  ;;  %v2161_v58 = vunpack.c.l.bf16 %v8754_v47  ;;  %v2162_v19 = vunpack.c.h.bf16 %v8754_v47  ;;  %v2163_v10 = vunpack.c.l.bf16 %v2137_v34 }
 0x2a9   : > { %v2164_v4 = vunpack.c.h.bf16 %v2137_v34  ;;  %v2165_v37 = vunpack.c.l.bf16 %v8764_v0  ;;  %v2166_v49 = vunpack.c.h.bf16 %v8764_v0  ;;  %v2196_v56 = vmul.f32 %v8191_v36, %v2159_v5 }
 0x2aa   : > { %v2197_v9 = vmul.f32 %v8193_v3, %v2160_v61  ;;  %v2198_v54 = vmul.f32 %v8191_v36, %v2161_v58  ;;  %v2199_v27 = vmul.f32 %v8193_v3, %v2162_v19  ;;  %v2200_v53 = vmul.f32 %v8191_v36, %v2163_v10 }
 0x2ab   : > { %v2201_v25 = vmul.f32 %v8193_v3, %v2164_v4  ;;  %v2202_v40 = vmul.f32 %v8191_v36, %v2165_v37  ;;  %v2203_v35 = vmul.f32 %v8193_v3, %v2166_v49  ;;  %v2268_v26 = vrot.slane %v2196_v56, 7  ;;  %v2589_v4 = vld [vmem:[#allocation2 + $0x120] sm:$0xee]  ;;  %v2590_v56 = vld [vmem:[#allocation2 + $0x130] sm:$0xee] }
 0x2ac   : > { %v2269_v55 = vrot.slane %v2197_v9, 7  ;;  %v2270_v50 = vrot.slane %v2198_v54, 7  ;;  %v2272_v5 = vrot.slane %v2199_v27, 7  ;;  %v2274_v52 = vrot.slane %v2200_v53, 7  ;;  %v9615_v53 = vld [vmem:[#allocation15_spill] sm:$0xff] }
 0x2ad   : > { %v2275_v13 = vrot.slane %v2201_v25, 7  ;;  %v2276_v23 = vrot.slane %v2202_v40, 7  ;;  %v2278_v47 = vrot.slane %v2203_v35, 7  ;;  %v2340_v60 = vadd.f32 %v2268_v26, %v8708_v41  ;;  %v9618_v35 = vld [vmem:[#allocation12_spill] sm:$0xff] }
 0x2ae   : > { %v2271_v42 = vsel %vm876_vm12, %v2268_v26, %v2270_v50  ;;  %v2341_v2 = vadd.f32 %v2269_v55, %v8711_v6  ;;  %v2273_v34 = vsel %vm876_vm12, %v2269_v55, %v2272_v5  ;;  %v2344_v10 = vadd.f32 %v2274_v52, %v8722_v62  ;;  %v9619_v26 = vld [vmem:[#allocation28_spill] sm:$0xff] }
 0x2af   : > { %v2277_v29 = vsel %vm876_vm12, %v2274_v52, %v2276_v23  ;;  %v2342_v61 = vadd.f32 %v2271_v42, %v8716_v32  ;;  %v2279_v9 = vsel %vm876_vm12, %v2275_v13, %v2278_v47  ;;  %v2343_v54 = vadd.f32 %v2273_v34, %v8719_v21  ;;  %v9622_v34 = vld [vmem:[#allocation16_spill] sm:$0xff] }
 0x2b0   : > { %v2345_v27 = vadd.f32 %v2275_v13, %v8725_v30  ;;  %v2346_v41 = vadd.f32 %v2277_v29, %v8728_v28  ;;  %v2347_v6 = vadd.f32 %v2279_v9, %v8731_v22  ;;  %v9616_v25 = vunpack.c.l.bf16 %v9615_v53  ;;  %v9623_v9 = vld [vmem:[#allocation26_spill] sm:$0xff] }
 0x2b1   : > { %v9617_v32 = vunpack.c.h.bf16 %v9615_v53  ;;  %v9620_v55 = vunpack.c.l.bf16 %v9619_v26  ;;  %v9621_v21 = vunpack.c.h.bf16 %v9619_v26  ;;  %v2601_v5 = vunpack.c.l.bf16 %v2589_v4 }
 0x2b2   : > { %v2427_v40 = vmul.f32 %v6698_v12, %v9616_v25  ;;  %v2602_v28 = vunpack.c.h.bf16 %v2589_v4  ;;  %v2603_v52 = vunpack.c.l.bf16 %v2590_v56  ;;  %v2604_v42 = vunpack.c.h.bf16 %v2590_v56 }
 0x2b3   : > { %v2428_v62 = vmul.f32 %v9618_v35, %v9617_v32  ;;  %v2431_v50 = vmul.f32 %v6698_v12, %v9620_v55  ;;  %v2432_v30 = vmul.f32 %v9618_v35, %v9621_v21  ;;  %v2630_v29 = vmul.f32 %v9622_v34, %v2601_v5  ;;  %v9624_v32 = vld [vmem:[#allocation35_spill] sm:$0xff] }
 0x2b4   : > { %v2498_v22 = vrot.slane %v2427_v40, 1  ;;  %v2631_v53 = vmul.f32 %v9623_v9, %v2602_v28  ;;  %v2632_v25 = vmul.f32 %v9622_v34, %v2161_v58  ;;  %v9625_v55 = vrot.slane %v9624_v32, 1 }
 0x2b5   : > { %v2501_v13 = vrot.slane %v2428_v62, 1  ;;  %v2504_v23 = vrot.slane %v2431_v50, 1  ;;  %v2507_v47 = vrot.slane %v2432_v30, 1  ;;  %v9627_v21 = vrot.slane %v9626_v43, 1  ;;  %v9630_v50 = vld [vmem:[#allocation38_spill] sm:$0xff] }
 0x2b6   : > { %v2499_v26 = vsel %vm2014_vm1, %v9625_v55, %v2498_v22  ;;  %v9629_v40 = vrot.slane %v9628_v63, 1  ;;  %v2571_v56 = vadd.f32 %v2498_v22, %v8752_v31  ;;  %v9631_v30 = vrot.slane %v9630_v50, 1 }
 0x2b7   : > { %v2502_v4 = vsel %vm2014_vm1, %v9627_v21, %v2501_v13  ;;  %v2569_v58 = vadd.f32 %v2499_v26, %v8759_v59  ;;  %v2572_v32 = vadd.f32 %v2501_v13, %v8762_v15  ;;  %v2575_v63 = vadd.f32 %v2504_v23, %v8774_v17  ;;  %v8847_v26 = vld [vmem:[#allocation2 + $0x2a8] sm:$0x11] }
 0x2b8   : > { %v2505_v62 = vsel %vm2014_vm1, %v9629_v40, %v2504_v23  ;;  %v2508_v5 = vsel %vm2014_vm1, %v9631_v30, %v2507_v47  ;;  %v2570_v28 = vadd.f32 %v2502_v4, %v8768_v1  ;;  %v2576_v21 = vadd.f32 %v2507_v47, %v8780_v11  ;;  %v8849_v1 = vld [vmem:[#allocation2 + $0x2b0] sm:$0xff]  ;;  %v8854_v11 = vld [vmem:[#allocation2 + $0x2b8] sm:$0x11] }
 0x2b9   : > { %v2573_v43 = vadd.f32 %v2505_v62, %v8771_v14  ;;  %v2574_v55 = vadd.f32 %v2508_v5, %v8777_v18  ;;  %v2633_v31 = vmul.f32 %v9623_v9, %v2162_v19  ;;  %v2634_v22 = vmul.f32 %v9622_v34, %v2603_v52  ;;  %v2804_v5 = vld [vmem:[#allocation2 + $0x1e8] sm:$0x11] }
 0x2ba   : > { %v2635_v40 = vmul.f32 %v9623_v9, %v2604_v42  ;;  %v2636_v59 = vmul.f32 %v9622_v34, %v2165_v37  ;;  %v2637_v15 = vmul.f32 %v9623_v9, %v2166_v49  ;;  %v2662_v14 = vadd.f32 %v2630_v29, %v2340_v60 }
 0x2bb   : > { %v2663_v17 = vadd.f32 %v2631_v53, %v2341_v2  ;;  %v2664_v18 = vadd.f32 %v2632_v25, %v2342_v61  ;;  %v2665_v19 = vadd.f32 %v2633_v31, %v2343_v54  ;;  %v2666_v13 = vadd.f32 %v2634_v22, %v2344_v10  ;;  %v9633_v61 = vld [vmem:[#allocation19_spill] sm:$0xff]  ;;  %v2803_v25 = vld [vmem:[#allocation2 + $0x1e0] sm:$0xee]  ;;  %v2805_v31 = vld [vmem:[#allocation2 + $0x1f0] sm:$0xee] }
 0x2bc   : > { %v2667_v52 = vadd.f32 %v2635_v40, %v2345_v27  ;;  %v2668_v23 = vadd.f32 %v2636_v59, %v2346_v41  ;;  %v2669_v42 = vadd.f32 %v2637_v15, %v2347_v6  ;;  %v2712_v37 = vunpack.c.l.bf16 %v8847_v26  ;;  %v9635_v27 = vld [vmem:[#allocation20_spill] sm:$0xff]  ;;  %v2806_v15 = vld [vmem:[#allocation2 + $0x1f8] sm:$0x11] }
 0x2bd   : > { %v2713_v47 = vunpack.c.h.bf16 %v8847_v26  ;;  %v9399_v4 = vunpack.c.l.bf16 %v8849_v1  ;;  %v9401_v0 = vunpack.c.h.bf16 %v8849_v1  ;;  %v2716_v49 = vunpack.c.l.bf16 %v8854_v11 }
 0x2be   : > { %v2717_v60 = vunpack.c.h.bf16 %v8854_v11  ;;  %v9632_v2 = vunpack.c.l.bf16 %v8656_v38  ;;  %v9634_v10 = vunpack.c.h.bf16 %v8656_v38  ;;  %v2749_v6 = vmul.f32 %v9633_v61, %v2712_v37 }
 0x2bf   : > { %v2750_v29 = vmul.f32 %v9635_v27, %v2713_v47  ;;  %v2751_v53 = vmul.f32 %v9633_v61, %v9399_v4  ;;  %v2752_v62 = vmul.f32 %v9635_v27, %v9401_v0  ;;  %v2753_v50 = vmul.f32 %v9633_v61, %v2716_v49 }
 0x2c0   : > { %v2747_v54 = vmul.f32 %v9633_v61, %v9632_v2  ;;  %v2748_v41 = vmul.f32 %v9635_v27, %v9634_v10  ;;  %v2754_v30 = vmul.f32 %v9635_v27, %v2717_v60  ;;  %v2781_v40 = vadd.f32 %v2749_v6, %v2571_v56 }
 0x2c1   : > { %v2782_v59 = vadd.f32 %v2750_v29, %v2572_v32  ;;  %v2783_v26 = vadd.f32 %v2751_v53, %v2573_v43  ;;  %v2784_v11 = vadd.f32 %v2752_v62, %v2574_v55  ;;  %v2785_v2 = vadd.f32 %v2753_v50, %v2575_v63  ;;  %v2916_v55 = vld [vmem:[#allocation2 + $0x2a0] sm:$0xee]  ;;  %v2917_v29 = vld [vmem:[#allocation2 + $0x2b0] sm:$0xee] }
 0x2c2   : > { %v8878_v38 = vadd.f32 %v2747_v54, %v2569_v58  ;;  %v8880_v22 = vadd.f32 %v2748_v41, %v2570_v28  ;;  %v2786_v10 = vadd.f32 %v2754_v30, %v2576_v21  ;;  %v2827_v4 = vunpack.c.l.bf16 %v2803_v25 }
 0x2c3   : > { %v2828_v9 = vunpack.c.h.bf16 %v2803_v25  ;;  %v2829_v0 = vunpack.c.l.bf16 %v2804_v5  ;;  %v2830_v34 = vunpack.c.h.bf16 %v2804_v5  ;;  %v2831_v61 = vunpack.c.l.bf16 %v2805_v31 }
 0x2c4   : > { %v2832_v35 = vunpack.c.h.bf16 %v2805_v31  ;;  %v2833_v27 = vunpack.c.l.bf16 %v2806_v15  ;;  %v2834_v58 = vunpack.c.h.bf16 %v2806_v15  ;;  %v2864_v54 = vmul.f32 %v8324_v7, %v2827_v4 }
 0x2c5   : > { %v2865_v28 = vmul.f32 %v8326_v39, %v2828_v9  ;;  %v2866_v56 = vmul.f32 %v8324_v7, %v2829_v0  ;;  %v2867_v32 = vmul.f32 %v8326_v39, %v2830_v34  ;;  %v2868_v43 = vmul.f32 %v8324_v7, %v2831_v61 }
 0x2c6   : > { %v2869_v63 = vmul.f32 %v8326_v39, %v2832_v35  ;;  %v2870_v21 = vmul.f32 %v8324_v7, %v2833_v27  ;;  %v2871_v41 = vmul.f32 %v8326_v39, %v2834_v58  ;;  %v2896_v6 = vadd.f32 %v2864_v54, %v2662_v14 }
 0x2c7   : > { %v2897_v53 = vadd.f32 %v2865_v28, %v2663_v17  ;;  %v2898_v25 = vadd.f32 %v2866_v56, %v2664_v18  ;;  %v2899_v4 = vadd.f32 %v2867_v32, %v2665_v19  ;;  %v2900_v62 = vadd.f32 %v2868_v43, %v2666_v13 }
 0x2c8   : > { %v2901_v9 = vadd.f32 %v2869_v63, %v2667_v52  ;;  %v2902_v50 = vadd.f32 %v2870_v21, %v2668_v23  ;;  %v2903_v0 = vadd.f32 %v2871_v41, %v2669_v42  ;;  %v2928_v30 = vunpack.c.l.bf16 %v2916_v55  ;;  %v8903_v41 = vld [vmem:[#allocation2 + $0x2b8] sm:$0x11] }
 0x2c9   : > { %v2929_v34 = vunpack.c.h.bf16 %v2916_v55  ;;  %v2930_v5 = vunpack.c.l.bf16 %v2917_v29  ;;  %v2931_v61 = vunpack.c.h.bf16 %v2917_v29  ;;  %v2959_v31 = vmul.f32 %v8339_v24, %v2712_v37 }
 0x2ca   : > { %v2957_v35 = vmul.f32 %v8339_v24, %v2928_v30  ;;  %v2960_v27 = vmul.f32 %v8341_v57, %v2713_v47  ;;  %v2963_v14 = vmul.f32 %v8339_v24, %v2716_v49  ;;  %v2964_v17 = vmul.f32 %v8341_v57, %v2717_v60 }
 0x2cb   : > { %v2958_v18 = vmul.f32 %v8341_v57, %v2929_v34  ;;  %v2961_v19 = vmul.f32 %v8339_v24, %v2930_v5  ;;  %v2962_v13 = vmul.f32 %v8341_v57, %v2931_v61  ;;  %v3030_v52 = vrot.slane %v2959_v31, 1 }
 0x2cc   : > { %v3029_v23 = vrot.slane %v2957_v35, 1  ;;  %v3033_v42 = vrot.slane %v2960_v27, 1  ;;  %v3036_v15 = vrot.slane %v2963_v14, 1  ;;  %v3039_v58 = vrot.slane %v2964_v17, 1 }
 0x2cd   : > { %v3032_v37 = vrot.slane %v2958_v18, 1  ;;  %v3035_v54 = vrot.slane %v2961_v19, 1  ;;  %v3038_v28 = vrot.slane %v2962_v13, 1  ;;  %v3103_v56 = vadd.f32 %v3030_v52, %v2781_v40 }
 0x2ce   : > { %v3031_v47 = vsel %vm2014_vm1, %v3029_v23, %v3030_v52  ;;  %v3104_v49 = vadd.f32 %v3033_v42, %v2782_v59  ;;  %v3107_v32 = vadd.f32 %v3036_v15, %v2785_v2  ;;  %v3108_v60 = vadd.f32 %v3039_v58, %v2786_v10 }
 0x2cf   : > { %v3034_v43 = vsel %vm2014_vm1, %v3032_v37, %v3033_v42  ;;  %v3037_v55 = vsel %vm2014_vm1, %v3035_v54, %v3036_v15  ;;  %v3040_v63 = vsel %vm2014_vm1, %v3038_v28, %v3039_v58  ;;  %v3101_v21 = vadd.f32 %v3031_v47, %v8878_v38  ;;  %v8919_v15 = vld [vmem:[#allocation2 + $0x2c0] sm:$0xff] }
 0x2d0   : > { %v3102_v29 = vadd.f32 %v3034_v43, %v8880_v22  ;;  %v3105_v30 = vadd.f32 %v3037_v55, %v2783_v26  ;;  %v3106_v34 = vadd.f32 %v3040_v63, %v2784_v11  ;;  %v3173_v40 = vrot.slane %v2896_v6, 1 }
 0x2d1   : > { %v3174_v5 = vrot.slane %v2898_v25, 1  ;;  %v3176_v61 = vrot.slane %v2897_v53, 1  ;;  %v3177_v59 = vrot.slane %v2899_v4, 1  ;;  %v3179_v2 = vrot.slane %v2900_v62, 1 }
 0x2d2   : > { %v3180_v10 = vrot.slane %v2902_v50, 1  ;;  %v3182_v31 = vrot.slane %v2901_v9, 1  ;;  %v3183_v35 = vrot.slane %v2903_v0, 1  ;;  %v1792_v27 = vunpack.c.l.bf16 %v8903_v41 }
 0x2d3   : > { %v3175_v14 = vsel %vm2014_vm1, %v3173_v40, %v3174_v5  ;;  %v3178_v38 = vsel %vm2014_vm1, %v3176_v61, %v3177_v59  ;;  %v3247_v17 = vadd.f32 %v3174_v5, %v3103_v56  ;;  %v3248_v18 = vadd.f32 %v3177_v59, %v3104_v49  ;;  %v8921_v56 = vld [vmem:[#allocation2 + $0x2c8] sm:$0x11] }
 0x2d4   : > { %v3181_v22 = vsel %vm2014_vm1, %v3179_v2, %v3180_v10  ;;  %v3184_v26 = vsel %vm2014_vm1, %v3182_v31, %v3183_v35  ;;  %v3245_v11 = vadd.f32 %v3175_v14, %v3101_v21  ;;  %v3246_v6 = vadd.f32 %v3178_v38, %v3102_v29 }
 0x2d5   : > { %v3249_v53 = vadd.f32 %v3181_v22, %v3105_v30  ;;  %v3250_v25 = vadd.f32 %v3184_v26, %v3106_v34  ;;  %v3251_v4 = vadd.f32 %v3180_v10, %v3107_v32  ;;  %v3252_v62 = vadd.f32 %v3183_v35, %v3108_v60 }
 0x2d6   : > { %v3283_v9 = vadd.f32 %v8371_v20, %v3245_v11  ;;  %v3284_v50 = vadd.f32 %v8374_v33, %v3246_v6  ;;  %v3285_v0 = vadd.f32 %v8371_v20, %v3247_v17  ;;  %v3286_v19 = vadd.f32 %v8374_v33, %v3248_v18  ;;  %v1848_v6 = vld [vmem:[#allocation2 + $0x1f0] sm:$0xee] }
 0x2d7   : > { %v3287_v13 = vadd.f32 %v8371_v20, %v3249_v53  ;;  %v3288_v52 = vadd.f32 %v8374_v33, %v3250_v25  ;;  %v3289_v23 = vadd.f32 %v8371_v20, %v3251_v4  ;;  %v3290_v42 = vadd.f32 %v8374_v33, %v3252_v62 }
 0x2d8   : > { %v3315_v58 = vmax.f32 %v3283_v9, 0.0  ;;  %v3316_v37 = vmax.f32 %v3284_v50, 0.0  ;;  %v3317_v54 = vmax.f32 %v3285_v0, 0.0  ;;  %v3318_v28 = vmax.f32 %v3286_v19, 0.0  ;;  %v1849_v9 = vld [vmem:[#allocation2 + $0x1f8] sm:$0x11] }
 0x2d9   : > { %v3319_v47 = vmax.f32 %v3287_v13, 0.0  ;;  %v3320_v49 = vmax.f32 %v3288_v52, 0.0  ;;  %v3321_v32 = vmax.f32 %v3289_v23, 0.0  ;;  %v3322_v60 = vmax.f32 %v3290_v42, 0.0  ;;  %v1850_v13 = vld [vmem:[#allocation2 + $0x200] sm:$0xee] }
 0x2da   : > { %v3339_v43 = vpack.c.bf16 %v3316_v37, %v3315_v58  ;;  %v3340_v55 = vpack.c.bf16 %v3318_v28, %v3317_v54  ;;  %v1793_v63 = vunpack.c.h.bf16 %v8903_v41  ;;  %v1794_v21 = vunpack.c.l.bf16 %v8919_v15  ;;  %v1851_v52 = vld [vmem:[#allocation2 + $0x208] sm:$0x11] }
 0x2db   : > { %v3341_v29 = vpack.c.bf16 %v3320_v49, %v3319_v47  ;;  %v3342_v30 = vpack.c.bf16 %v3322_v60, %v3321_v32  ;;  %v1795_v34 = vunpack.c.h.bf16 %v8919_v15  ;;  %v1796_v40 = vunpack.c.l.bf16 %v8921_v56 }
 0x2dc   : > { %v3407_v5 = vshrl.u32 %v3339_v43, 16  ;;  %v3410_v61 = vshll.u32 %v3339_v43, 16  ;;  %v3416_v59 = vshll.u32 %v3340_v55, 16  ;;  %v1797_v2 = vunpack.c.h.bf16 %v8921_v56 }
 0x2dd   : > { %v3421_v10 = vshrl.u32 %v3341_v29, 16  ;;  %v3424_v31 = vshll.u32 %v3341_v29, 16  ;;  %v3430_v35 = vshll.u32 %v3342_v30, 16  ;;  %v9636_v14 = vunpack.c.l.bf16 %v8849_v1 }
 0x2de   : > { %v3409_v17 = vrot.slane %v3407_v5, 4  ;;  %v3412_v18 = vrot.slane %v3410_v61, 5  ;;  %v3418_v22 = vrot.slane %v3416_v59, 5  ;;  %v9637_v26 = vunpack.c.h.bf16 %v8849_v1 }
 0x2df   : > { %v8931_v38 = vmul.f32 %v9636_v14, %v8080_v44  ;;  %v3423_v53 = vrot.slane %v3421_v10, 4  ;;  %v3426_v25 = vrot.slane %v3424_v31, 5  ;;  %v3432_v4 = vrot.slane %v3430_v35, 5  ;;  %v1928_v35 = vld [vmem:[#allocation2 + $0x2c0] sm:$0xee] }
 0x2e0   : > { %v8936_v11 = vmul.f32 %v9637_v26, %v8084_v46  ;;  %v8941_v62 = vmul.f32 %v8080_v44, %v1792_v27  ;;  %v3413_v50 = vor.u32 %v3412_v18, %v3409_v17  ;;  %v8946_v0 = vmul.f32 %v8084_v46, %v1793_v63 }
 0x2e1   : > { %v8951_v1 = vmul.f32 %v8080_v44, %v1794_v21  ;;  %v8956_v19 = vmul.f32 %v8084_v46, %v1795_v34  ;;  %v3427_v23 = vor.u32 %v3426_v25, %v3423_v53  ;;  %v8961_v42 = vmul.f32 %v8080_v44, %v1796_v40 }
 0x2e2   : > { %v8966_v58 = vmul.f32 %v8084_v46, %v1797_v2  ;;  %v1876_v37 = vunpack.c.l.bf16 %v1848_v6  ;;  %v3414_v54 = vrot.slane %v3413_v50, 4  ;;  %v1877_v28 = vunpack.c.h.bf16 %v1848_v6  ;;  %v1927_v46 = vld [vmem:[#allocation2 + $0x2b0] sm:$0xee] }
 0x2e3   : > { %v1878_v47 = vunpack.c.l.bf16 %v1849_v9  ;;  %v1879_v49 = vunpack.c.h.bf16 %v1849_v9  ;;  %v3428_v32 = vrot.slane %v3427_v23, 4  ;;  %v1880_v60 = vunpack.c.l.bf16 %v1850_v13 }
 0x2e4   : > { %v1881_v43 = vunpack.c.h.bf16 %v1850_v13  ;;  %v1882_v55 = vunpack.c.l.bf16 %v1851_v52  ;;  %v3419_v29 = vsel %vm8428_vm5, %v3414_v54, %v3418_v22  ;;  %v1883_v30 = vunpack.c.h.bf16 %v1851_v52  ;;  %v9638_v54 = vld [vmem:[#allocation42_spill] sm:$0xff] }
 0x2e5   : > { %v8971_v44 = vmul.f32 %v8115_v51, %v1876_v37  ;;  %v8974_v5 = vmul.f32 %v8117_v48, %v1877_v28  ;;  %v3433_v61 = vsel %vm8428_vm5, %v3428_v32, %v3432_v4  ;;  %v5070_v59 = vunpack.c.l.b16 %v3419_v29  ;;  %v2139_v32 = vld [vmem:[#allocation2 + $0x140] sm:$0xff] }
 0x2e6   : > { %v5071_v10 = vunpack.c.h.b16 %v3419_v29  ;;  %v8979_v31 = vmul.f32 %v8115_v51, %v1878_v47  ;;  %v5072_v14 = vunpack.c.l.b16 %v3433_v61  ;;  %v5073_v17 = vunpack.c.h.b16 %v3433_v61 }
 0x2e7   : > { %v8982_v18 = vmul.f32 %v8117_v48, %v1879_v49  ;;  %v8985_v22 = vmul.f32 %v8115_v51, %v1880_v60  ;;  %v8988_v26 = vmul.f32 %v8117_v48, %v1881_v43  ;;  %v8991_v6 = vmul.f32 %v8115_v51, %v1882_v55 }
 0x2e8   : > { %v8994_v53 = vmul.f32 %v8117_v48, %v1883_v30  ;;  %v1941_v25 = vunpack.c.l.bf16 %v1927_v46  ;;  %v5082_v4 = vpack.c.b16 %v5072_v14, %v5070_v59  ;;  %v5083_v9 = vpack.c.b16 %v5073_v17, %v5071_v10  ;;  %v9015_v10 = vld [vmem:[#allocation2 + $0x148] sm:$0x11]  ;;  %v9025_v14 = vld [vmem:[#allocation2 + $0x158] sm:$0x11] }
 0x2e9   : > { %v1942_v50 = vunpack.c.h.bf16 %v1927_v46  ;;  %v1943_v13 = vunpack.c.l.bf16 %v1928_v35  ;;  %v1944_v52 = vunpack.c.h.bf16 %v1928_v35  ;;  %v1976_v37 = vmul.f32 %v8148_v16, %v1792_v27 }
 0x2ea   : > { %v1974_v23 = vmul.f32 %v8148_v16, %v1941_v25  ;;  %v1977_v51 = vmul.f32 %v8150_v8, %v1793_v63  ;;  %v2518_v28 = vrot.slane %v9638_v54, 1  ;;  %5192 = vmatmul.bf16.gmra.mxu2 %v5082_v4  ;;  %5742 = vmatmul.msk.bf16.gmra.mxu3 %vm736_vm3, %v5083_v9  ;;  %v1980_v49 = vmul.f32 %v8148_v16, %v1796_v40 }
 0x2eb   : > { %v1975_v48 = vmul.f32 %v8150_v8, %v1942_v50  ;;  %v1978_v47 = vmul.f32 %v8148_v16, %v1943_v13  ;;  %v1979_v27 = vmul.f32 %v8150_v8, %v1944_v52  ;;  %v1981_v41 = vmul.f32 %v8150_v8, %v1797_v2  ;;  %v2141_v2 = vld [vmem:[#allocation2 + $0x150] sm:$0xff] }
 0x2ec   : > { %v2051_v63 = vrot.slane %v1974_v23, 1  ;;  %v2052_v60 = vrot.slane %v1976_v37, 1  ;;  %v2055_v55 = vrot.slane %v1977_v51, 1  ;;  %v2058_v30 = vrot.slane %v1980_v49, 1 }
 0x2ed   : > { %v2054_v43 = vrot.slane %v1975_v48, 1  ;;  %v2057_v29 = vrot.slane %v1978_v47, 1  ;;  %v2060_v61 = vrot.slane %v1979_v27, 1  ;;  %v2061_v59 = vrot.slane %v1981_v41, 1 }
 0x2ee   : > { %v2053_v46 = vsel %vm2014_vm1, %v2051_v63, %v2052_v60  ;;  %v2167_v16 = vunpack.c.l.bf16 %v2139_v32  ;;  %v9023_v8 = vadd.f32 %v2052_v60, %v8941_v62  ;;  %v9032_v4 = vadd.f32 %v2055_v55, %v8946_v0 }
 0x2ef   : > { %v2056_v40 = vsel %vm2014_vm1, %v2054_v43, %v2055_v55  ;;  %v2059_v35 = vsel %vm2014_vm1, %v2057_v29, %v2058_v30  ;;  %v9020_v56 = vadd.f32 %v2053_v46, %v8931_v38  ;;  %v2062_v17 = vsel %vm2014_vm1, %v2060_v61, %v2061_v59 }
 0x2f0   : > { %v9029_v25 = vadd.f32 %v2056_v40, %v8936_v11  ;;  %v9035_v9 = vadd.f32 %v2059_v35, %v8951_v1  ;;  %v9038_v38 = vadd.f32 %v2062_v17, %v8956_v19  ;;  %v9041_v62 = vadd.f32 %v2058_v30, %v8961_v42  ;;  %v2591_v40 = vld [vmem:[#allocation2 + $0x140] sm:$0xee] }
 0x2f1   : > { %v2168_v50 = vunpack.c.h.bf16 %v2139_v32  ;;  %v2169_v13 = vunpack.c.l.bf16 %v9015_v10  ;;  %v2170_v52 = vunpack.c.h.bf16 %v9015_v10  ;;  %v2171_v23 = vunpack.c.l.bf16 %v2141_v2  ;;  %v9121_v10 = vld [vmem:[#allocation2 + $0x2d8] sm:$0x11] }
 0x2f2   : > { %v2172_v11 = vunpack.c.h.bf16 %v2141_v2  ;;  %v2173_v37 = vunpack.c.l.bf16 %v9025_v14  ;;  %v2174_v0 = vunpack.c.h.bf16 %v9025_v14  ;;  %v2204_v1 = vmul.f32 %v8191_v36, %v2167_v16 }
 0x2f3   : > { %v2205_v51 = vmul.f32 %v8193_v3, %v2168_v50  ;;  %v2206_v19 = vmul.f32 %v8191_v36, %v2169_v13  ;;  %v2207_v42 = vmul.f32 %v8193_v3, %v2170_v52  ;;  %v2208_v48 = vmul.f32 %v8191_v36, %v2171_v23  ;;  %v2592_v23 = vld [vmem:[#allocation2 + $0x150] sm:$0xee] }
 0x2f4   : > { %v2209_v47 = vmul.f32 %v8193_v3, %v2172_v11  ;;  %v2210_v49 = vmul.f32 %v8191_v36, %v2173_v37  ;;  %v2126_v32 = vadd.f32 %v2061_v59, %v8966_v58  ;;  %v2211_v27 = vmul.f32 %v8193_v3, %v2174_v0  ;;  %v9639_v11 = vld [vmem:[#allocation17_spill] sm:$0xff] }
 0x2f5   : > { %v2280_v41 = vrot.slane %v2204_v1, 7  ;;  %v2282_v63 = vrot.slane %v2206_v19, 7  ;;  %v2281_v60 = vrot.slane %v2205_v51, 7  ;;  %v2284_v43 = vrot.slane %v2207_v42, 7  ;;  %v9642_v19 = vld [vmem:[#allocation12_spill] sm:$0xff]  ;;  %v9643_v42 = vld [vmem:[#allocation18_spill] sm:$0xff] }
 0x2f6   : > { %v2286_v55 = vrot.slane %v2208_v48, 7  ;;  %v2288_v29 = vrot.slane %v2210_v49, 7  ;;  %v2287_v46 = vrot.slane %v2209_v47, 7  ;;  %v2290_v61 = vrot.slane %v2211_v27, 7 }
 0x2f7   : > { %v2283_v30 = vsel %vm876_vm12, %v2280_v41, %v2282_v63  ;;  %v2348_v16 = vadd.f32 %v2280_v41, %v8971_v44  ;;  %v2285_v36 = vsel %vm876_vm12, %v2281_v60, %v2284_v43  ;;  %v2349_v59 = vadd.f32 %v2281_v60, %v8974_v5 }
 0x2f8   : > { %v2289_v58 = vsel %vm876_vm12, %v2286_v55, %v2288_v29  ;;  %v2350_v3 = vadd.f32 %v2283_v30, %v8979_v31  ;;  %v2291_v35 = vsel %vm876_vm12, %v2287_v46, %v2290_v61  ;;  %v2351_v2 = vadd.f32 %v2285_v36, %v8982_v18  ;;  %v9646_v29 = vld [vmem:[#allocation16_spill] sm:$0xff]  ;;  %v9648_v36 = vld [vmem:[#allocation39_spill] sm:$0xff] }
 0x2f9   : > { %v2352_v17 = vadd.f32 %v2286_v55, %v8985_v22  ;;  %v2353_v50 = vadd.f32 %v2287_v46, %v8988_v26  ;;  %v2354_v44 = vadd.f32 %v2289_v58, %v8991_v6  ;;  %v9640_v1 = vunpack.c.l.bf16 %v9639_v11  ;;  %v9647_v46 = vld [vmem:[#allocation26_spill] sm:$0xff]  ;;  %v9650_v58 = vld [vmem:[#allocation40_spill] sm:$0xff] }
 0x2fa   : > { %v9641_v5 = vunpack.c.h.bf16 %v9639_v11  ;;  %v9644_v48 = vunpack.c.l.bf16 %v9643_v42  ;;  %v2355_v18 = vadd.f32 %v2291_v35, %v8994_v53  ;;  %v9645_v22 = vunpack.c.h.bf16 %v9643_v42 }
 0x2fb   : > { %v2435_v51 = vmul.f32 %v6698_v12, %v9640_v1  ;;  %v2605_v49 = vunpack.c.l.bf16 %v2591_v40  ;;  %v2606_v6 = vunpack.c.h.bf16 %v2591_v40  ;;  %v2607_v60 = vunpack.c.l.bf16 %v2592_v23  ;;  %v9652_v1 = vld [vmem:[#allocation41_spill] sm:$0xff] }
 0x2fc   : > { %v2436_v31 = vmul.f32 %v9642_v19, %v9641_v5  ;;  %v2439_v47 = vmul.f32 %v6698_v12, %v9644_v48  ;;  %v2440_v26 = vmul.f32 %v9642_v19, %v9645_v22  ;;  %v2608_v55 = vunpack.c.h.bf16 %v2592_v23 }
 0x2fd   : > { %v2510_v27 = vrot.slane %v2435_v51, 1  ;;  %v2638_v30 = vmul.f32 %v9646_v29, %v2605_v49  ;;  %v2639_v61 = vmul.f32 %v9647_v46, %v2606_v6  ;;  %v9649_v12 = vrot.slane %v9648_v36, 1 }
 0x2fe   : > { %v2513_v41 = vrot.slane %v2436_v31, 1  ;;  %v2516_v63 = vrot.slane %v2439_v47, 1  ;;  %v2519_v43 = vrot.slane %v2440_v26, 1  ;;  %v9651_v35 = vrot.slane %v9650_v58, 1 }
 0x2ff   : > { %v2511_v53 = vsel %vm2014_vm1, %v9649_v12, %v2510_v27  ;;  %v9653_v40 = vrot.slane %v9652_v1, 1  ;;  %v2640_v5 = vmul.f32 %v9646_v29, %v2169_v13  ;;  %v2579_v42 = vadd.f32 %v2510_v27, %v9023_v8  ;;  %v2692_v8 = vld [vmem:[#allocation2 + $0x2d0] sm:$0xff] }
 0x300   : > { %v2514_v11 = vsel %vm2014_vm1, %v9651_v35, %v2513_v41  ;;  %v2520_v23 = vsel %vm2014_vm1, %v2518_v28, %v2519_v43  ;;  %v2577_v19 = vadd.f32 %v2511_v53, %v9020_v56  ;;  %v2580_v48 = vadd.f32 %v2513_v41, %v9032_v4  ;;  %v2810_v53 = vld [vmem:[#allocation2 + $0x218] sm:$0x11] }
 0x301   : > { %v2517_v51 = vsel %vm2014_vm1, %v9653_v40, %v2516_v63  ;;  %v2578_v31 = vadd.f32 %v2514_v11, %v9029_v25  ;;  %v2582_v22 = vadd.f32 %v2520_v23, %v9038_v38  ;;  %v2583_v26 = vadd.f32 %v2516_v63, %v9041_v62  ;;  %v9113_v25 = vld [vmem:[#allocation2 + $0x2c8] sm:$0x11] }
 0x302   : > { %v2581_v47 = vadd.f32 %v2517_v51, %v9035_v9  ;;  %v2584_v49 = vadd.f32 %v2519_v43, %v2126_v32  ;;  %v2641_v54 = vmul.f32 %v9647_v46, %v2170_v52  ;;  %v2642_v28 = vmul.f32 %v9646_v29, %v2607_v60 }
 0x303   : > { %v2643_v56 = vmul.f32 %v9647_v46, %v2608_v55  ;;  %v2644_v4 = vmul.f32 %v9646_v29, %v2173_v37  ;;  %v2645_v9 = vmul.f32 %v9647_v46, %v2174_v0  ;;  %v2670_v38 = vadd.f32 %v2638_v30, %v2348_v16  ;;  %v9654_v0 = vld [vmem:[#allocation19_spill] sm:$0xff] }
 0x304   : > { %v2671_v62 = vadd.f32 %v2639_v61, %v2349_v59  ;;  %v2672_v13 = vadd.f32 %v2640_v5, %v2350_v3  ;;  %v2673_v52 = vadd.f32 %v2641_v54, %v2351_v2  ;;  %v2674_v32 = vadd.f32 %v2642_v28, %v2352_v17  ;;  %v9655_v59 = vld [vmem:[#allocation20_spill] sm:$0xff]  ;;  %v2808_v61 = vld [vmem:[#allocation2 + $0x208] sm:$0x11] }
 0x305   : > { %v2675_v6 = vadd.f32 %v2643_v56, %v2353_v50  ;;  %v2676_v27 = vadd.f32 %v2644_v4, %v2354_v44  ;;  %v2720_v41 = vunpack.c.l.bf16 %v9113_v25  ;;  %v2721_v63 = vunpack.c.h.bf16 %v9113_v25  ;;  %v2807_v44 = vld [vmem:[#allocation2 + $0x200] sm:$0xee]  ;;  %v2919_v4 = vld [vmem:[#allocation2 + $0x2d0] sm:$0xee] }
 0x306   : > { %v2722_v60 = vunpack.c.l.bf16 %v2692_v8  ;;  %v2723_v43 = vunpack.c.h.bf16 %v2692_v8  ;;  %v2724_v37 = vunpack.c.l.bf16 %v9121_v10  ;;  %v2725_v14 = vunpack.c.h.bf16 %v9121_v10 }
 0x307   : > { %v2755_v16 = vmul.f32 %v9654_v0, %v1794_v21  ;;  %v2756_v3 = vmul.f32 %v9655_v59, %v1795_v34  ;;  %v2757_v2 = vmul.f32 %v9654_v0, %v2720_v41  ;;  %v2758_v17 = vmul.f32 %v9655_v59, %v2721_v63  ;;  %v2809_v21 = vld [vmem:[#allocation2 + $0x210] sm:$0xee] }
 0x308   : > { %v2759_v50 = vmul.f32 %v9654_v0, %v2722_v60  ;;  %v2677_v55 = vadd.f32 %v2645_v9, %v2355_v18  ;;  %v2760_v29 = vmul.f32 %v9655_v59, %v2723_v43  ;;  %v2761_v30 = vmul.f32 %v9654_v0, %v2724_v37 }
 0x309   : > { %v2762_v46 = vmul.f32 %v9655_v59, %v2725_v14  ;;  %v9139_v36 = vadd.f32 %v2755_v16, %v2577_v19  ;;  %v9141_v15 = vadd.f32 %v2756_v3, %v2578_v31  ;;  %v2789_v34 = vadd.f32 %v2757_v2, %v2579_v42 }
 0x30a   : > { %v2790_v12 = vadd.f32 %v2758_v17, %v2580_v48  ;;  %v2791_v58 = vadd.f32 %v2759_v50, %v2581_v47  ;;  %v2792_v35 = vadd.f32 %v2760_v29, %v2582_v22  ;;  %v2793_v11 = vadd.f32 %v2761_v30, %v2583_v26  ;;  %v2918_v47 = vld [vmem:[#allocation2 + $0x2c0] sm:$0xee] }
 0x30b   : > { %v2835_v1 = vunpack.c.l.bf16 %v2807_v44  ;;  %v2836_v18 = vunpack.c.h.bf16 %v2807_v44  ;;  %v2837_v40 = vunpack.c.l.bf16 %v2808_v61  ;;  %v2838_v51 = vunpack.c.h.bf16 %v2808_v61 }
 0x30c   : > { %v2839_v5 = vunpack.c.l.bf16 %v2809_v21  ;;  %v2840_v23 = vunpack.c.h.bf16 %v2809_v21  ;;  %v2841_v54 = vunpack.c.l.bf16 %v2810_v53  ;;  %v2842_v28 = vunpack.c.h.bf16 %v2810_v53 }
 0x30d   : > { %v2872_v56 = vmul.f32 %v8324_v7, %v2835_v1  ;;  %v2873_v19 = vmul.f32 %v8326_v39, %v2836_v18  ;;  %v2874_v31 = vmul.f32 %v8324_v7, %v2837_v40  ;;  %v2875_v42 = vmul.f32 %v8326_v39, %v2838_v51 }
 0x30e   : > { %v2876_v48 = vmul.f32 %v8324_v7, %v2839_v5  ;;  %v2794_v22 = vadd.f32 %v2762_v46, %v2584_v49  ;;  %v2877_v26 = vmul.f32 %v8326_v39, %v2840_v23  ;;  %v2878_v25 = vmul.f32 %v8324_v7, %v2841_v54 }
 0x30f   : > { %v2879_v8 = vmul.f32 %v8326_v39, %v2842_v28  ;;  %v2904_v9 = vadd.f32 %v2872_v56, %v2670_v38  ;;  %v2905_v10 = vadd.f32 %v2873_v19, %v2671_v62  ;;  %v2906_v60 = vadd.f32 %v2874_v31, %v2672_v13 }
 0x310   : > { %v2907_v43 = vadd.f32 %v2875_v42, %v2673_v52  ;;  %v2908_v0 = vadd.f32 %v2876_v48, %v2674_v32  ;;  %v2909_v16 = vadd.f32 %v2877_v26, %v2675_v6  ;;  %v2910_v59 = vadd.f32 %v2878_v25, %v2676_v27 }
 0x311   : > { %v2932_v3 = vunpack.c.l.bf16 %v2918_v47  ;;  %v2933_v2 = vunpack.c.h.bf16 %v2918_v47  ;;  %v2934_v17 = vunpack.c.l.bf16 %v2919_v4  ;;  %v2935_v50 = vunpack.c.h.bf16 %v2919_v4 }
 0x312   : > { %v2967_v49 = vmul.f32 %v8339_v24, %v2720_v41  ;;  %v2968_v7 = vmul.f32 %v8341_v57, %v2721_v63  ;;  %v2971_v39 = vmul.f32 %v8339_v24, %v2724_v37  ;;  %v2972_v38 = vmul.f32 %v8341_v57, %v2725_v14 }
 0x313   : > { %v2965_v44 = vmul.f32 %v8339_v24, %v2932_v3  ;;  %v2966_v62 = vmul.f32 %v8341_v57, %v2933_v2  ;;  %v2969_v13 = vmul.f32 %v8339_v24, %v2934_v17  ;;  %v2970_v52 = vmul.f32 %v8341_v57, %v2935_v50 }
 0x314   : > { %v3042_v32 = vrot.slane %v2967_v49, 1  ;;  %v3045_v27 = vrot.slane %v2968_v7, 1  ;;  %v3048_v29 = vrot.slane %v2971_v39, 1  ;;  %v3051_v30 = vrot.slane %v2972_v38, 1  ;;  %v5013_v49 = vpop.f32.mrf.mxu0 }
 0x315   : > { %v3041_v6 = vrot.slane %v2965_v44, 1  ;;  %v2911_v41 = vadd.f32 %v2879_v8, %v2677_v55  ;;  %v3044_v46 = vrot.slane %v2966_v62, 1  ;;  %v3047_v61 = vrot.slane %v2969_v13, 1  ;;  %v5042_v44 = vpop.f32.mrf.mxu1 }
 0x316   : > { %v3050_v21 = vrot.slane %v2970_v52, 1  ;;  %v3111_v37 = vadd.f32 %v3042_v32, %v2789_v34  ;;  %v3112_v53 = vadd.f32 %v3045_v27, %v2790_v12  ;;  %v3115_v14 = vadd.f32 %v3048_v29, %v2793_v11 }
 0x317   : > { %v3043_v63 = vsel %vm2014_vm1, %v3041_v6, %v3042_v32  ;;  %v3046_v1 = vsel %vm2014_vm1, %v3044_v46, %v3045_v27  ;;  %v3049_v24 = vsel %vm2014_vm1, %v3047_v61, %v3048_v29  ;;  %v3116_v18 = vadd.f32 %v3051_v30, %v2794_v22 }
 0x318   : > { %v3052_v57 = vsel %vm2014_vm1, %v3050_v21, %v3051_v30  ;;  %v3109_v40 = vadd.f32 %v3043_v63, %v9139_v36  ;;  %v3110_v51 = vadd.f32 %v3046_v1, %v9141_v15  ;;  %v3113_v55 = vadd.f32 %v3049_v24, %v2791_v58 }
 0x319   : > { %v3114_v5 = vadd.f32 %v3052_v57, %v2792_v35  ;;  %v3185_v23 = vrot.slane %v2904_v9, 1  ;;  %v3186_v54 = vrot.slane %v2906_v60, 1  ;;  %v3188_v28 = vrot.slane %v2905_v10, 1 }
 0x31a   : > { %v3189_v56 = vrot.slane %v2907_v43, 1  ;;  %v3191_v34 = vrot.slane %v2908_v0, 1  ;;  %v3192_v12 = vrot.slane %v2910_v59, 1  ;;  %v3194_v11 = vrot.slane %v2909_v16, 1 }
 0x31b   : > { %v3195_v19 = vrot.slane %v2911_v41, 1  ;;  %v3187_v31 = vsel %vm2014_vm1, %v3185_v23, %v3186_v54  ;;  %v3255_v48 = vadd.f32 %v3186_v54, %v3111_v37  ;;  %v5043_v24 = vadd.f32 %v5042_v44, %v5013_v49 }
 0x31c   : > { %v3190_v42 = vsel %vm2014_vm1, %v3188_v28, %v3189_v56  ;;  %v3256_v47 = vadd.f32 %v3189_v56, %v3112_v53  ;;  %v3193_v36 = vsel %vm2014_vm1, %v3191_v34, %v3192_v12  ;;  %v3253_v58 = vadd.f32 %v3187_v31, %v3109_v40  ;;  %v5015_v57 = vpop.f32.mrf.mxu0  ;;  %v9183_v28 = vld [vmem:[%s9262_s12] ss:$0 sm:$0xff] }
 0x31d   : > { %v3196_v15 = vsel %vm2014_vm1, %v3194_v11, %v3195_v19  ;;  %v3254_v35 = vadd.f32 %v3190_v42, %v3110_v51  ;;  %v3257_v22 = vadd.f32 %v3193_v36, %v3113_v55  ;;  %v3259_v25 = vadd.f32 %v3192_v12, %v3115_v14  ;;  %v5183_v55 = vpop.f32.mrf.mxu2 }
 0x31e   : > { %v3258_v26 = vadd.f32 %v3196_v15, %v3114_v5  ;;  %v3260_v8 = vadd.f32 %v3195_v19, %v3116_v18  ;;  %v3291_v4 = vadd.f32 %v8371_v20, %v3253_v58  ;;  %v3293_v10 = vadd.f32 %v8371_v20, %v3255_v48  ;;  %v5044_v18 = vpop.f32.mrf.mxu1  ;;  %v5212_v5 = vpop.f32.mrf.mxu3 }
 0x31f   : > { %v3292_v9 = vadd.f32 %v8374_v33, %v3254_v35  ;;  %v3294_v60 = vadd.f32 %v8374_v33, %v3256_v47  ;;  %v3295_v43 = vadd.f32 %v8371_v20, %v3257_v22  ;;  %v3297_v16 = vadd.f32 %v8371_v20, %v3259_v25 }
 0x320   : > { %v3296_v0 = vadd.f32 %v8374_v33, %v3258_v26  ;;  %v3298_v59 = vadd.f32 %v8374_v33, %v3260_v8  ;;  %v3323_v3 = vmax.f32 %v3291_v4, 0.0  ;;  %v3325_v17 = vmax.f32 %v3293_v10, 0.0 }
 0x321   : > { %v3324_v2 = vmax.f32 %v3292_v9, 0.0  ;;  %v3326_v50 = vmax.f32 %v3294_v60, 0.0  ;;  %v3327_v7 = vmax.f32 %v3295_v43, 0.0  ;;  %v3329_v38 = vmax.f32 %v3297_v16, 0.0 }
 0x322   : > { %v3328_v39 = vmax.f32 %v3296_v0, 0.0  ;;  %v3330_v62 = vmax.f32 %v3298_v59, 0.0  ;;  %v5184_v54 = vadd.f32 %v5183_v55, %v5043_v24  ;;  %v5045_v36 = vadd.f32 %v5044_v18, %v5015_v57 }
 0x323   : > { %v3343_v13 = vpack.c.bf16 %v3324_v2, %v3323_v3  ;;  %v3344_v52 = vpack.c.bf16 %v3326_v50, %v3325_v17 }
 0x324   : > { %v3345_v32 = vpack.c.bf16 %v3328_v39, %v3327_v7  ;;  %v3346_v6 = vpack.c.bf16 %v3330_v62, %v3329_v38  ;;  %v5213_v31 = vadd.f32 %v5212_v5, %v5184_v54  ;;  %v5018_v22 = vpop.f32.mrf.mxu0 }
 0x325   : > { %v3435_v27 = vshrl.u32 %v3343_v13, 16  ;;  %v3438_v29 = vshll.u32 %v3343_v13, 16  ;;  %v3444_v46 = vshll.u32 %v3344_v52, 16  ;;  %v5185_v58 = vpop.f32.mrf.mxu2 }
 0x326   : > { %v3449_v30 = vshrl.u32 %v3345_v32, 16  ;;  %v3452_v20 = vshll.u32 %v3345_v32, 16  ;;  %v3458_v63 = vshll.u32 %v3346_v6, 16  ;;  %v5236_v47 = vadd.f32 %v9183_v28, %v5213_v31  ;;  %v5214_v45 = vpop.f32.mrf.mxu3  ;;  %v5047_v26 = vpop.f32.mrf.mxu1 }
 0x327   : > { %v3437_v41 = vrot.slane %v3435_v27, 4  ;;  %v3440_v33 = vrot.slane %v3438_v29, 5  ;;  %v3446_v1 = vrot.slane %v3444_v46, 5  ;;  %v5186_v35 = vadd.f32 %v5185_v58, %v5045_v36 }
 0x328   : > { %v3451_v61 = vrot.slane %v3449_v30, 4  ;;  %v3454_v21 = vrot.slane %v3452_v20, 5  ;;  %v3460_v51 = vrot.slane %v3458_v63, 5  ;;  %v5244_v15 = vpack.c.bf16 %v5236_v47, %v5236_v47 }
 0x329   : > { %v3441_v37 = vor.u32 %v3440_v33, %v3437_v41  ;;  %v5215_v25 = vadd.f32 %v5214_v45, %v5186_v35  ;;  %v5048_v4 = vadd.f32 %v5047_v26, %v5018_v22 }
 0x32a   : > { %v3455_v53 = vor.u32 %v3454_v21, %v3451_v61  ;;  %5253 = vst.msk [vmem:[%s9191_s30] sm:$0xf] %vm5252_vm6, %v5244_v15 }
 0x32b   : > { %v3442_v14 = vrot.slane %v3441_v37, 4  ;;  %v5237_v8 = vadd.f32 %v9183_v28, %v5215_v25 }
 0x32c   : > { %v3456_v40 = vrot.slane %v3455_v53, 4  ;;  %v5020_v16 = vpop.f32.mrf.mxu0 }
 0x32d   : > { %v3447_v23 = vsel %vm8428_vm5, %v3442_v14, %v3446_v1  ;;  %v5245_v9 = vpack.c.bf16 %v5237_v8, %v5237_v8  ;;  %v5188_v10 = vpop.f32.mrf.mxu2 }
 0x32e   : > { %v3461_v56 = vsel %vm8428_vm5, %v3456_v40, %v3460_v51  ;;  %v5074_v34 = vunpack.c.l.b16 %v3447_v23  ;;  %v5075_v12 = vunpack.c.h.b16 %v3447_v23  ;;  %v5217_v60 = vpop.f32.mrf.mxu3  ;;  %v5189_v43 = vadd.f32 %v5188_v10, %v5048_v4  ;;  %v5049_v59 = vpop.f32.mrf.mxu1 }
 0x32f   : > { %v5076_v11 = vunpack.c.l.b16 %v3461_v56  ;;  %v5077_v19 = vunpack.c.h.b16 %v3461_v56  ;;  %5254 = vst.msk [vmem:[%s9191_s30 + $0x4] sm:$0xf] %vm5252_vm6, %v5245_v9  ;;  %v5050_v2 = vadd.f32 %v5049_v59, %v5020_v16 }
 0x330   : > { %v5218_v0 = vadd.f32 %v5217_v60, %v5189_v43 }
 0x331   : > { %v5084_v42 = vpack.c.b16 %v5076_v11, %v5074_v34  ;;  %v5085_v48 = vpack.c.b16 %v5077_v19, %v5075_v12 }
 0x332   : > { %v5238_v3 = vadd.f32 %v9183_v28, %v5218_v0 }
 0x333   : > { %5197 = vmatmul.bf16.gmra.mxu2 %v5084_v42  ;;  %5743 = vmatmul.msk.bf16.gmra.mxu3 %vm736_vm3, %v5085_v48 }
 0x334   : > { %v5246_v17 = vpack.c.bf16 %v5238_v3, %v5238_v3  ;;  %v5023_v62 = vpop.f32.mrf.mxu0 }
 0x335   : > { %v5190_v50 = vpop.f32.mrf.mxu2 }
 0x336   : > { %5255 = vst.msk [vmem:[%s9191_s30 + $0x8] sm:$0xf] %vm5252_vm6, %v5246_v17  ;;  %v5191_v49 = vadd.f32 %v5190_v50, %v5050_v2  ;;  %v5219_v44 = vpop.f32.mrf.mxu3  ;;  %v5052_v13 = vpop.f32.mrf.mxu1 }
 0x337   : > { %v5053_v52 = vadd.f32 %v5052_v13, %v5023_v62 }
 0x338   : > { %v5220_v7 = vadd.f32 %v5219_v44, %v5191_v49 }
 0x33a   : > { %v5239_v39 = vadd.f32 %v9183_v28, %v5220_v7 }
 0x33c   : > { %v5247_v38 = vpack.c.bf16 %v5239_v39, %v5239_v39  ;;  %v5025_v30 = vpop.f32.mrf.mxu0 }
 0x33e   : > { %5256 = vst.msk [vmem:[%s9191_s30 + $0xc] sm:$0xf] %vm5252_vm6, %v5247_v38  ;;  %v5054_v20 = vpop.f32.mrf.mxu1 }
 0x33f   : > { %v5055_v33 = vadd.f32 %v5054_v20, %v5025_v30 }
 0x344   : > { %v5028_v1 = vpop.f32.mrf.mxu0 }
 0x346   : > { %v5057_v24 = vpop.f32.mrf.mxu1 }
 0x347   : > { %v5058_v57 = vadd.f32 %v5057_v24, %v5028_v1 }
 0x34c   : > { %v5030_v5 = vpop.f32.mrf.mxu0 }
 0x34e   : > { %v5059_v23 = vpop.f32.mrf.mxu1 }
 0x34f   : > { %v5060_v56 = vadd.f32 %v5059_v23, %v5030_v5 }
 0x36d   : > { %v5193_v32 = vpop.f32.mrf.mxu2  ;;  %v5222_v6 = vpop.f32.mrf.mxu3 }
 0x36e   : > { %v5194_v27 = vadd.f32 %v5193_v32, %v5053_v52 }
 0x370   : > { %v5223_v29 = vadd.f32 %v5222_v6, %v5194_v27 }
 0x372   : > { %v5240_v41 = vadd.f32 %v9183_v28, %v5223_v29 }
 0x374   : > { %v5248_v46 = vpack.c.bf16 %v5240_v41, %v5240_v41 }
 0x375   : > { %v5195_v61 = vpop.f32.mrf.mxu2  ;;  %v5224_v63 = vpop.f32.mrf.mxu3 }
 0x376   : > { %5257 = vst.msk [vmem:[%s9191_s30 + $0x10] sm:$0xf] %vm5252_vm6, %v5248_v46  ;;  %v5196_v21 = vadd.f32 %v5195_v61, %v5055_v33 }
 0x378   : > { %v5225_v37 = vadd.f32 %v5224_v63, %v5196_v21 }
 0x37a   : > { %v5241_v53 = vadd.f32 %v9183_v28, %v5225_v37 }
 0x37c   : > { %v5249_v14 = vpack.c.bf16 %v5241_v53, %v5241_v53 }
 0x37e   : > { %5258 = vst.msk [vmem:[%s9191_s30 + $0x14] sm:$0xf] %vm5252_vm6, %v5249_v14 }
 0x3b6   : > { %v5198_v18 = vpop.f32.mrf.mxu2  ;;  %v5227_v40 = vpop.f32.mrf.mxu3 }
 0x3b7   : > { %v5199_v51 = vadd.f32 %v5198_v18, %v5058_v57 }
 0x3b9   : > { %v5228_v55 = vadd.f32 %v5227_v40, %v5199_v51 }
 0x3bb   : > { %v5242_v54 = vadd.f32 %v9183_v28, %v5228_v55 }
 0x3bd   : > { %v5250_v34 = vpack.c.bf16 %v5242_v54, %v5242_v54 }
 0x3be   : > { %v5200_v12 = vpop.f32.mrf.mxu2  ;;  %v5229_v19 = vpop.f32.mrf.mxu3 }
 0x3bf   : > { %5259 = vst.msk [vmem:[%s9191_s30 + $0x18] sm:$0xf] %vm5252_vm6, %v5250_v34  ;;  %v5201_v11 = vadd.f32 %v5200_v12, %v5060_v56 }
 0x3c1   : > { %v5230_v31 = vadd.f32 %v5229_v19, %v5201_v11 }
 0x3c3   : > { %v5243_v42 = vadd.f32 %v9183_v28, %v5230_v31 }
 0x3c5   : > { %v5251_v48 = vpack.c.bf16 %v5243_v42, %v5243_v42 }
 0x3c7   : > { %5260 = vst.msk [vmem:[%s9191_s30 + $0x1c] sm:$0xf] %vm5252_vm6, %v5251_v48 }
 0x3c8   : > { %5877 = shalt.err (!%p5874_p3)
}
 0x3c9   : > { %s5915_s20 = smov 64   ;;  %s5916_s30 = smov 4  }
 0x3ca   : > { %5807 = dma.vmem_to_hbm [thread:$0]  (%p6025_p5), %s5275_s22, 512, %s5277_s19, %s5262_s29, %s5915_s20, %s5915_s20, %s5916_s30  }
 0x3cb PF: > { %p5813_p4 = scmp.ge.s32.totalorder %s5912_s28, 2  ;;  %s5291_s27 = sand.u32 1, %s5900_s25  }
 0x3cc   : > { %s5292_s17 = scalar_lea.sflag [#allocation4], %s5291_s27 }
 0x3cd   : > { %p5810_p7 = pnand %p5813_p4, %p6029_p6 }
 0x3cf   : > { %p5811_p8 = pneg %p5810_p7 }
 0x3d1   : > { %5895 = dma.done.wait (%p5811_p8), %s5292_s17, 512  }
 0x3d2   : > { %5897 = vsyncadd (%p5811_p8), %s5292_s17, 4294966784  ;;  %s9657_s28 = sld [smem:[#allocation7_spill]]  ;;  %s9660_s25 = smov %s5904_s26 }
 0x3d3   : > { %s9658_s15 = sld [smem:[#allocation6_spill]] }
 0x3d4   : > { %s9659_s27 = sld [smem:[#allocation8_spill]] }
 0x3d8   : > { %p23_p9 = scmp.ge.s32.totalorder %s9657_s28, 4  }
 0x3d9   : > { %s9661_s26 = smov %s9658_s15 }
 0x3da   :  { %25 = sbr.rel (!%p23_p9) target bundleno = 6 (0x6), region = 127 }
 0x3df   :  { %5298 = vsyncpa [#allocation4], 1 }
 0x3e0   :  { %5300 = vsyncpa [#allocation4 + $0x1], 1 }

</bundles_post_ra>
